<compile_context>
chip_gen: v6e
topology: v6e:2x2x1
jax: 0.10.0
libtpu: 0.0.40
codegen_flags: <defaults>
</compile_context>

<pallas_src>
import functools

import jax
import jax.numpy as jnp
from jax import lax
from jax.experimental import pallas as pl
from jax.experimental.pallas import tpu as pltpu

EPS = 1e-5
C_IN, C_MID, C_OUT = 512, 256, 64
H, W = 7, 7
HW = H * W
FLAT = C_OUT * HW                        # 3136 true feature width
FLAT_PAD = ((FLAT + 127) // 128) * 128   # 3200: every flatten store 128-lane dense


def _pick_vmem_limit_bytes():
    """Per-generation scoped-VMEM limit: ~100 MiB on v5e/v6e (128 MiB physical),
    ~48 MiB on v7x (64 MiB physical).  Conservative fallback if no TPU info."""
    try:
        cap = pltpu.get_tpu_info().vmem_capacity_bytes
        return int(min(max(cap - 16 * 1024 * 1024, cap // 2), 100 * 1024 * 1024))
    except Exception:
        return 32 * 1024 * 1024


_VMEM_LIMIT_BYTES = _pick_vmem_limit_bytes()


def _encoder_kernel(x_ref, w1_ref, w2_ref, bn_ref, bfc_ref, wfc_hbm,
                    o_ref, feat_ref, wfc_vmem, wfc_sem):
    # Start the w_fc HBM->VMEM stream immediately so its ~800 KB overlaps the
    # conv1/bn1/conv2/bn2 compute; wait only right before the fc matmul.
    wfc_copy = pltpu.make_async_copy(wfc_hbm, wfc_vmem, wfc_sem)
    wfc_copy.start()

    n = x_ref.shape[0]          # N = HW * B rows, ordered (h, w, b)
    batch = feat_ref.shape[0]   # B
    inv_n = 1.0 / n

    # Packed per-channel BN params: rows = [g1, be1, g2(pad), be2(pad)].
    g1, be1 = bn_ref[0:1, :], bn_ref[1:2, :]
    g2, be2 = bn_ref[2:3, :C_OUT], bn_ref[3:4, :C_OUT]

    # ---- conv1 (1x1) as a channel matmul.  Operands are stored bf16 (halves
    # the DMA) but the dot itself runs on f32 operands: this kernel is
    # DMA-bound, and a BF16xBF16->F32 dot is not executable on every backend
    # (that was the previous dispatch failure).  Conv bias dropped: it is
    # exactly cancelled by the batch-statistics BN mean subtraction.
    h = jnp.dot(x_ref[...].astype(jnp.float32), w1_ref[...].astype(jnp.float32),
                preferred_element_type=jnp.float32)

    # ---- bn1 (training-mode batch stats, single pass) folded into per-channel
    # scale/shift, then relu.  E[h^2]-mean^2 is fine in f32 at these magnitudes.
    mean1 = jnp.sum(h, axis=0, keepdims=True) * inv_n
    ex2_1 = jnp.sum(h * h, axis=0, keepdims=True) * inv_n
    var1 = ex2_1 - mean1 * mean1
    scale1 = g1 * lax.rsqrt(var1 + EPS)
    shift1 = be1 - mean1 * scale1
    h = jnp.maximum(h * scale1 + shift1, 0.0)

    # ---- conv2 (1x1), bn2, relu.  Result cast once to bf16 (feeds only the fc).
    h2 = jnp.dot(h, w2_ref[...].astype(jnp.float32),
                 preferred_element_type=jnp.float32)
    mean2 = jnp.sum(h2, axis=0, keepdims=True) * inv_n
    ex2_2 = jnp.sum(h2 * h2, axis=0, keepdims=True) * inv_n
    var2 = ex2_2 - mean2 * mean2
    scale2 = g2 * lax.rsqrt(var2 + EPS)
    shift2 = be2 - mean2 * scale2
    h2 = jnp.maximum(h2 * scale2 + shift2, 0.0).astype(jnp.bfloat16)   # (N, 64)

    # ---- NCHW flatten.  The PyTorch k = c*49 + hw ordering is folded into a
    # one-time row permutation of w_fc, so here feat[b, hw*64 + c] =
    # h2[hw*B + b, c].  Lane-dense: pairs of hw blocks are concatenated into
    # full 128-lane slabs (the odd 49th block is paired with zeros, matched by
    # zero rows in w_fc), so every store is unmasked in lanes.
    zeros_half = jnp.zeros((batch, C_OUT), jnp.bfloat16)
    for k in range(FLAT_PAD // 128):
        lo = h2[(2 * k) * batch:(2 * k + 1) * batch, :]
        if 2 * k + 1 < HW:
            hi = h2[(2 * k + 1) * batch:(2 * k + 2) * batch, :]
        else:
            hi = zeros_half
        feat_ref[:, k * 128:(k + 1) * 128] = jnp.concatenate([lo, hi], axis=1)

    # ---- fc: one lane-dense matmul over the padded 3200-wide features.
    wfc_copy.wait()
    o_ref[...] = jnp.dot(feat_ref[...].astype(jnp.float32),
                         wfc_vmem[...].astype(jnp.float32),
                         preferred_element_type=jnp.float32) + bfc_ref[...]


def prepare_params(p):
    """One-time, off-the-hot-path parameter prep:
       * drop conv biases (exact no-ops before training-mode batch-stat BN),
       * pack the BN per-channel vectors into one (4, 256) array,
       * fold the PyTorch NCHW flatten (k = c*49 + hw) into a row permutation
         of w_fc, pad its rows 3136->3200 (zero rows match the zero feature
         lanes) and its output dim up to a multiple of 128 lanes,
       * store the large matmul operands (w1, w2, w_fc) in bf16."""
    dframe = p["w_fc"].shape[1]
    dpad = ((dframe + 127) // 128) * 128

    bn = jnp.zeros((4, C_MID), jnp.float32)
    bn = bn.at[0, :].set(p["g1"][0].astype(jnp.float32))
    bn = bn.at[1, :].set(p["be1"][0].astype(jnp.float32))
    bn = bn.at[2, :C_OUT].set(p["g2"][0].astype(jnp.float32))
    bn = bn.at[3, :C_OUT].set(p["be2"][0].astype(jnp.float32))

    # w_fc_perm[hw*64 + c, :] = w_fc[c*49 + hw, :]
    wfc = p["w_fc"].reshape(C_OUT, HW, dframe).transpose(1, 0, 2).reshape(FLAT, dframe)
    wfc = jnp.pad(wfc, ((0, FLAT_PAD - FLAT), (0, dpad - dframe)))
    bfc = jnp.pad(p["b_fc"], ((0, 0), (0, dpad - dframe)))

    prep = {
        "w1": p["w1"].astype(jnp.bfloat16),
        "w2": p["w2"].astype(jnp.bfloat16),
        "bn": bn,
        "w_fc": wfc.astype(jnp.bfloat16),
        "b_fc": bfc.astype(jnp.float32),
    }
    return prep, dframe


@functools.partial(jax.jit, static_argnames=("dframe",))
def resnet_visual_encoder(x_nchw, prep, dframe):
    B, C, Hh, Ww = x_nchw.shape
    assert C == C_IN and Hh == H and Ww == W
    N = HW * B
    dpad = prep["w_fc"].shape[1]

    # Cast BEFORE the transpose so the relayout reads f32 but writes bf16
    # (half the HBM writeback of the largest activation).
    # TODO(synk): if the upstream producer can emit channels-last directly,
    # this transpose (an HBM round trip of the largest tensor) disappears.
    xs = jnp.transpose(x_nchw.astype(jnp.bfloat16), (2, 3, 0, 1)).reshape(N, C_IN)

    out_pad = pl.pallas_call(
        _encoder_kernel,
        out_shape=jax.ShapeDtypeStruct((B, dpad), jnp.float32),
        in_specs=[
            pl.BlockSpec(memory_space=pltpu.MemorySpace.VMEM),  # x
            pl.BlockSpec(memory_space=pltpu.MemorySpace.VMEM),  # w1
            pl.BlockSpec(memory_space=pltpu.MemorySpace.VMEM),  # w2
            pl.BlockSpec(memory_space=pltpu.MemorySpace.VMEM),  # packed bn params
            pl.BlockSpec(memory_space=pltpu.MemorySpace.VMEM),  # fc bias
            pl.BlockSpec(memory_space=pl.ANY),                  # w_fc stays in HBM
        ],
        out_specs=pl.BlockSpec(memory_space=pltpu.MemorySpace.VMEM),
        scratch_shapes=[
            pltpu.VMEM((B, FLAT_PAD), jnp.bfloat16),      # flattened features
            pltpu.VMEM((FLAT_PAD, dpad), jnp.bfloat16),   # w_fc landing buffer
            pltpu.SemaphoreType.DMA,                      # w_fc copy semaphore
        ],
        compiler_params=pltpu.CompilerParams(
            vmem_limit_bytes=_VMEM_LIMIT_BYTES),
    )(xs, prep["w1"], prep["w2"], prep["bn"], prep["b_fc"], prep["w_fc"])

    return out_pad[:, :dframe]


def ref_forward(x, p, quantize_like_kernel=False):
    """Pure-JAX reference mirroring the PyTorch forward (training-mode BN).
    All matmuls on f32 operands.  With quantize_like_kernel=True, the tensors
    the kernel stores in bf16 (x, w1, w2, w_fc, post-bn2 activations) are
    rounded through bf16 first, mirroring the kernel's precision exactly."""
    def q(a):
        if quantize_like_kernel:
            return a.astype(jnp.bfloat16).astype(jnp.float32)
        return a.astype(jnp.float32)

    def bn(h, g, be):
        m = h.mean(axis=(0, 2, 3), keepdims=True)
        v = ((h - m) ** 2).mean(axis=(0, 2, 3), keepdims=True)
        return (h - m) * lax.rsqrt(v + EPS) * g[0][None, :, None, None] \
            + be[0][None, :, None, None]

    h = jnp.einsum("bchw,co->bohw", q(x), q(p["w1"])) \
        + p["b1"][0][None, :, None, None]
    h = jnp.maximum(bn(h, p["g1"], p["be1"]), 0.0)

    h2 = jnp.einsum("bchw,co->bohw", h, q(p["w2"])) \
        + p["b2"][0][None, :, None, None]
    h2 = q(jnp.maximum(bn(h2, p["g2"], p["be2"]), 0.0))

    flat = h2.reshape(h2.shape[0], -1)            # PyTorch NCHW flatten
    return jnp.dot(flat, q(p["w_fc"])) + p["b_fc"][0]


def make_params(key, dframe):
    ks = jax.random.split(key, 6)
    s = 0.05
    return {
        "w1":  jax.random.normal(ks[0], (C_IN, C_MID), jnp.float32) * s,
        "b1":  jax.random.normal(ks[1], (1, C_MID), jnp.float32) * s,
        "g1":  jnp.ones((1, C_MID), jnp.float32),
        "be1": jnp.zeros((1, C_MID), jnp.float32),
        "w2":  jax.random.normal(ks[2], (C_MID, C_OUT), jnp.float32) * s,
        "b2":  jax.random.normal(ks[3], (1, C_OUT), jnp.float32) * s,
        "g2":  jnp.ones((1, C_OUT), jnp.float32),
        "be2": jnp.zeros((1, C_OUT), jnp.float32),
        "w_fc": jax.random.normal(ks[4], (FLAT, dframe), jnp.float32) * s,
        "b_fc": jax.random.normal(ks[5], (1, dframe), jnp.float32) * s,
    }


if __name__ == "__main__":
    key = jax.random.PRNGKey(0)
    k_x, k_p = jax.random.split(key)

    B, dframe = 2, 64
    x = jax.random.normal(k_x, (B, C_IN, H, W), jnp.float32)
    params = make_params(k_p, dframe)
    prep, dframe_true = prepare_params(params)

    out = resnet_visual_encoder(x, prep, dframe=dframe_true)
    out = jax.block_until_ready(out)
    assert out.shape == (B, dframe)

    # Tight check vs a reference with identical bf16 operand rounding.
    ref_q = ref_forward(x, params, quantize_like_kernel=True)
    assert jnp.allclose(out, ref_q, atol=1e-2, rtol=1e-2)

    # Loose sanity check vs the full-f32 PyTorch-equivalent reference
    # (slack accounts only for bf16 storage rounding of x / w1 / w2 / w_fc / h2).
    ref_f32 = ref_forward(x, params, quantize_like_kernel=False)
    assert jnp.allclose(out, ref_f32, atol=1.5e-1, rtol=1e-1)

    print("KERNEL_OK")
</pallas_src>

<mosaic_0001>
module attributes {stable_mosaic.version = 11 : i64} {
  func.func @_encoder_kernel(%arg0: memref<98x512xbf16, #tpu.memory_space<vmem>>, %arg1: memref<512x256xbf16, #tpu.memory_space<vmem>>, %arg2: memref<256x64xbf16, #tpu.memory_space<vmem>>, %arg3: memref<4x256xf32, #tpu.memory_space<vmem>>, %arg4: memref<1x128xf32, #tpu.memory_space<vmem>>, %arg5: memref<3200x128xbf16, #tpu.memory_space<any>>, %arg6: memref<2x128xf32, #tpu.memory_space<vmem>>, %arg7: memref<2x3200xbf16, #tpu.memory_space<vmem>>, %arg8: memref<3200x128xbf16, #tpu.memory_space<vmem>>, %arg9: memref<!tpu.dma_semaphore, #tpu.memory_space<semaphore_mem>>) attributes {dimension_semantics = [], scalar_prefetch = 0 : i64, scratch_operands = 3 : i64, tpu.core_type = #tpu.core_type<tc>} {
    tpu.enqueue_dma source(%arg5 : memref<3200x128xbf16, #tpu.memory_space<any>>) target(%arg8 : memref<3200x128xbf16, #tpu.memory_space<vmem>>) target_semaphore(%arg9 : memref<!tpu.dma_semaphore, #tpu.memory_space<semaphore_mem>>)
    %c0 = arith.constant 0 : index
    %c0_0 = arith.constant 0 : index
    %0 = vector.load %arg3[%c0, %c0_0] : memref<4x256xf32, #tpu.memory_space<vmem>>, vector<1x256xf32>
    %c1 = arith.constant 1 : index
    %c0_1 = arith.constant 0 : index
    %1 = vector.load %arg3[%c1, %c0_1] : memref<4x256xf32, #tpu.memory_space<vmem>>, vector<1x256xf32>
    %c2 = arith.constant 2 : index
    %c0_2 = arith.constant 0 : index
    %2 = vector.load %arg3[%c2, %c0_2] : memref<4x256xf32, #tpu.memory_space<vmem>>, vector<1x64xf32>
    %c3 = arith.constant 3 : index
    %c0_3 = arith.constant 0 : index
    %3 = vector.load %arg3[%c3, %c0_3] : memref<4x256xf32, #tpu.memory_space<vmem>>, vector<1x64xf32>
    %c0_4 = arith.constant 0 : index
    %c0_5 = arith.constant 0 : index
    %4 = vector.load %arg0[%c0_4, %c0_5] : memref<98x512xbf16, #tpu.memory_space<vmem>>, vector<98x512xbf16>
    %5 = arith.extf %4 : vector<98x512xbf16> to vector<98x512xf32>
    %c0_6 = arith.constant 0 : index
    %c0_7 = arith.constant 0 : index
    %6 = vector.load %arg1[%c0_6, %c0_7] : memref<512x256xbf16, #tpu.memory_space<vmem>>, vector<512x256xbf16>
    %7 = arith.extf %6 : vector<512x256xbf16> to vector<512x256xf32>
    %cst = arith.constant dense<0.000000e+00> : vector<98x256xf32>
    %8 = tpu.matmul %5, %7, %cst {dimension_numbers = #tpu.dot_dimension_numbers<[1], [0], [0], [1], [0, 0, 1, 1], [], []>} : vector<98x512xf32>, vector<512x256xf32>, vector<98x256xf32> -> vector<98x256xf32>
    %cst_8 = arith.constant dense<0.000000e+00> : vector<256xf32>
    %9 = vector.multi_reduction <add>, %8, %cst_8 [0] : vector<98x256xf32> to vector<256xf32>
    %10 = vector.shape_cast %9 : vector<256xf32> to vector<1x256xf32>
    %cst_9 = arith.constant 0.0102040814 : f32
    %11 = vector.broadcast %cst_9 : f32 to vector<1x256xf32>
    %12 = arith.mulf %10, %11 : vector<1x256xf32>
    %13 = arith.mulf %8, %8 : vector<98x256xf32>
    %cst_10 = arith.constant dense<0.000000e+00> : vector<256xf32>
    %14 = vector.multi_reduction <add>, %13, %cst_10 [0] : vector<98x256xf32> to vector<256xf32>
    %15 = vector.shape_cast %14 : vector<256xf32> to vector<1x256xf32>
    %cst_11 = arith.constant 0.0102040814 : f32
    %16 = vector.broadcast %cst_11 : f32 to vector<1x256xf32>
    %17 = arith.mulf %15, %16 : vector<1x256xf32>
    %18 = arith.mulf %12, %12 : vector<1x256xf32>
    %19 = arith.subf %17, %18 : vector<1x256xf32>
    %cst_12 = arith.constant 9.99999974E-6 : f32
    %20 = vector.broadcast %cst_12 : f32 to vector<1x256xf32>
    %21 = arith.addf %19, %20 : vector<1x256xf32>
    %22 = math.rsqrt %21 : vector<1x256xf32>
    %23 = arith.mulf %0, %22 : vector<1x256xf32>
    %24 = arith.mulf %12, %23 : vector<1x256xf32>
    %25 = arith.subf %1, %24 : vector<1x256xf32>
    %26 = vector.broadcast %23 : vector<1x256xf32> to vector<98x256xf32>
    %27 = arith.mulf %8, %26 : vector<98x256xf32>
    %28 = vector.broadcast %25 : vector<1x256xf32> to vector<98x256xf32>
    %29 = arith.addf %27, %28 : vector<98x256xf32>
    %cst_13 = arith.constant 0.000000e+00 : f32
    %30 = vector.broadcast %cst_13 : f32 to vector<98x256xf32>
    %31 = arith.maximumf %29, %30 : vector<98x256xf32>
    %c0_14 = arith.constant 0 : index
    %c0_15 = arith.constant 0 : index
    %32 = vector.load %arg2[%c0_14, %c0_15] : memref<256x64xbf16, #tpu.memory_space<vmem>>, vector<256x64xbf16>
    %33 = arith.extf %32 : vector<256x64xbf16> to vector<256x64xf32>
    %cst_16 = arith.constant dense<0.000000e+00> : vector<98x64xf32>
    %34 = tpu.matmul %31, %33, %cst_16 {dimension_numbers = #tpu.dot_dimension_numbers<[1], [0], [0], [1], [0, 0, 1, 1], [], []>} : vector<98x256xf32>, vector<256x64xf32>, vector<98x64xf32> -> vector<98x64xf32>
    %cst_17 = arith.constant dense<0.000000e+00> : vector<64xf32>
    %35 = vector.multi_reduction <add>, %34, %cst_17 [0] : vector<98x64xf32> to vector<64xf32>
    %36 = vector.shape_cast %35 : vector<64xf32> to vector<1x64xf32>
    %cst_18 = arith.constant 0.0102040814 : f32
    %37 = vector.broadcast %cst_18 : f32 to vector<1x64xf32>
    %38 = arith.mulf %36, %37 : vector<1x64xf32>
    %39 = arith.mulf %34, %34 : vector<98x64xf32>
    %cst_19 = arith.constant dense<0.000000e+00> : vector<64xf32>
    %40 = vector.multi_reduction <add>, %39, %cst_19 [0] : vector<98x64xf32> to vector<64xf32>
    %41 = vector.shape_cast %40 : vector<64xf32> to vector<1x64xf32>
    %cst_20 = arith.constant 0.0102040814 : f32
    %42 = vector.broadcast %cst_20 : f32 to vector<1x64xf32>
    %43 = arith.mulf %41, %42 : vector<1x64xf32>
    %44 = arith.mulf %38, %38 : vector<1x64xf32>
    %45 = arith.subf %43, %44 : vector<1x64xf32>
    %cst_21 = arith.constant 9.99999974E-6 : f32
    %46 = vector.broadcast %cst_21 : f32 to vector<1x64xf32>
    %47 = arith.addf %45, %46 : vector<1x64xf32>
    %48 = math.rsqrt %47 : vector<1x64xf32>
    %49 = arith.mulf %2, %48 : vector<1x64xf32>
    %50 = arith.mulf %38, %49 : vector<1x64xf32>
    %51 = arith.subf %3, %50 : vector<1x64xf32>
    %52 = vector.broadcast %49 : vector<1x64xf32> to vector<98x64xf32>
    %53 = arith.mulf %34, %52 : vector<98x64xf32>
    %54 = vector.broadcast %51 : vector<1x64xf32> to vector<98x64xf32>
    %55 = arith.addf %53, %54 : vector<98x64xf32>
    %cst_22 = arith.constant 0.000000e+00 : f32
    %56 = vector.broadcast %cst_22 : f32 to vector<98x64xf32>
    %57 = arith.maximumf %55, %56 : vector<98x64xf32>
    %58 = arith.truncf %57 : vector<98x64xf32> to vector<98x64xbf16>
    %cst_23 = arith.constant 0.000000e+00 : bf16
    %59 = vector.broadcast %cst_23 : bf16 to vector<2x64xbf16>
    %60 = vector.extract_strided_slice %58 {offsets = [0, 0], sizes = [2, 64], strides = [1, 1]} : vector<98x64xbf16> to vector<2x64xbf16>
    %61 = vector.extract_strided_slice %58 {offsets = [2, 0], sizes = [2, 64], strides = [1, 1]} : vector<98x64xbf16> to vector<2x64xbf16>
    %62 = tpu.concatenate %60, %61 in 1 : vector<2x64xbf16>, vector<2x64xbf16> -> vector<2x128xbf16>
    %c0_24 = arith.constant 0 : index
    %c0_25 = arith.constant 0 : index
    %63 = vector.load %arg7[%c0_24, %c0_25] : memref<2x3200xbf16, #tpu.memory_space<vmem>>, vector<2x128xbf16>
    tpu.vector_store %arg7[%c0_24, %c0_25], %62 {strides = array<i32>} : memref<2x3200xbf16, #tpu.memory_space<vmem>>, vector<2x128xbf16>,
    %64 = vector.extract_strided_slice %58 {offsets = [4, 0], sizes = [2, 64], strides = [1, 1]} : vector<98x64xbf16> to vector<2x64xbf16>
    %65 = vector.extract_strided_slice %58 {offsets = [6, 0], sizes = [2, 64], strides = [1, 1]} : vector<98x64xbf16> to vector<2x64xbf16>
    %66 = tpu.concatenate %64, %65 in 1 : vector<2x64xbf16>, vector<2x64xbf16> -> vector<2x128xbf16>
    %c0_26 = arith.constant 0 : index
    %c128 = arith.constant 128 : index
    %67 = vector.load %arg7[%c0_26, %c128] : memref<2x3200xbf16, #tpu.memory_space<vmem>>, vector<2x128xbf16>
    tpu.vector_store %arg7[%c0_26, %c128], %66 {strides = array<i32>} : memref<2x3200xbf16, #tpu.memory_space<vmem>>, vector<2x128xbf16>,
    %68 = vector.extract_strided_slice %58 {offsets = [8, 0], sizes = [2, 64], strides = [1, 1]} : vector<98x64xbf16> to vector<2x64xbf16>
    %69 = vector.extract_strided_slice %58 {offsets = [10, 0], sizes = [2, 64], strides = [1, 1]} : vector<98x64xbf16> to vector<2x64xbf16>
    %70 = tpu.concatenate %68, %69 in 1 : vector<2x64xbf16>, vector<2x64xbf16> -> vector<2x128xbf16>
    %c0_27 = arith.constant 0 : index
    %c256 = arith.constant 256 : index
    %71 = vector.load %arg7[%c0_27, %c256] : memref<2x3200xbf16, #tpu.memory_space<vmem>>, vector<2x128xbf16>
    tpu.vector_store %arg7[%c0_27, %c256], %70 {strides = array<i32>} : memref<2x3200xbf16, #tpu.memory_space<vmem>>, vector<2x128xbf16>,
    %72 = vector.extract_strided_slice %58 {offsets = [12, 0], sizes = [2, 64], strides = [1, 1]} : vector<98x64xbf16> to vector<2x64xbf16>
    %73 = vector.extract_strided_slice %58 {offsets = [14, 0], sizes = [2, 64], strides = [1, 1]} : vector<98x64xbf16> to vector<2x64xbf16>
    %74 = tpu.concatenate %72, %73 in 1 : vector<2x64xbf16>, vector<2x64xbf16> -> vector<2x128xbf16>
    %c0_28 = arith.constant 0 : index
    %c384 = arith.constant 384 : index
    %75 = vector.load %arg7[%c0_28, %c384] : memref<2x3200xbf16, #tpu.memory_space<vmem>>, vector<2x128xbf16>
    tpu.vector_store %arg7[%c0_28, %c384], %74 {strides = array<i32>} : memref<2x3200xbf16, #tpu.memory_space<vmem>>, vector<2x128xbf16>,
    %76 = vector.extract_strided_slice %58 {offsets = [16, 0], sizes = [2, 64], strides = [1, 1]} : vector<98x64xbf16> to vector<2x64xbf16>
    %77 = vector.extract_strided_slice %58 {offsets = [18, 0], sizes = [2, 64], strides = [1, 1]} : vector<98x64xbf16> to vector<2x64xbf16>
    %78 = tpu.concatenate %76, %77 in 1 : vector<2x64xbf16>, vector<2x64xbf16> -> vector<2x128xbf16>
    %c0_29 = arith.constant 0 : index
    %c512 = arith.constant 512 : index
    %79 = vector.load %arg7[%c0_29, %c512] : memref<2x3200xbf16, #tpu.memory_space<vmem>>, vector<2x128xbf16>
    tpu.vector_store %arg7[%c0_29, %c512], %78 {strides = array<i32>} : memref<2x3200xbf16, #tpu.memory_space<vmem>>, vector<2x128xbf16>,
    %80 = vector.extract_strided_slice %58 {offsets = [20, 0], sizes = [2, 64], strides = [1, 1]} : vector<98x64xbf16> to vector<2x64xbf16>
    %81 = vector.extract_strided_slice %58 {offsets = [22, 0], sizes = [2, 64], strides = [1, 1]} : vector<98x64xbf16> to vector<2x64xbf16>
    %82 = tpu.concatenate %80, %81 in 1 : vector<2x64xbf16>, vector<2x64xbf16> -> vector<2x128xbf16>
    %c0_30 = arith.constant 0 : index
    %c640 = arith.constant 640 : index
    %83 = vector.load %arg7[%c0_30, %c640] : memref<2x3200xbf16, #tpu.memory_space<vmem>>, vector<2x128xbf16>
    tpu.vector_store %arg7[%c0_30, %c640], %82 {strides = array<i32>} : memref<2x3200xbf16, #tpu.memory_space<vmem>>, vector<2x128xbf16>,
    %84 = vector.extract_strided_slice %58 {offsets = [24, 0], sizes = [2, 64], strides = [1, 1]} : vector<98x64xbf16> to vector<2x64xbf16>
    %85 = vector.extract_strided_slice %58 {offsets = [26, 0], sizes = [2, 64], strides = [1, 1]} : vector<98x64xbf16> to vector<2x64xbf16>
    %86 = tpu.concatenate %84, %85 in 1 : vector<2x64xbf16>, vector<2x64xbf16> -> vector<2x128xbf16>
    %c0_31 = arith.constant 0 : index
    %c768 = arith.constant 768 : index
    %87 = vector.load %arg7[%c0_31, %c768] : memref<2x3200xbf16, #tpu.memory_space<vmem>>, vector<2x128xbf16>
    tpu.vector_store %arg7[%c0_31, %c768], %86 {strides = array<i32>} : memref<2x3200xbf16, #tpu.memory_space<vmem>>, vector<2x128xbf16>,
    %88 = vector.extract_strided_slice %58 {offsets = [28, 0], sizes = [2, 64], strides = [1, 1]} : vector<98x64xbf16> to vector<2x64xbf16>
    %89 = vector.extract_strided_slice %58 {offsets = [30, 0], sizes = [2, 64], strides = [1, 1]} : vector<98x64xbf16> to vector<2x64xbf16>
    %90 = tpu.concatenate %88, %89 in 1 : vector<2x64xbf16>, vector<2x64xbf16> -> vector<2x128xbf16>
    %c0_32 = arith.constant 0 : index
    %c896 = arith.constant 896 : index
    %91 = vector.load %arg7[%c0_32, %c896] : memref<2x3200xbf16, #tpu.memory_space<vmem>>, vector<2x128xbf16>
    tpu.vector_store %arg7[%c0_32, %c896], %90 {strides = array<i32>} : memref<2x3200xbf16, #tpu.memory_space<vmem>>, vector<2x128xbf16>,
    %92 = vector.extract_strided_slice %58 {offsets = [32, 0], sizes = [2, 64], strides = [1, 1]} : vector<98x64xbf16> to vector<2x64xbf16>
    %93 = vector.extract_strided_slice %58 {offsets = [34, 0], sizes = [2, 64], strides = [1, 1]} : vector<98x64xbf16> to vector<2x64xbf16>
    %94 = tpu.concatenate %92, %93 in 1 : vector<2x64xbf16>, vector<2x64xbf16> -> vector<2x128xbf16>
    %c0_33 = arith.constant 0 : index
    %c1024 = arith.constant 1024 : index
    %95 = vector.load %arg7[%c0_33, %c1024] : memref<2x3200xbf16, #tpu.memory_space<vmem>>, vector<2x128xbf16>
    tpu.vector_store %arg7[%c0_33, %c1024], %94 {strides = array<i32>} : memref<2x3200xbf16, #tpu.memory_space<vmem>>, vector<2x128xbf16>,
    %96 = vector.extract_strided_slice %58 {offsets = [36, 0], sizes = [2, 64], strides = [1, 1]} : vector<98x64xbf16> to vector<2x64xbf16>
    %97 = vector.extract_strided_slice %58 {offsets = [38, 0], sizes = [2, 64], strides = [1, 1]} : vector<98x64xbf16> to vector<2x64xbf16>
    %98 = tpu.concatenate %96, %97 in 1 : vector<2x64xbf16>, vector<2x64xbf16> -> vector<2x128xbf16>
    %c0_34 = arith.constant 0 : index
    %c1152 = arith.constant 1152 : index
    %99 = vector.load %arg7[%c0_34, %c1152] : memref<2x3200xbf16, #tpu.memory_space<vmem>>, vector<2x128xbf16>
    tpu.vector_store %arg7[%c0_34, %c1152], %98 {strides = array<i32>} : memref<2x3200xbf16, #tpu.memory_space<vmem>>, vector<2x128xbf16>,
    %100 = vector.extract_strided_slice %58 {offsets = [40, 0], sizes = [2, 64], strides = [1, 1]} : vector<98x64xbf16> to vector<2x64xbf16>
    %101 = vector.extract_strided_slice %58 {offsets = [42, 0], sizes = [2, 64], strides = [1, 1]} : vector<98x64xbf16> to vector<2x64xbf16>
    %102 = tpu.concatenate %100, %101 in 1 : vector<2x64xbf16>, vector<2x64xbf16> -> vector<2x128xbf16>
    %c0_35 = arith.constant 0 : index
    %c1280 = arith.constant 1280 : index
    %103 = vector.load %arg7[%c0_35, %c1280] : memref<2x3200xbf16, #tpu.memory_space<vmem>>, vector<2x128xbf16>
    tpu.vector_store %arg7[%c0_35, %c1280], %102 {strides = array<i32>} : memref<2x3200xbf16, #tpu.memory_space<vmem>>, vector<2x128xbf16>,
    %104 = vector.extract_strided_slice %58 {offsets = [44, 0], sizes = [2, 64], strides = [1, 1]} : vector<98x64xbf16> to vector<2x64xbf16>
    %105 = vector.extract_strided_slice %58 {offsets = [46, 0], sizes = [2, 64], strides = [1, 1]} : vector<98x64xbf16> to vector<2x64xbf16>
    %106 = tpu.concatenate %104, %105 in 1 : vector<2x64xbf16>, vector<2x64xbf16> -> vector<2x128xbf16>
    %c0_36 = arith.constant 0 : index
    %c1408 = arith.constant 1408 : index
    %107 = vector.load %arg7[%c0_36, %c1408] : memref<2x3200xbf16, #tpu.memory_space<vmem>>, vector<2x128xbf16>
    tpu.vector_store %arg7[%c0_36, %c1408], %106 {strides = array<i32>} : memref<2x3200xbf16, #tpu.memory_space<vmem>>, vector<2x128xbf16>,
    %108 = vector.extract_strided_slice %58 {offsets = [48, 0], sizes = [2, 64], strides = [1, 1]} : vector<98x64xbf16> to vector<2x64xbf16>
    %109 = vector.extract_strided_slice %58 {offsets = [50, 0], sizes = [2, 64], strides = [1, 1]} : vector<98x64xbf16> to vector<2x64xbf16>
    %110 = tpu.concatenate %108, %109 in 1 : vector<2x64xbf16>, vector<2x64xbf16> -> vector<2x128xbf16>
    %c0_37 = arith.constant 0 : index
    %c1536 = arith.constant 1536 : index
    %111 = vector.load %arg7[%c0_37, %c1536] : memref<2x3200xbf16, #tpu.memory_space<vmem>>, vector<2x128xbf16>
    tpu.vector_store %arg7[%c0_37, %c1536], %110 {strides = array<i32>} : memref<2x3200xbf16, #tpu.memory_space<vmem>>, vector<2x128xbf16>,
    %112 = vector.extract_strided_slice %58 {offsets = [52, 0], sizes = [2, 64], strides = [1, 1]} : vector<98x64xbf16> to vector<2x64xbf16>
    %113 = vector.extract_strided_slice %58 {offsets = [54, 0], sizes = [2, 64], strides = [1, 1]} : vector<98x64xbf16> to vector<2x64xbf16>
    %114 = tpu.concatenate %112, %113 in 1 : vector<2x64xbf16>, vector<2x64xbf16> -> vector<2x128xbf16>
    %c0_38 = arith.constant 0 : index
    %c1664 = arith.constant 1664 : index
    %115 = vector.load %arg7[%c0_38, %c1664] : memref<2x3200xbf16, #tpu.memory_space<vmem>>, vector<2x128xbf16>
    tpu.vector_store %arg7[%c0_38, %c1664], %114 {strides = array<i32>} : memref<2x3200xbf16, #tpu.memory_space<vmem>>, vector<2x128xbf16>,
    %116 = vector.extract_strided_slice %58 {offsets = [56, 0], sizes = [2, 64], strides = [1, 1]} : vector<98x64xbf16> to vector<2x64xbf16>
    %117 = vector.extract_strided_slice %58 {offsets = [58, 0], sizes = [2, 64], strides = [1, 1]} : vector<98x64xbf16> to vector<2x64xbf16>
    %118 = tpu.concatenate %116, %117 in 1 : vector<2x64xbf16>, vector<2x64xbf16> -> vector<2x128xbf16>
    %c0_39 = arith.constant 0 : index
    %c1792 = arith.constant 1792 : index
    %119 = vector.load %arg7[%c0_39, %c1792] : memref<2x3200xbf16, #tpu.memory_space<vmem>>, vector<2x128xbf16>
    tpu.vector_store %arg7[%c0_39, %c1792], %118 {strides = array<i32>} : memref<2x3200xbf16, #tpu.memory_space<vmem>>, vector<2x128xbf16>,
    %120 = vector.extract_strided_slice %58 {offsets = [60, 0], sizes = [2, 64], strides = [1, 1]} : vector<98x64xbf16> to vector<2x64xbf16>
    %121 = vector.extract_strided_slice %58 {offsets = [62, 0], sizes = [2, 64], strides = [1, 1]} : vector<98x64xbf16> to vector<2x64xbf16>
    %122 = tpu.concatenate %120, %121 in 1 : vector<2x64xbf16>, vector<2x64xbf16> -> vector<2x128xbf16>
    %c0_40 = arith.constant 0 : index
    %c1920 = arith.constant 1920 : index
    %123 = vector.load %arg7[%c0_40, %c1920] : memref<2x3200xbf16, #tpu.memory_space<vmem>>, vector<2x128xbf16>
    tpu.vector_store %arg7[%c0_40, %c1920], %122 {strides = array<i32>} : memref<2x3200xbf16, #tpu.memory_space<vmem>>, vector<2x128xbf16>,
    %124 = vector.extract_strided_slice %58 {offsets = [64, 0], sizes = [2, 64], strides = [1, 1]} : vector<98x64xbf16> to vector<2x64xbf16>
    %125 = vector.extract_strided_slice %58 {offsets = [66, 0], sizes = [2, 64], strides = [1, 1]} : vector<98x64xbf16> to vector<2x64xbf16>
    %126 = tpu.concatenate %124, %125 in 1 : vector<2x64xbf16>, vector<2x64xbf16> -> vector<2x128xbf16>
    %c0_41 = arith.constant 0 : index
    %c2048 = arith.constant 2048 : index
    %127 = vector.load %arg7[%c0_41, %c2048] : memref<2x3200xbf16, #tpu.memory_space<vmem>>, vector<2x128xbf16>
    tpu.vector_store %arg7[%c0_41, %c2048], %126 {strides = array<i32>} : memref<2x3200xbf16, #tpu.memory_space<vmem>>, vector<2x128xbf16>,
    %128 = vector.extract_strided_slice %58 {offsets = [68, 0], sizes = [2, 64], strides = [1, 1]} : vector<98x64xbf16> to vector<2x64xbf16>
    %129 = vector.extract_strided_slice %58 {offsets = [70, 0], sizes = [2, 64], strides = [1, 1]} : vector<98x64xbf16> to vector<2x64xbf16>
    %130 = tpu.concatenate %128, %129 in 1 : vector<2x64xbf16>, vector<2x64xbf16> -> vector<2x128xbf16>
    %c0_42 = arith.constant 0 : index
    %c2176 = arith.constant 2176 : index
    %131 = vector.load %arg7[%c0_42, %c2176] : memref<2x3200xbf16, #tpu.memory_space<vmem>>, vector<2x128xbf16>
    tpu.vector_store %arg7[%c0_42, %c2176], %130 {strides = array<i32>} : memref<2x3200xbf16, #tpu.memory_space<vmem>>, vector<2x128xbf16>,
    %132 = vector.extract_strided_slice %58 {offsets = [72, 0], sizes = [2, 64], strides = [1, 1]} : vector<98x64xbf16> to vector<2x64xbf16>
    %133 = vector.extract_strided_slice %58 {offsets = [74, 0], sizes = [2, 64], strides = [1, 1]} : vector<98x64xbf16> to vector<2x64xbf16>
    %134 = tpu.concatenate %132, %133 in 1 : vector<2x64xbf16>, vector<2x64xbf16> -> vector<2x128xbf16>
    %c0_43 = arith.constant 0 : index
    %c2304 = arith.constant 2304 : index
    %135 = vector.load %arg7[%c0_43, %c2304] : memref<2x3200xbf16, #tpu.memory_space<vmem>>, vector<2x128xbf16>
    tpu.vector_store %arg7[%c0_43, %c2304], %134 {strides = array<i32>} : memref<2x3200xbf16, #tpu.memory_space<vmem>>, vector<2x128xbf16>,
    %136 = vector.extract_strided_slice %58 {offsets = [76, 0], sizes = [2, 64], strides = [1, 1]} : vector<98x64xbf16> to vector<2x64xbf16>
    %137 = vector.extract_strided_slice %58 {offsets = [78, 0], sizes = [2, 64], strides = [1, 1]} : vector<98x64xbf16> to vector<2x64xbf16>
    %138 = tpu.concatenate %136, %137 in 1 : vector<2x64xbf16>, vector<2x64xbf16> -> vector<2x128xbf16>
    %c0_44 = arith.constant 0 : index
    %c2432 = arith.constant 2432 : index
    %139 = vector.load %arg7[%c0_44, %c2432] : memref<2x3200xbf16, #tpu.memory_space<vmem>>, vector<2x128xbf16>
    tpu.vector_store %arg7[%c0_44, %c2432], %138 {strides = array<i32>} : memref<2x3200xbf16, #tpu.memory_space<vmem>>, vector<2x128xbf16>,
    %140 = vector.extract_strided_slice %58 {offsets = [80, 0], sizes = [2, 64], strides = [1, 1]} : vector<98x64xbf16> to vector<2x64xbf16>
    %141 = vector.extract_strided_slice %58 {offsets = [82, 0], sizes = [2, 64], strides = [1, 1]} : vector<98x64xbf16> to vector<2x64xbf16>
    %142 = tpu.concatenate %140, %141 in 1 : vector<2x64xbf16>, vector<2x64xbf16> -> vector<2x128xbf16>
    %c0_45 = arith.constant 0 : index
    %c2560 = arith.constant 2560 : index
    %143 = vector.load %arg7[%c0_45, %c2560] : memref<2x3200xbf16, #tpu.memory_space<vmem>>, vector<2x128xbf16>
    tpu.vector_store %arg7[%c0_45, %c2560], %142 {strides = array<i32>} : memref<2x3200xbf16, #tpu.memory_space<vmem>>, vector<2x128xbf16>,
    %144 = vector.extract_strided_slice %58 {offsets = [84, 0], sizes = [2, 64], strides = [1, 1]} : vector<98x64xbf16> to vector<2x64xbf16>
    %145 = vector.extract_strided_slice %58 {offsets = [86, 0], sizes = [2, 64], strides = [1, 1]} : vector<98x64xbf16> to vector<2x64xbf16>
    %146 = tpu.concatenate %144, %145 in 1 : vector<2x64xbf16>, vector<2x64xbf16> -> vector<2x128xbf16>
    %c0_46 = arith.constant 0 : index
    %c2688 = arith.constant 2688 : index
    %147 = vector.load %arg7[%c0_46, %c2688] : memref<2x3200xbf16, #tpu.memory_space<vmem>>, vector<2x128xbf16>
    tpu.vector_store %arg7[%c0_46, %c2688], %146 {strides = array<i32>} : memref<2x3200xbf16, #tpu.memory_space<vmem>>, vector<2x128xbf16>,
    %148 = vector.extract_strided_slice %58 {offsets = [88, 0], sizes = [2, 64], strides = [1, 1]} : vector<98x64xbf16> to vector<2x64xbf16>
    %149 = vector.extract_strided_slice %58 {offsets = [90, 0], sizes = [2, 64], strides = [1, 1]} : vector<98x64xbf16> to vector<2x64xbf16>
    %150 = tpu.concatenate %148, %149 in 1 : vector<2x64xbf16>, vector<2x64xbf16> -> vector<2x128xbf16>
    %c0_47 = arith.constant 0 : index
    %c2816 = arith.constant 2816 : index
    %151 = vector.load %arg7[%c0_47, %c2816] : memref<2x3200xbf16, #tpu.memory_space<vmem>>, vector<2x128xbf16>
    tpu.vector_store %arg7[%c0_47, %c2816], %150 {strides = array<i32>} : memref<2x3200xbf16, #tpu.memory_space<vmem>>, vector<2x128xbf16>,
    %152 = vector.extract_strided_slice %58 {offsets = [92, 0], sizes = [2, 64], strides = [1, 1]} : vector<98x64xbf16> to vector<2x64xbf16>
    %153 = vector.extract_strided_slice %58 {offsets = [94, 0], sizes = [2, 64], strides = [1, 1]} : vector<98x64xbf16> to vector<2x64xbf16>
    %154 = tpu.concatenate %152, %153 in 1 : vector<2x64xbf16>, vector<2x64xbf16> -> vector<2x128xbf16>
    %c0_48 = arith.constant 0 : index
    %c2944 = arith.constant 2944 : index
    %155 = vector.load %arg7[%c0_48, %c2944] : memref<2x3200xbf16, #tpu.memory_space<vmem>>, vector<2x128xbf16>
    tpu.vector_store %arg7[%c0_48, %c2944], %154 {strides = array<i32>} : memref<2x3200xbf16, #tpu.memory_space<vmem>>, vector<2x128xbf16>,
    %156 = vector.extract_strided_slice %58 {offsets = [96, 0], sizes = [2, 64], strides = [1, 1]} : vector<98x64xbf16> to vector<2x64xbf16>
    %157 = tpu.concatenate %156, %59 in 1 : vector<2x64xbf16>, vector<2x64xbf16> -> vector<2x128xbf16>
    %c0_49 = arith.constant 0 : index
    %c3072 = arith.constant 3072 : index
    %158 = vector.load %arg7[%c0_49, %c3072] : memref<2x3200xbf16, #tpu.memory_space<vmem>>, vector<2x128xbf16>
    tpu.vector_store %arg7[%c0_49, %c3072], %157 {strides = array<i32>} : memref<2x3200xbf16, #tpu.memory_space<vmem>>, vector<2x128xbf16>,
    tpu.wait_dma2 semaphore(%arg9 : memref<!tpu.dma_semaphore, #tpu.memory_space<semaphore_mem>>) src(%arg5 : memref<3200x128xbf16, #tpu.memory_space<any>>) dst(%arg8 : memref<3200x128xbf16, #tpu.memory_space<vmem>>)
    %c0_50 = arith.constant 0 : index
    %c0_51 = arith.constant 0 : index
    %159 = vector.load %arg7[%c0_50, %c0_51] : memref<2x3200xbf16, #tpu.memory_space<vmem>>, vector<2x3200xbf16>
    %160 = arith.extf %159 : vector<2x3200xbf16> to vector<2x3200xf32>
    %c0_52 = arith.constant 0 : index
    %c0_53 = arith.constant 0 : index
    %161 = vector.load %arg8[%c0_52, %c0_53] : memref<3200x128xbf16, #tpu.memory_space<vmem>>, vector<3200x128xbf16>
    %162 = arith.extf %161 : vector<3200x128xbf16> to vector<3200x128xf32>
    %cst_54 = arith.constant dense<0.000000e+00> : vector<2x128xf32>
    %163 = tpu.matmul %160, %162, %cst_54 {dimension_numbers = #tpu.dot_dimension_numbers<[1], [0], [0], [1], [0, 0, 1, 1], [], []>} : vector<2x3200xf32>, vector<3200x128xf32>, vector<2x128xf32> -> vector<2x128xf32>
    %c0_55 = arith.constant 0 : index
    %c0_56 = arith.constant 0 : index
    %164 = vector.load %arg4[%c0_55, %c0_56] : memref<1x128xf32, #tpu.memory_space<vmem>>, vector<1x128xf32>
    %165 = vector.broadcast %164 : vector<1x128xf32> to vector<2x128xf32>
    %166 = arith.addf %163, %165 : vector<2x128xf32>
    %c0_57 = arith.constant 0 : index
    %c0_58 = arith.constant 0 : index
    %167 = vector.load %arg6[%c0_57, %c0_58] : memref<2x128xf32, #tpu.memory_space<vmem>>, vector<2x128xf32>
    tpu.vector_store %arg6[%c0_57, %c0_58], %166 {strides = array<i32>} : memref<2x128xf32, #tpu.memory_space<vmem>>, vector<2x128xf32>,
    return
  }
}

</mosaic_0001>

<bundles_post_ra>
// kernel: resnet_visual_encoder.1
= control target key start
LH: loop header
LB: loop body
LE: loop exit
PB: predicated region body
PF: predicated region fallthrough
CT: control target
= control target key end

     0   :  { %s5902_s0 = inlined_call_operand.vmem [shape: bf16[98,512], index: 0, kind: input, shape index: {}]   ;;  %s5903_s1 = inlined_call_operand.vmem [shape: bf16[512,256], index: 1, kind: input, shape index: {}]   ;;  %s5904_s2 = inlined_call_operand.vmem [shape: bf16[256,64], index: 2, kind: input, shape index: {}]   ;;  %s5905_s3 = inlined_call_operand.vmem [shape: f32[4,256], index: 3, kind: input, shape index: {}]   ;;  %s5906_s4 = inlined_call_operand.vmem [shape: f32[1,128], index: 4, kind: input, shape index: {}]   ;;  %s5907_s5 = inlined_call_operand.hbm [shape: bf16[3200,128], index: 5, kind: input, shape index: {}]   ;;  %s5908_s6 = inlined_call_operand.hbm [shape: f32[2,128], index: 6, kind: output, shape index: {}]  }
   0x1   :  { %v132_v0 = vld [vmem:[%s5903_s1 + $0x78] sm:$0xff]  ;;  %v131_v2 = vld [vmem:[%s5903_s1 + $0x70] sm:$0xff]  ;;  %v130_v8 = vld [vmem:[%s5903_s1 + $0x68] sm:$0xff] }
   0x2   :  { %v164_v1 = vld [vmem:[%s5903_s1 + $0x178] sm:$0xff]  ;;  %v212_v3 = vunpack.c.h.bf16 %v132_v0  ;;  %v211_v5 = vunpack.c.l.bf16 %v132_v0  ;;  %v163_v7 = vld [vmem:[%s5903_s1 + $0x170] sm:$0xff]  ;;  %v162_v9 = vld [vmem:[%s5903_s1 + $0x168] sm:$0xff]  ;;  %v210_v10 = vunpack.c.h.bf16 %v131_v2  ;;  %v209_v12 = vunpack.c.l.bf16 %v131_v2 }
   0x3   :  { %v276_v4 = vunpack.c.h.bf16 %v164_v1  ;;  %v275_v6 = vunpack.c.l.bf16 %v164_v1  ;;  %v274_v11 = vunpack.c.h.bf16 %v163_v7  ;;  %v273_v13 = vunpack.c.l.bf16 %v163_v7  ;;  %v129_v14 = vld [vmem:[%s5903_s1 + $0x60] sm:$0xff]  ;;  %v128_v20 = vld [vmem:[%s5903_s1 + $0x58] sm:$0xff]  ;;  %v127_v26 = vld [vmem:[%s5903_s1 + $0x50] sm:$0xff] }
   0x4   :  { %v161_v15 = vld [vmem:[%s5903_s1 + $0x160] sm:$0xff]  ;;  %309 = vmatprep.subr.mxu0 %v212_v3  ;;  %v208_v16 = vunpack.c.h.bf16 %v130_v8  ;;  %v272_v17 = vunpack.c.h.bf16 %v162_v9  ;;  %v207_v18 = vunpack.c.l.bf16 %v130_v8  ;;  %v271_v19 = vunpack.c.l.bf16 %v162_v9  ;;  %v160_v21 = vld [vmem:[%s5903_s1 + $0x158] sm:$0xff]  ;;  %v159_v27 = vld [vmem:[%s5903_s1 + $0x150] sm:$0xff] }
   0x5   :  { %452 = vmatprep.subr.mxu1 %v276_v4  ;;  %310 = vmatpush1.msra.mxu0 %v211_v5  ;;  %v206_v22 = vunpack.c.h.bf16 %v129_v14  ;;  %v270_v23 = vunpack.c.h.bf16 %v161_v15  ;;  %v205_v24 = vunpack.c.l.bf16 %v129_v14  ;;  %v269_v25 = vunpack.c.l.bf16 %v161_v15  ;;  %v126_v32 = vld [vmem:[%s5903_s1 + $0x48] sm:$0xff]  ;;  %v125_v38 = vld [vmem:[%s5903_s1 + $0x40] sm:$0xff]  ;;  %v124_v44 = vld [vmem:[%s5903_s1 + $0x38] sm:$0xff] }
   0x6   :  { %453 = vmatpush1.msra.mxu1 %v275_v6  ;;  %311 = vmatprep.subr.mxu0 %v210_v10  ;;  %v204_v28 = vunpack.c.h.bf16 %v128_v20  ;;  %v268_v29 = vunpack.c.h.bf16 %v160_v21  ;;  %v203_v30 = vunpack.c.l.bf16 %v128_v20  ;;  %v267_v31 = vunpack.c.l.bf16 %v160_v21  ;;  %v158_v33 = vld [vmem:[%s5903_s1 + $0x148] sm:$0xff]  ;;  %v157_v39 = vld [vmem:[%s5903_s1 + $0x140] sm:$0xff]  ;;  %v156_v45 = vld [vmem:[%s5903_s1 + $0x138] sm:$0xff] }
   0x7   :  { %454 = vmatprep.subr.mxu1 %v274_v11  ;;  %312 = vmatpush1.msra.mxu0 %v209_v12  ;;  %v202_v34 = vunpack.c.h.bf16 %v127_v26  ;;  %v266_v35 = vunpack.c.h.bf16 %v159_v27  ;;  %v201_v36 = vunpack.c.l.bf16 %v127_v26  ;;  %v265_v37 = vunpack.c.l.bf16 %v159_v27  ;;  %v123_v50 = vld [vmem:[%s5903_s1 + $0x30] sm:$0xff]  ;;  %v122_v56 = vld [vmem:[%s5903_s1 + $0x28] sm:$0xff]  ;;  %v121_v62 = vld [vmem:[%s5903_s1 + $0x20] sm:$0xff] }
   0x8   :  { %455 = vmatpush1.msra.mxu1 %v273_v13  ;;  %313 = vmatprep.subr.mxu0 %v208_v16  ;;  %v200_v40 = vunpack.c.h.bf16 %v126_v32  ;;  %v264_v41 = vunpack.c.h.bf16 %v158_v33  ;;  %v199_v42 = vunpack.c.l.bf16 %v126_v32  ;;  %v263_v43 = vunpack.c.l.bf16 %v158_v33  ;;  %v155_v51 = vld [vmem:[%s5903_s1 + $0x130] sm:$0xff]  ;;  %v154_v57 = vld [vmem:[%s5903_s1 + $0x128] sm:$0xff]  ;;  %v153_v63 = vld [vmem:[%s5903_s1 + $0x120] sm:$0xff] }
   0x9   :  { %456 = vmatprep.subr.mxu1 %v272_v17  ;;  %314 = vmatpush1.msra.mxu0 %v207_v18  ;;  %v198_v46 = vunpack.c.h.bf16 %v125_v38  ;;  %v262_v47 = vunpack.c.h.bf16 %v157_v39  ;;  %v197_v48 = vunpack.c.l.bf16 %v125_v38  ;;  %v261_v49 = vunpack.c.l.bf16 %v157_v39  ;;  %v120_v4 = vld [vmem:[%s5903_s1 + $0x18] sm:$0xff]  ;;  %v119_v10 = vld [vmem:[%s5903_s1 + $0x10] sm:$0xff]  ;;  %v118_v16 = vld [vmem:[%s5903_s1 + $0x8] sm:$0xff] }
   0xa   :  { %457 = vmatpush1.msra.mxu1 %v271_v19  ;;  %315 = vmatprep.subr.mxu0 %v206_v22  ;;  %v196_v52 = vunpack.c.h.bf16 %v124_v44  ;;  %v260_v53 = vunpack.c.h.bf16 %v156_v45  ;;  %v195_v54 = vunpack.c.l.bf16 %v124_v44  ;;  %v259_v55 = vunpack.c.l.bf16 %v156_v45  ;;  %v152_v5 = vld [vmem:[%s5903_s1 + $0x118] sm:$0xff]  ;;  %v151_v11 = vld [vmem:[%s5903_s1 + $0x110] sm:$0xff]  ;;  %v150_v17 = vld [vmem:[%s5903_s1 + $0x108] sm:$0xff] }
   0xb   :  { %458 = vmatprep.subr.mxu1 %v270_v23  ;;  %316 = vmatpush1.msra.mxu0 %v205_v24  ;;  %v194_v58 = vunpack.c.h.bf16 %v123_v50  ;;  %v258_v59 = vunpack.c.h.bf16 %v155_v51  ;;  %v193_v60 = vunpack.c.l.bf16 %v123_v50  ;;  %v257_v61 = vunpack.c.l.bf16 %v155_v51  ;;  %v117_v22 = vld [vmem:[%s5903_s1] sm:$0xff] }
   0xc   :  { %459 = vmatpush1.msra.mxu1 %v269_v25  ;;  %317 = vmatprep.subr.mxu0 %v204_v28  ;;  %v192_v0 = vunpack.c.h.bf16 %v122_v56  ;;  %v256_v1 = vunpack.c.h.bf16 %v154_v57  ;;  %v191_v2 = vunpack.c.l.bf16 %v122_v56  ;;  %v255_v3 = vunpack.c.l.bf16 %v154_v57  ;;  %v149_v23 = vld [vmem:[%s5903_s1 + $0x100] sm:$0xff]  ;;  %v148_v28 = vld [vmem:[%s5903_s1 + $0xf8] sm:$0xff] }
   0xd   :  { %460 = vmatprep.subr.mxu1 %v268_v29  ;;  %318 = vmatpush1.msra.mxu0 %v203_v30  ;;  %v190_v6 = vunpack.c.h.bf16 %v121_v62  ;;  %v254_v7 = vunpack.c.h.bf16 %v153_v63  ;;  %v189_v8 = vunpack.c.l.bf16 %v121_v62  ;;  %v253_v9 = vunpack.c.l.bf16 %v153_v63  ;;  %v180_v29 = vld [vmem:[%s5903_s1 + $0x1f8] sm:$0xff] }
   0xe   :  { %461 = vmatpush1.msra.mxu1 %v267_v31  ;;  %319 = vmatprep.subr.mxu0 %v202_v34  ;;  %v188_v12 = vunpack.c.h.bf16 %v120_v4  ;;  %v252_v13 = vunpack.c.h.bf16 %v152_v5  ;;  %v187_v14 = vunpack.c.l.bf16 %v120_v4  ;;  %v251_v15 = vunpack.c.l.bf16 %v152_v5  ;;  %v147_v34 = vld [vmem:[%s5903_s1 + $0xf0] sm:$0xff] }
   0xf   :  { %462 = vmatprep.subr.mxu1 %v266_v35  ;;  %320 = vmatpush1.msra.mxu0 %v201_v36  ;;  %v186_v18 = vunpack.c.h.bf16 %v119_v10  ;;  %v250_v19 = vunpack.c.h.bf16 %v151_v11  ;;  %v185_v20 = vunpack.c.l.bf16 %v119_v10  ;;  %v249_v21 = vunpack.c.l.bf16 %v151_v11  ;;  %v179_v35 = vld [vmem:[%s5903_s1 + $0x1f0] sm:$0xff] }
  0x10   :  { %463 = vmatpush1.msra.mxu1 %v265_v37  ;;  %321 = vmatprep.subr.mxu0 %v200_v40  ;;  %v184_v24 = vunpack.c.h.bf16 %v118_v16  ;;  %v248_v25 = vunpack.c.h.bf16 %v150_v17  ;;  %v183_v26 = vunpack.c.l.bf16 %v118_v16  ;;  %v247_v27 = vunpack.c.l.bf16 %v150_v17 }
  0x11   :  { %464 = vmatprep.subr.mxu1 %v264_v41  ;;  %322 = vmatpush1.msra.mxu0 %v199_v42  ;;  %v182_v30 = vunpack.c.h.bf16 %v117_v22  ;;  %v246_v31 = vunpack.c.h.bf16 %v149_v23  ;;  %v181_v32 = vunpack.c.l.bf16 %v117_v22  ;;  %v245_v33 = vunpack.c.l.bf16 %v149_v23 }
  0x12   :  { %465 = vmatpush1.msra.mxu1 %v263_v43  ;;  %323 = vmatprep.subr.mxu0 %v198_v46 }
  0x13   :  { %466 = vmatprep.subr.mxu1 %v262_v47  ;;  %324 = vmatpush1.msra.mxu0 %v197_v48 }
  0x14   :  { %467 = vmatpush1.msra.mxu1 %v261_v49  ;;  %325 = vmatprep.subr.mxu0 %v196_v52 }
  0x15   :  { %468 = vmatprep.subr.mxu1 %v260_v53  ;;  %326 = vmatpush1.msra.mxu0 %v195_v54 }
  0x16   :  { %469 = vmatpush1.msra.mxu1 %v259_v55  ;;  %327 = vmatprep.subr.mxu0 %v194_v58 }
  0x17   :  { %470 = vmatprep.subr.mxu1 %v258_v59  ;;  %328 = vmatpush1.msra.mxu0 %v193_v60 }
  0x18   :  { %471 = vmatpush1.msra.mxu1 %v257_v61  ;;  %329 = vmatprep.subr.mxu0 %v192_v0 }
  0x19   :  { %472 = vmatprep.subr.mxu1 %v256_v1  ;;  %330 = vmatpush1.msra.mxu0 %v191_v2 }
  0x1a   :  { %473 = vmatpush1.msra.mxu1 %v255_v3  ;;  %331 = vmatprep.subr.mxu0 %v190_v6 }
  0x1b   :  { %474 = vmatprep.subr.mxu1 %v254_v7  ;;  %332 = vmatpush1.msra.mxu0 %v189_v8 }
  0x1c   :  { %475 = vmatpush1.msra.mxu1 %v253_v9  ;;  %333 = vmatprep.subr.mxu0 %v188_v12 }
  0x1d   :  { %476 = vmatprep.subr.mxu1 %v252_v13  ;;  %334 = vmatpush1.msra.mxu0 %v187_v14 }
  0x1e   :  { %477 = vmatpush1.msra.mxu1 %v251_v15  ;;  %335 = vmatprep.subr.mxu0 %v186_v18 }
  0x1f   :  { %478 = vmatprep.subr.mxu1 %v250_v19  ;;  %336 = vmatpush1.msra.mxu0 %v185_v20 }
  0x20   :  { %479 = vmatpush1.msra.mxu1 %v249_v21 }
  0x21   :  { %11 = vsyncpa [#allocation6], 0  ;;  %337 = vmatprep.subr.mxu0 %v184_v24  ;;  %480 = vmatprep.subr.mxu1 %v248_v25  ;;  %v244_v36 = vunpack.c.h.bf16 %v148_v28  ;;  %v308_v37 = vunpack.c.h.bf16 %v180_v29  ;;  %v243_v38 = vunpack.c.l.bf16 %v148_v28  ;;  %v307_v39 = vunpack.c.l.bf16 %v180_v29  ;;  %v146_v40 = vld [vmem:[%s5903_s1 + $0xe8] sm:$0xff]  ;;  %v145_v46 = vld [vmem:[%s5903_s1 + $0xe0] sm:$0xff]  ;;  %s5054_s18 = smov [#allocation3]  }
  0x22   :  { %338 = vmatpush1.msra.mxu0 %v183_v26  ;;  %481 = vmatpush1.msra.mxu1 %v247_v27  ;;  %v178_v41 = vld [vmem:[%s5903_s1 + $0x1e8] sm:$0xff]  ;;  %v242_v42 = vunpack.c.h.bf16 %v147_v34  ;;  %v306_v43 = vunpack.c.h.bf16 %v179_v35  ;;  %v241_v44 = vunpack.c.l.bf16 %v147_v34  ;;  %v305_v45 = vunpack.c.l.bf16 %v179_v35  ;;  %v177_v47 = vld [vmem:[%s5903_s1 + $0x1e0] sm:$0xff]  ;;  %v144_v52 = vld [vmem:[%s5903_s1 + $0xd8] sm:$0xff]  ;;  %s30_s19 = sshll.u32 %s5054_s18, 4  ;;  %s31_s19 = int_to_ptr.vmem [resolvable:$true] %s30_s19 }
  0x23   :  { %339 = vmatprep.subr.mxu0 %v182_v30  ;;  %482 = vmatprep.subr.mxu1 %v246_v31  ;;  %v240_v48 = vunpack.c.h.bf16 %v146_v40  ;;  %v304_v49 = vunpack.c.h.bf16 %v178_v41  ;;  %v239_v50 = vunpack.c.l.bf16 %v146_v40  ;;  %v303_v51 = vunpack.c.l.bf16 %v178_v41  ;;  %v176_v53 = vld [vmem:[%s5903_s1 + $0x1d8] sm:$0xff]  ;;  %v143_v58 = vld [vmem:[%s5903_s1 + $0xd0] sm:$0xff]  ;;  %v142_v0 = vld [vmem:[%s5903_s1 + $0xc8] sm:$0xff]  ;;  %s5016_s20 = scalar_lea.vmem %s31_s19, 25600  ;;  %p5021_p1 = scmp.lt.s32.totalorder %s31_s19, %s31_s19 }
  0x24   :  { %340 = vmatpush1.msra.mxu0 %v181_v32  ;;  %483 = vmatpush1.msra.mxu1 %v245_v33  ;;  %v238_v54 = vunpack.c.h.bf16 %v145_v46  ;;  %v302_v55 = vunpack.c.h.bf16 %v177_v47  ;;  %v237_v56 = vunpack.c.l.bf16 %v145_v46  ;;  %v301_v57 = vunpack.c.l.bf16 %v177_v47  ;;  %v175_v59 = vld [vmem:[%s5903_s1 + $0x1d0] sm:$0xff]  ;;  %v174_v1 = vld [vmem:[%s5903_s1 + $0x1c8] sm:$0xff]  ;;  %v141_v6 = vld [vmem:[%s5903_s1 + $0xc0] sm:$0xff]  ;;  %p5017_p0 = scmp.ne.s32.totalorder %s31_s19, %s5016_s20  ;;  %p5022_p2 = scmp.lt.s32.totalorder %s5016_s20, %s5016_s20 }
  0x25   :  { %341 = vmatprep.subr.mxu0 %v244_v36  ;;  %484 = vmatprep.subr.mxu1 %v308_v37  ;;  %v236_v60 = vunpack.c.h.bf16 %v144_v52  ;;  %v300_v61 = vunpack.c.h.bf16 %v176_v53  ;;  %v235_v62 = vunpack.c.l.bf16 %v144_v52  ;;  %v299_v63 = vunpack.c.l.bf16 %v176_v53  ;;  %v173_v7 = vld [vmem:[%s5903_s1 + $0x1c0] sm:$0xff]  ;;  %v140_v12 = vld [vmem:[%s5903_s1 + $0xb8] sm:$0xff]  ;;  %v139_v18 = vld [vmem:[%s5903_s1 + $0xb0] sm:$0xff] }
  0x26   :  { %342 = vmatpush2.msra.mxu0 %v243_v38  ;;  %485 = vmatpush2.msra.mxu1 %v307_v39  ;;  %v234_v2 = vunpack.c.h.bf16 %v143_v58  ;;  %v298_v3 = vunpack.c.h.bf16 %v175_v59  ;;  %v233_v4 = vunpack.c.l.bf16 %v143_v58  ;;  %v297_v5 = vunpack.c.l.bf16 %v175_v59  ;;  %v172_v13 = vld [vmem:[%s5903_s1 + $0x1b8] sm:$0xff]  ;;  %v171_v19 = vld [vmem:[%s5903_s1 + $0x1b0] sm:$0xff]  ;;  %v138_v24 = vld [vmem:[%s5903_s1 + $0xa8] sm:$0xff]  ;;  %p5023_p3 = por %p5022_p2, %p5021_p1 }
  0x27   :  { %343 = vmatprep.subr.mxu0 %v242_v42  ;;  %486 = vmatprep.subr.mxu1 %v306_v43  ;;  %v232_v8 = vunpack.c.h.bf16 %v142_v0  ;;  %v296_v9 = vunpack.c.h.bf16 %v174_v1  ;;  %v231_v10 = vunpack.c.l.bf16 %v142_v0  ;;  %v295_v11 = vunpack.c.l.bf16 %v174_v1  ;;  %v170_v25 = vld [vmem:[%s5903_s1 + $0x1a8] sm:$0xff]  ;;  %v137_v30 = vld [vmem:[%s5903_s1 + $0xa0] sm:$0xff]  ;;  %v136_v36 = vld [vmem:[%s5903_s1 + $0x98] sm:$0xff] }
  0x28   :  { %344 = vmatpush2.msra.mxu0 %v241_v44  ;;  %487 = vmatpush2.msra.mxu1 %v305_v45  ;;  %v230_v14 = vunpack.c.h.bf16 %v141_v6  ;;  %v294_v15 = vunpack.c.h.bf16 %v173_v7  ;;  %v229_v16 = vunpack.c.l.bf16 %v141_v6  ;;  %v293_v17 = vunpack.c.l.bf16 %v173_v7  ;;  %v169_v31 = vld [vmem:[%s5903_s1 + $0x1a0] sm:$0xff]  ;;  %v168_v37 = vld [vmem:[%s5903_s1 + $0x198] sm:$0xff]  ;;  %v135_v42 = vld [vmem:[%s5903_s1 + $0x90] sm:$0xff]  ;;  %p5024_p4 = pnand %p5023_p3, %p5017_p0 }
  0x29   :  { %345 = vmatprep.subr.mxu0 %v240_v48  ;;  %488 = vmatprep.subr.mxu1 %v304_v49  ;;  %v228_v20 = vunpack.c.h.bf16 %v140_v12  ;;  %v292_v21 = vunpack.c.h.bf16 %v172_v13  ;;  %v227_v22 = vunpack.c.l.bf16 %v140_v12  ;;  %v291_v23 = vunpack.c.l.bf16 %v172_v13  ;;  %v167_v43 = vld [vmem:[%s5903_s1 + $0x190] sm:$0xff]  ;;  %v134_v48 = vld [vmem:[%s5903_s1 + $0x88] sm:$0xff]  ;;  %v39_v58 = vld [vmem:[%s5902_s0] sm:$0xff] }
  0x2a   :  { %346 = vmatpush2.msra.mxu0 %v239_v50  ;;  %489 = vmatpush2.msra.mxu1 %v303_v51  ;;  %v226_v26 = vunpack.c.h.bf16 %v139_v18  ;;  %v290_v27 = vunpack.c.h.bf16 %v171_v19  ;;  %v225_v28 = vunpack.c.l.bf16 %v139_v18  ;;  %v289_v29 = vunpack.c.l.bf16 %v171_v19  ;;  %v166_v49 = vld [vmem:[%s5903_s1 + $0x188] sm:$0xff] }
  0x2b   :  { %347 = vmatprep.subr.mxu0 %v238_v54  ;;  %490 = vmatprep.subr.mxu1 %v302_v55  ;;  %v224_v32 = vunpack.c.h.bf16 %v138_v24  ;;  %v288_v33 = vunpack.c.h.bf16 %v170_v25  ;;  %v223_v34 = vunpack.c.l.bf16 %v138_v24  ;;  %v287_v35 = vunpack.c.l.bf16 %v170_v25  ;;  %v133_v54 = vld [vmem:[%s5903_s1 + $0x80] sm:$0xff] }
  0x2c   :  { %348 = vmatpush2.msra.mxu0 %v237_v56  ;;  %491 = vmatpush2.msra.mxu1 %v301_v57  ;;  %v222_v38 = vunpack.c.h.bf16 %v137_v30  ;;  %v286_v39 = vunpack.c.h.bf16 %v169_v31  ;;  %v221_v40 = vunpack.c.l.bf16 %v137_v30  ;;  %v285_v41 = vunpack.c.l.bf16 %v169_v31  ;;  %v165_v55 = vld [vmem:[%s5903_s1 + $0x180] sm:$0xff] }
  0x2d   :  { %349 = vmatprep.subr.mxu0 %v236_v60  ;;  %492 = vmatprep.subr.mxu1 %v300_v61  ;;  %v220_v44 = vunpack.c.h.bf16 %v136_v36  ;;  %v284_v45 = vunpack.c.h.bf16 %v168_v37  ;;  %v219_v46 = vunpack.c.l.bf16 %v136_v36  ;;  %v283_v47 = vunpack.c.l.bf16 %v168_v37  ;;  %v40_v61 = vld [vmem:[%s5902_s0 + $0x8] sm:$0xff] }
  0x2e   :  { %350 = vmatpush2.msra.mxu0 %v235_v62  ;;  %493 = vmatpush2.msra.mxu1 %v299_v63  ;;  %v218_v50 = vunpack.c.h.bf16 %v135_v42  ;;  %v282_v51 = vunpack.c.h.bf16 %v167_v43  ;;  %v217_v52 = vunpack.c.l.bf16 %v135_v42  ;;  %v281_v53 = vunpack.c.l.bf16 %v167_v43 }
  0x2f   :  { %351 = vmatprep.subr.mxu0 %v234_v2  ;;  %494 = vmatprep.subr.mxu1 %v298_v3  ;;  %v216_v56 = vunpack.c.h.bf16 %v134_v48  ;;  %v280_v57 = vunpack.c.h.bf16 %v166_v49  ;;  %v215_v59 = vunpack.c.l.bf16 %v134_v48  ;;  %v279_v60 = vunpack.c.l.bf16 %v166_v49  ;;  %v41_v2 = vld [vmem:[%s5902_s0 + $0x10] sm:$0xff]  ;;  %v42_v3 = vld [vmem:[%s5902_s0 + $0x18] sm:$0xff] }
  0x30   :  { %352 = vmatpush2.msra.mxu0 %v233_v4  ;;  %495 = vmatpush2.msra.mxu1 %v297_v5  ;;  %v214_v62 = vunpack.c.h.bf16 %v133_v54  ;;  %v278_v63 = vunpack.c.h.bf16 %v165_v55  ;;  %v213_v0 = vunpack.c.l.bf16 %v133_v54  ;;  %v66_v1 = vunpack.c.h.bf16 %v39_v58 }
  0x31   :  { %353 = vmatprep.subr.mxu0 %v232_v8  ;;  %496 = vmatprep.subr.mxu1 %v296_v9  ;;  %v277_v4 = vunpack.c.l.bf16 %v165_v55  ;;  %v68_v5 = vunpack.c.h.bf16 %v40_v61  ;;  %v65_v6 = vunpack.c.l.bf16 %v39_v58  ;;  %v67_v7 = vunpack.c.l.bf16 %v40_v61  ;;  %v59_v58 = vld [vmem:[%s5902_s0 + $0xa0] sm:$0xff] }
  0x32   :  { %354 = vmatpush2.msra.mxu0 %v231_v10  ;;  %497 = vmatpush2.msra.mxu1 %v295_v11  ;;  %v70_v8 = vunpack.c.h.bf16 %v41_v2  ;;  %v72_v9 = vunpack.c.h.bf16 %v42_v3  ;;  %v43_v10 = vld [vmem:[%s5902_s0 + $0x20] sm:$0xff]  ;;  %v44_v11 = vld [vmem:[%s5902_s0 + $0x28] sm:$0xff]  ;;  %v69_v12 = vunpack.c.l.bf16 %v41_v2  ;;  %v71_v13 = vunpack.c.l.bf16 %v42_v3 }
  0x33   :  { %355 = vmatprep.subr.mxu0 %v230_v14  ;;  %498 = vmatprep.subr.mxu1 %v294_v15  ;;  %v74_v14 = vunpack.c.h.bf16 %v43_v10  ;;  %v76_v15 = vunpack.c.h.bf16 %v44_v11  ;;  %v73_v18 = vunpack.c.l.bf16 %v43_v10  ;;  %v75_v19 = vunpack.c.l.bf16 %v44_v11 }
  0x34   :  { %356 = vmatpush2.msra.mxu0 %v229_v16  ;;  %499 = vmatpush2.msra.mxu1 %v293_v17  ;;  %v45_v16 = vld [vmem:[%s5902_s0 + $0x30] sm:$0xff]  ;;  %v46_v17 = vld [vmem:[%s5902_s0 + $0x38] sm:$0xff]  ;;  %v105_v2 = vunpack.c.l.bf16 %v59_v58  ;;  %vm606_vm0 = vcmask 1041408   ;;  %vm1044_vm1 = vcmask 523264   ;;  %vm1068_vm2 = vcmask 517120  }
  0x35   :  { %357 = vmatprep.subr.mxu0 %v228_v20  ;;  %500 = vmatprep.subr.mxu1 %v292_v21  ;;  %v78_v20 = vunpack.c.h.bf16 %v45_v16  ;;  %v80_v21 = vunpack.c.h.bf16 %v46_v17  ;;  %v77_v24 = vunpack.c.l.bf16 %v45_v16  ;;  %v79_v25 = vunpack.c.l.bf16 %v46_v17  ;;  %v4244_v16 = vld [vmem:[%s5904_s2 + $0x38] sm:$0xff]  }
  0x36   :  { %358 = vmatpush2.msra.mxu0 %v227_v22  ;;  %501 = vmatpush2.msra.mxu1 %v291_v23  ;;  %v47_v22 = vld [vmem:[%s5902_s0 + $0x40] sm:$0xff]  ;;  %v48_v23 = vld [vmem:[%s5902_s0 + $0x48] sm:$0xff]  ;;  %v3405_v17 = vunpack.c.h.bf16 %v4244_v16 }
  0x37   :  { %359 = vmatprep.subr.mxu0 %v226_v26  ;;  %502 = vmatprep.subr.mxu1 %v290_v27  ;;  %v82_v26 = vunpack.c.h.bf16 %v47_v22  ;;  %v84_v27 = vunpack.c.h.bf16 %v48_v23  ;;  %v81_v30 = vunpack.c.l.bf16 %v47_v22  ;;  %v83_v31 = vunpack.c.l.bf16 %v48_v23  ;;  %v4243_v22 = vld [vmem:[%s5904_s2 + $0x30] sm:$0xff]  }
  0x38   :  { %360 = vmatpush2.msra.mxu0 %v225_v28  ;;  %503 = vmatpush2.msra.mxu1 %v289_v29  ;;  %v49_v28 = vld [vmem:[%s5902_s0 + $0x50] sm:$0xff]  ;;  %v50_v29 = vld [vmem:[%s5902_s0 + $0x58] sm:$0xff]  ;;  %v3401_v23 = vunpack.c.h.bf16 %v4243_v22 }
  0x39   :  { %361 = vmatprep.subr.mxu0 %v224_v32  ;;  %504 = vmatprep.subr.mxu1 %v288_v33  ;;  %v86_v32 = vunpack.c.h.bf16 %v49_v28  ;;  %v88_v33 = vunpack.c.h.bf16 %v50_v29  ;;  %v85_v36 = vunpack.c.l.bf16 %v49_v28  ;;  %v87_v37 = vunpack.c.l.bf16 %v50_v29  ;;  %v4242_v28 = vld [vmem:[%s5904_s2 + $0x28] sm:$0xff]  }
  0x3a   :  { %362 = vmatpush2.msra.mxu0 %v223_v34  ;;  %505 = vmatpush2.msra.mxu1 %v287_v35  ;;  %v51_v34 = vld [vmem:[%s5902_s0 + $0x60] sm:$0xff]  ;;  %v52_v35 = vld [vmem:[%s5902_s0 + $0x68] sm:$0xff]  ;;  %v3397_v29 = vunpack.c.h.bf16 %v4242_v28 }
  0x3b   :  { %363 = vmatprep.subr.mxu0 %v222_v38  ;;  %506 = vmatprep.subr.mxu1 %v286_v39  ;;  %v90_v38 = vunpack.c.h.bf16 %v51_v34  ;;  %v92_v39 = vunpack.c.h.bf16 %v52_v35  ;;  %v89_v42 = vunpack.c.l.bf16 %v51_v34  ;;  %v91_v43 = vunpack.c.l.bf16 %v52_v35  ;;  %v4241_v34 = vld [vmem:[%s5904_s2 + $0x20] sm:$0xff]  }
  0x3c   :  { %364 = vmatpush2.msra.mxu0 %v221_v40  ;;  %507 = vmatpush2.msra.mxu1 %v285_v41  ;;  %v53_v40 = vld [vmem:[%s5902_s0 + $0x70] sm:$0xff]  ;;  %v54_v41 = vld [vmem:[%s5902_s0 + $0x78] sm:$0xff]  ;;  %v3393_v35 = vunpack.c.h.bf16 %v4241_v34 }
  0x3d   :  { %365 = vmatprep.subr.mxu0 %v220_v44  ;;  %508 = vmatprep.subr.mxu1 %v284_v45  ;;  %v94_v44 = vunpack.c.h.bf16 %v53_v40  ;;  %v96_v45 = vunpack.c.h.bf16 %v54_v41  ;;  %v93_v48 = vunpack.c.l.bf16 %v53_v40  ;;  %v95_v49 = vunpack.c.l.bf16 %v54_v41  ;;  %v4240_v40 = vld [vmem:[%s5904_s2 + $0x18] sm:$0xff]  }
  0x3e   :  { %366 = vmatpush2.msra.mxu0 %v219_v46  ;;  %509 = vmatpush2.msra.mxu1 %v283_v47  ;;  %v55_v46 = vld [vmem:[%s5902_s0 + $0x80] sm:$0xff]  ;;  %v56_v47 = vld [vmem:[%s5902_s0 + $0x88] sm:$0xff]  ;;  %v3389_v41 = vunpack.c.h.bf16 %v4240_v40 }
  0x3f   :  { %367 = vmatprep.subr.mxu0 %v218_v50  ;;  %510 = vmatprep.subr.mxu1 %v282_v51  ;;  %v98_v50 = vunpack.c.h.bf16 %v55_v46  ;;  %v100_v51 = vunpack.c.h.bf16 %v56_v47  ;;  %v97_v54 = vunpack.c.l.bf16 %v55_v46  ;;  %v99_v55 = vunpack.c.l.bf16 %v56_v47  ;;  %v4239_v46 = vld [vmem:[%s5904_s2 + $0x10] sm:$0xff]  }
  0x40   :  { %368 = vmatpush2.msra.mxu0 %v217_v52  ;;  %511 = vmatpush2.msra.mxu1 %v281_v53  ;;  %v57_v52 = vld [vmem:[%s5902_s0 + $0x90] sm:$0xff]  ;;  %v58_v53 = vld [vmem:[%s5902_s0 + $0x98] sm:$0xff]  ;;  %v3385_v47 = vunpack.c.h.bf16 %v4239_v46 }
  0x41   :  { %369 = vmatprep.subr.mxu0 %v216_v56  ;;  %512 = vmatprep.subr.mxu1 %v280_v57  ;;  %v102_v56 = vunpack.c.h.bf16 %v57_v52  ;;  %v104_v57 = vunpack.c.h.bf16 %v58_v53  ;;  %v103_v61 = vunpack.c.l.bf16 %v58_v53 }
  0x42   :  { %370 = vmatpush2.msra.mxu0 %v215_v59  ;;  %513 = vmatpush2.msra.mxu1 %v279_v60  ;;  %v60_v59 = vld [vmem:[%s5902_s0 + $0xa8] sm:$0xff]  ;;  %v101_v60 = vunpack.c.l.bf16 %v57_v52 }
  0x43   :  { %371 = vmatprep.subr.mxu0 %v214_v62  ;;  %514 = vmatprep.subr.mxu1 %v278_v63  ;;  %v106_v62 = vunpack.c.h.bf16 %v59_v58  ;;  %v108_v63 = vunpack.c.h.bf16 %v60_v59  ;;  %v107_v3 = vunpack.c.l.bf16 %v60_v59  ;;  %v4238_v52 = vld [vmem:[%s5904_s2 + $0x8] sm:$0xff]  }
  0x44   :  { %372 = vmatpush2.msra.mxu0 %v213_v0  ;;  %373 = vmatprep.mubr.f32.mxu0 %v66_v1  ;;  %v61_v0 = vld [vmem:[%s5902_s0 + $0xb0] sm:$0xff]  ;;  %v62_v1 = vld [vmem:[%s5902_s0 + $0xb8] sm:$0xff]  ;;  %v3381_v53 = vunpack.c.h.bf16 %v4238_v52 }
  0x45   :  { %515 = vmatpush2.msra.mxu1 %v277_v4  ;;  %516 = vmatprep.mubr.f32.mxu1 %v68_v5  ;;  %v110_v4 = vunpack.c.h.bf16 %v61_v0  ;;  %v112_v5 = vunpack.c.h.bf16 %v62_v1 }
  0x46   :  { %374 = vmatmul.mubr.f32.vlgmr.msra.gmra.mxu0 %v65_v6  ;;  %517 = vmatmul.mubr.f32.vlgmr.msra.gmra.mxu1 %v67_v7  ;;  %v63_v6 = vld [vmem:[%s5902_s0 + $0xc0] sm:$0x11]  ;;  %v64_v7 = vld [vmem:[%s5902_s0 + $0xc8] sm:$0x11] }
  0x47   :  { %379 = vmatprep.mubr.f32.mxu0 %v70_v8  ;;  %522 = vmatprep.mubr.f32.mxu1 %v72_v9  ;;  %v109_v8 = vunpack.c.l.bf16 %v61_v0  ;;  %v111_v9 = vunpack.c.l.bf16 %v62_v1  ;;  %v114_v10 = vunpack.c.h.bf16 %v63_v6  ;;  %v116_v11 = vunpack.c.h.bf16 %v64_v7 }
  0x4a   :  { %380 = vmatmul.mubr.f32.gmra.mxu0 %v69_v12  ;;  %523 = vmatmul.mubr.f32.gmra.mxu1 %v71_v13  ;;  %v113_v12 = vunpack.c.l.bf16 %v63_v6  ;;  %v115_v13 = vunpack.c.l.bf16 %v64_v7 }
  0x4b   :  { %385 = vmatprep.mubr.f32.mxu0 %v74_v14  ;;  %528 = vmatprep.mubr.f32.mxu1 %v76_v15  ;;  %v4252_v14 = vld [vmem:[%s5904_s2 + $0x78] sm:$0xff]  }
  0x4c   :  { %v3437_v15 = vunpack.c.h.bf16 %v4252_v14 }
  0x4e   :  { %386 = vmatmul.mubr.f32.gmra.mxu0 %v73_v18  ;;  %529 = vmatmul.mubr.f32.gmra.mxu1 %v75_v19  ;;  %v3436_v18 = vunpack.c.l.bf16 %v4252_v14  ;;  %v3404_v19 = vunpack.c.l.bf16 %v4244_v16 }
  0x4f   :  { %391 = vmatprep.mubr.f32.mxu0 %v78_v20  ;;  %534 = vmatprep.mubr.f32.mxu1 %v80_v21  ;;  %v4251_v20 = vld [vmem:[%s5904_s2 + $0x70] sm:$0xff]  }
  0x50   :  { %4452 = vmatprep.subr.mxu0 %v3437_v15  ;;  %v3433_v21 = vunpack.c.h.bf16 %v4251_v20 }
  0x51   :  { %4453 = vmatpush3.msra.mxu0 %v3405_v17 }
  0x52   :  { %392 = vmatmul.mubr.f32.gmra.mxu0 %v77_v24  ;;  %535 = vmatmul.mubr.f32.gmra.mxu1 %v79_v25  ;;  %v3432_v24 = vunpack.c.l.bf16 %v4251_v20  ;;  %v3400_v25 = vunpack.c.l.bf16 %v4243_v22 }
  0x53   :  { %397 = vmatprep.mubr.f32.mxu0 %v82_v26  ;;  %540 = vmatprep.mubr.f32.mxu1 %v84_v27  ;;  %v4250_v26 = vld [vmem:[%s5904_s2 + $0x68] sm:$0xff]  }
  0x54   :  { %4454 = vmatprep.subr.mxu0 %v3436_v18  ;;  %v3429_v27 = vunpack.c.h.bf16 %v4250_v26 }
  0x55   :  { %4455 = vmatpush3.msra.mxu0 %v3404_v19 }
  0x56   :  { %398 = vmatmul.mubr.f32.gmra.mxu0 %v81_v30  ;;  %541 = vmatmul.mubr.f32.gmra.mxu1 %v83_v31  ;;  %v3428_v30 = vunpack.c.l.bf16 %v4250_v26  ;;  %v3396_v31 = vunpack.c.l.bf16 %v4242_v28 }
  0x57   :  { %403 = vmatprep.mubr.f32.mxu0 %v86_v32  ;;  %546 = vmatprep.mubr.f32.mxu1 %v88_v33  ;;  %v4249_v32 = vld [vmem:[%s5904_s2 + $0x60] sm:$0xff]  }
  0x58   :  { %4456 = vmatprep.subr.mxu0 %v3433_v21  ;;  %v3425_v33 = vunpack.c.h.bf16 %v4249_v32 }
  0x59   :  { %4457 = vmatpush3.msra.mxu0 %v3401_v23 }
  0x5a   :  { %404 = vmatmul.mubr.f32.gmra.mxu0 %v85_v36  ;;  %547 = vmatmul.mubr.f32.gmra.mxu1 %v87_v37  ;;  %v3424_v36 = vunpack.c.l.bf16 %v4249_v32  ;;  %v3392_v37 = vunpack.c.l.bf16 %v4241_v34 }
  0x5b   :  { %409 = vmatprep.mubr.f32.mxu0 %v90_v38  ;;  %552 = vmatprep.mubr.f32.mxu1 %v92_v39  ;;  %v4248_v38 = vld [vmem:[%s5904_s2 + $0x58] sm:$0xff]  }
  0x5c   :  { %4458 = vmatprep.subr.mxu0 %v3432_v24  ;;  %v3421_v39 = vunpack.c.h.bf16 %v4248_v38 }
  0x5d   :  { %4459 = vmatpush3.msra.mxu0 %v3400_v25 }
  0x5e   :  { %410 = vmatmul.mubr.f32.gmra.mxu0 %v89_v42  ;;  %553 = vmatmul.mubr.f32.gmra.mxu1 %v91_v43  ;;  %v3420_v42 = vunpack.c.l.bf16 %v4248_v38  ;;  %v3388_v43 = vunpack.c.l.bf16 %v4240_v40 }
  0x5f   :  { %415 = vmatprep.mubr.f32.mxu0 %v94_v44  ;;  %558 = vmatprep.mubr.f32.mxu1 %v96_v45  ;;  %v4247_v44 = vld [vmem:[%s5904_s2 + $0x50] sm:$0xff]  }
  0x60   :  { %4460 = vmatprep.subr.mxu0 %v3429_v27  ;;  %v3417_v45 = vunpack.c.h.bf16 %v4247_v44 }
  0x61   :  { %4461 = vmatpush3.msra.mxu0 %v3397_v29 }
  0x62   :  { %416 = vmatmul.mubr.f32.gmra.mxu0 %v93_v48  ;;  %559 = vmatmul.mubr.f32.gmra.mxu1 %v95_v49  ;;  %v3416_v48 = vunpack.c.l.bf16 %v4247_v44  ;;  %v3384_v49 = vunpack.c.l.bf16 %v4239_v46 }
  0x63   :  { %421 = vmatprep.mubr.f32.mxu0 %v98_v50  ;;  %564 = vmatprep.mubr.f32.mxu1 %v100_v51  ;;  %v4246_v50 = vld [vmem:[%s5904_s2 + $0x48] sm:$0xff]  }
  0x64   :  { %4462 = vmatprep.subr.mxu0 %v3428_v30  ;;  %v3413_v51 = vunpack.c.h.bf16 %v4246_v50 }
  0x65   :  { %4463 = vmatpush3.msra.mxu0 %v3396_v31 }
  0x66   :  { %422 = vmatmul.mubr.f32.gmra.mxu0 %v97_v54  ;;  %565 = vmatmul.mubr.f32.gmra.mxu1 %v99_v55  ;;  %v3412_v54 = vunpack.c.l.bf16 %v4246_v50  ;;  %v3380_v55 = vunpack.c.l.bf16 %v4238_v52 }
  0x67   :  { %427 = vmatprep.mubr.f32.mxu0 %v102_v56  ;;  %570 = vmatprep.mubr.f32.mxu1 %v104_v57  ;;  %v4245_v56 = vld [vmem:[%s5904_s2 + $0x40] sm:$0xff]  }
  0x68   :  { %4464 = vmatprep.subr.mxu0 %v3425_v33  ;;  %v3375_v57 = vld [vmem:[%s5904_s2] sm:$0xff]   ;;  %v3409_v58 = vunpack.c.h.bf16 %v4245_v56 }
  0x69   :  { %4465 = vmatpush3.msra.mxu0 %v3393_v35  ;;  %v3377_v59 = vunpack.c.h.bf16 %v3375_v57 }
  0x6a   :  { %428 = vmatmul.mubr.f32.gmra.mxu0 %v101_v60  ;;  %571 = vmatmul.mubr.f32.gmra.mxu1 %v103_v61  ;;  %v3408_v60 = vunpack.c.l.bf16 %v4245_v56  ;;  %v3376_v61 = vunpack.c.l.bf16 %v3375_v57 }
  0x6b   :  { %433 = vmatprep.mubr.f32.mxu0 %v106_v62  ;;  %576 = vmatprep.mubr.f32.mxu1 %v108_v63 }
  0x6c   :  { %4466 = vmatprep.subr.mxu0 %v3424_v36 }
  0x6d   :  { %4467 = vmatpush3.msra.mxu0 %v3392_v37 }
  0x6e   :  { %434 = vmatmul.mubr.f32.gmra.mxu0 %v105_v2  ;;  %577 = vmatmul.mubr.f32.gmra.mxu1 %v107_v3 }
  0x6f   :  { %439 = vmatprep.mubr.f32.mxu0 %v110_v4  ;;  %582 = vmatprep.mubr.f32.mxu1 %v112_v5 }
  0x70   :  { %4468 = vmatprep.subr.mxu0 %v3421_v39 }
  0x71   :  { %4469 = vmatpush3.msra.mxu0 %v3389_v41 }
  0x72   :  { %440 = vmatmul.mubr.f32.gmra.mxu0 %v109_v8  ;;  %583 = vmatmul.mubr.f32.gmra.mxu1 %v111_v9 }
  0x73   :  { %445 = vmatprep.mubr.f32.mxu0 %v114_v10  ;;  %588 = vmatprep.mubr.f32.mxu1 %v116_v11 }
  0x74   :  { %4470 = vmatprep.subr.mxu0 %v3420_v42 }
  0x75   :  { %4471 = vmatpush3.msra.mxu0 %v3388_v43 }
  0x76   :  { %446 = vmatmul.mubr.f32.gmra.mxu0 %v113_v12  ;;  %589 = vmatmul.mubr.f32.gmra.mxu1 %v115_v13 }
  0x77   :  { %4472 = vmatprep.subr.mxu0 %v3417_v45 }
  0x78   :  { %4473 = vmatpush3.msra.mxu0 %v3385_v47 }
  0x79   :  { %4474 = vmatprep.subr.mxu0 %v3416_v48 }
  0x7a   :  { %4475 = vmatpush3.msra.mxu0 %v3384_v49 }
  0x7b   :  { %4476 = vmatprep.subr.mxu0 %v3413_v51 }
  0x7c   :  { %4477 = vmatpush3.msra.mxu0 %v3381_v53 }
  0x7d   :  { %4478 = vmatprep.subr.mxu0 %v3412_v54 }
  0x7e   :  { %4479 = vmatpush3.msra.mxu0 %v3380_v55 }
  0x7f   :  { %4480 = vmatprep.subr.mxu0 %v3409_v58 }
  0x80   :  { %4481 = vmatpush3.msra.mxu0 %v3377_v59 }
  0x81   :  { %4482 = vmatprep.subr.mxu0 %v3408_v60 }
  0x82   :  { %4483 = vmatpush3.msra.mxu0 %v3376_v61 }
 0x106   :  { %v375_v62 = vpop.f32.mrf.mxu0  ;;  %v518_v63 = vpop.f32.mrf.mxu1 }
 0x107   :  { %v5416_v24 = vadd.f32 %v518_v63, %v375_v62 }
 0x108   :  { %v377_v0 = vpop.f32.mrf.mxu0  ;;  %v520_v1 = vpop.f32.mrf.mxu1 }
 0x109   :  { %v5420_v28 = vadd.f32 %v520_v1, %v377_v0  ;;  %v636_v35 = vmul.f32 %v5416_v24, %v5416_v24 }
 0x10a   :  { %v381_v2 = vpop.f32.mrf.mxu0  ;;  %v524_v3 = vpop.f32.mrf.mxu1 }
 0x10b   :  { %v5412_v20 = vadd.f32 %v524_v3, %v381_v2  ;;  %v637_v41 = vmul.f32 %v5420_v28, %v5420_v28 }
 0x10c   :  { %v383_v4 = vpop.f32.mrf.mxu0  ;;  %v526_v5 = vpop.f32.mrf.mxu1 }
 0x10d   :  { %v5414_v23 = vadd.f32 %v526_v5, %v383_v4  ;;  %v638_v30 = vmul.f32 %v5412_v20, %v5412_v20  ;;  %v595_v42 = vadd.f32 %v5412_v20, %v5416_v24 }
 0x10e   :  { %v387_v6 = vpop.f32.mrf.mxu0  ;;  %v530_v7 = vpop.f32.mrf.mxu1 }
 0x10f   :  { %v5418_v25 = vadd.f32 %v530_v7, %v387_v6  ;;  %v639_v34 = vmul.f32 %v5414_v23, %v5414_v23  ;;  %v662_v44 = vadd.f32 %v638_v30, %v636_v35  ;;  %v615_v50 = vadd.f32 %v5414_v23, %v5420_v28 }
 0x110   :  { %v389_v8 = vpop.f32.mrf.mxu0  ;;  %v532_v9 = vpop.f32.mrf.mxu1 }
 0x111   :  { %v5422_v29 = vadd.f32 %v532_v9, %v389_v8  ;;  %v640_v36 = vmul.f32 %v5418_v25, %v5418_v25  ;;  %v681_v51 = vadd.f32 %v639_v34, %v637_v41  ;;  %v596_v52 = vadd.f32 %v595_v42, %v5418_v25 }
 0x112   :  { %v393_v10 = vpop.f32.mrf.mxu0  ;;  %v536_v11 = vpop.f32.mrf.mxu1 }
 0x113   :  { %v5426_v31 = vadd.f32 %v536_v11, %v393_v10  ;;  %v641_v43 = vmul.f32 %v5422_v29, %v5422_v29  ;;  %v663_v53 = vadd.f32 %v662_v44, %v640_v36  ;;  %v616_v59 = vadd.f32 %v615_v50, %v5422_v29 }
 0x114   :  { %v395_v12 = vpop.f32.mrf.mxu0  ;;  %v538_v13 = vpop.f32.mrf.mxu1 }
 0x115   :  { %v5434_v37 = vadd.f32 %v538_v13, %v395_v12  ;;  %v642_v45 = vmul.f32 %v5426_v31, %v5426_v31  ;;  %v682_v60 = vadd.f32 %v681_v51, %v641_v43  ;;  %v597_v62 = vadd.f32 %v596_v52, %v5426_v31 }
 0x116   :  { %v399_v14 = vpop.f32.mrf.mxu0  ;;  %v542_v15 = vpop.f32.mrf.mxu1 }
 0x117   :  { %v5436_v38 = vadd.f32 %v542_v15, %v399_v14  ;;  %v643_v54 = vmul.f32 %v5434_v37, %v5434_v37  ;;  %v664_v63 = vadd.f32 %v663_v53, %v642_v45  ;;  %v617_v4 = vadd.f32 %v616_v59, %v5434_v37 }
 0x118   :  { %v401_v16 = vpop.f32.mrf.mxu0  ;;  %v544_v17 = vpop.f32.mrf.mxu1 }
 0x119   :  { %v5446_v46 = vadd.f32 %v544_v17, %v401_v16  ;;  %v644_v55 = vmul.f32 %v5436_v38, %v5436_v38  ;;  %v683_v7 = vadd.f32 %v682_v60, %v643_v54  ;;  %v598_v8 = vadd.f32 %v597_v62, %v5436_v38 }
 0x11a   :  { %v405_v18 = vpop.f32.mrf.mxu0  ;;  %v548_v19 = vpop.f32.mrf.mxu1 }
 0x11b   :  { %v5448_v47 = vadd.f32 %v548_v19, %v405_v18  ;;  %v645_v0 = vmul.f32 %v5446_v46, %v5446_v46  ;;  %v665_v9 = vadd.f32 %v664_v63, %v644_v55  ;;  %v618_v16 = vadd.f32 %v617_v4, %v5446_v46 }
 0x11c   :  { %v407_v21 = vpop.f32.mrf.mxu0  ;;  %v550_v22 = vpop.f32.mrf.mxu1 }
 0x11d   :  { %v5457_v56 = vadd.f32 %v550_v22, %v407_v21  ;;  %v646_v1 = vmul.f32 %v5448_v47, %v5448_v47  ;;  %v684_v17 = vadd.f32 %v683_v7, %v645_v0  ;;  %v599_v18 = vadd.f32 %v598_v8, %v5448_v47 }
 0x11e   :  { %v411_v26 = vpop.f32.mrf.mxu0  ;;  %v554_v27 = vpop.f32.mrf.mxu1 }
 0x11f   :  { %v5460_v61 = vadd.f32 %v554_v27, %v411_v26  ;;  %v647_v10 = vmul.f32 %v5457_v56, %v5457_v56  ;;  %v666_v19 = vadd.f32 %v665_v9, %v646_v1 }
 0x120   :  { %v413_v32 = vpop.f32.mrf.mxu0  ;;  %v556_v33 = vpop.f32.mrf.mxu1 }
 0x121   :  { %v5468_v5 = vadd.f32 %v556_v33, %v413_v32  ;;  %v648_v13 = vmul.f32 %v5460_v61, %v5460_v61  ;;  %v619_v33 = vadd.f32 %v618_v16, %v5457_v56  ;;  %v685_v34 = vadd.f32 %v684_v17, %v647_v10 }
 0x122   :  { %v417_v39 = vpop.f32.mrf.mxu0  ;;  %v560_v40 = vpop.f32.mrf.mxu1  ;;  %v600_v35 = vadd.f32 %v599_v18, %v5460_v61 }
 0x123   :  { %v5470_v6 = vadd.f32 %v560_v40, %v417_v39  ;;  %v649_v26 = vmul.f32 %v5468_v5, %v5468_v5  ;;  %v667_v40 = vadd.f32 %v666_v19, %v648_v13  ;;  %v620_v44 = vadd.f32 %v619_v33, %v5468_v5 }
 0x124   :  { %v419_v48 = vpop.f32.mrf.mxu0  ;;  %v562_v49 = vpop.f32.mrf.mxu1 }
 0x125   :  { %v5477_v14 = vadd.f32 %v562_v49, %v419_v48  ;;  %v650_v27 = vmul.f32 %v5470_v6, %v5470_v6  ;;  %v601_v45 = vadd.f32 %v600_v35, %v5470_v6  ;;  %v686_v51 = vadd.f32 %v685_v34, %v649_v26 }
 0x126   :  { %v423_v57 = vpop.f32.mrf.mxu0  ;;  %v566_v58 = vpop.f32.mrf.mxu1 }
 0x127   :  { %v5479_v15 = vadd.f32 %v566_v58, %v423_v57  ;;  %v651_v41 = vmul.f32 %v5477_v14, %v5477_v14  ;;  %v668_v52 = vadd.f32 %v667_v40, %v650_v27  ;;  %v621_v55 = vadd.f32 %v620_v44, %v5477_v14 }
 0x128   :  { %v425_v2 = vpop.f32.mrf.mxu0  ;;  %v568_v3 = vpop.f32.mrf.mxu1 }
 0x129   :  { %v5487_v30 = vadd.f32 %v568_v3, %v425_v2  ;;  %v652_v42 = vmul.f32 %v5479_v15, %v5479_v15  ;;  %v602_v57 = vadd.f32 %v601_v45, %v5479_v15  ;;  %v687_v62 = vadd.f32 %v686_v51, %v651_v41 }
 0x12a   :  { %v429_v11 = vpop.f32.mrf.mxu0  ;;  %v572_v12 = vpop.f32.mrf.mxu1 }
 0x12b   :  { %v5489_v32 = vadd.f32 %v572_v12, %v429_v11  ;;  %v653_v53 = vmul.f32 %v5487_v30, %v5487_v30  ;;  %v669_v63 = vadd.f32 %v668_v52, %v652_v42  ;;  %v622_v2 = vadd.f32 %v621_v55, %v5487_v30 }
 0x12c   :  { %v431_v21 = vpop.f32.mrf.mxu0  ;;  %v574_v22 = vpop.f32.mrf.mxu1 }
 0x12d   :  { %v5497_v43 = vadd.f32 %v574_v22, %v431_v21  ;;  %v654_v54 = vmul.f32 %v5489_v32, %v5489_v32  ;;  %v603_v3 = vadd.f32 %v602_v57, %v5489_v32  ;;  %v688_v9 = vadd.f32 %v687_v62, %v653_v53 }
 0x12e   :  { %v435_v36 = vpop.f32.mrf.mxu0  ;;  %v578_v39 = vpop.f32.mrf.mxu1 }
 0x12f   :  { %v5501_v48 = vadd.f32 %v578_v39, %v435_v36  ;;  %v655_v0 = vmul.f32 %v5497_v43, %v5497_v43  ;;  %v670_v10 = vadd.f32 %v669_v63, %v654_v54  ;;  %v623_v12 = vadd.f32 %v622_v2, %v5497_v43 }
 0x130   :  { %v437_v49 = vpop.f32.mrf.mxu0  ;;  %v580_v50 = vpop.f32.mrf.mxu1 }
 0x131   :  { %v5509_v58 = vadd.f32 %v580_v50, %v437_v49  ;;  %v656_v4 = vmul.f32 %v5501_v48, %v5501_v48  ;;  %v604_v13 = vadd.f32 %v603_v3, %v5501_v48  ;;  %v689_v21 = vadd.f32 %v688_v9, %v655_v0 }
 0x132   :  { %v441_v59 = vpop.f32.mrf.mxu0  ;;  %v584_v60 = vpop.f32.mrf.mxu1 }
 0x133   :  { %v5513_v1 = vadd.f32 %v584_v60, %v441_v59  ;;  %v657_v16 = vmul.f32 %v5509_v58, %v5509_v58  ;;  %v671_v26 = vadd.f32 %v670_v10, %v656_v4  ;;  %v624_v27 = vadd.f32 %v623_v12, %v5509_v58 }
 0x134   :  { %v443_v7 = vpop.f32.mrf.mxu0  ;;  %v586_v8 = vpop.f32.mrf.mxu1 }
 0x135   :  { %v5519_v11 = vadd.f32 %v586_v8, %v443_v7  ;;  %v658_v17 = vmul.f32 %v5513_v1, %v5513_v1  ;;  %v605_v33 = vadd.f32 %v604_v13, %v5513_v1  ;;  %v690_v42 = vadd.f32 %v689_v21, %v657_v16 }
 0x136   :  { %v447_v18 = vpop.f32.mrf.mxu0  ;;  %v590_v19 = vpop.f32.mrf.mxu1 }
 0x137   :  { %v5527_v22 = vadd.f32 %v590_v19, %v447_v18  ;;  %v659_v34 = vmul.f32 %v5519_v11, %v5519_v11  ;;  %v672_v44 = vadd.f32 %v671_v26, %v658_v17  ;;  %v625_v45 = vadd.f32 %v624_v27, %v5519_v11 }
 0x138   :  { %v449_v35 = vpop.f32.mrf.mxu0  ;;  %v592_v36 = vpop.f32.mrf.mxu1 }
 0x139   :  { %v607_v39 = vsel %vm606_vm0, %v5527_v22, 0.0  ;;  %v660_v40 = vmul.f32 %v5527_v22, %v5527_v22  ;;  %v5537_v41 = vadd.f32 %v592_v36, %v449_v35  ;;  %v691_v53 = vadd.f32 %v690_v42, %v659_v34 }
 0x13a   :  { %v608_v49 = vadd.f32 %v607_v39, %v605_v33 }
 0x13b   :  { %v673_v50 = vsel %vm606_vm0, %v660_v40, 0.0  ;;  %v626_v51 = vsel %vm606_vm0, %v5537_v41, 0.0  ;;  %v661_v52 = vmul.f32 %v5537_v41, %v5537_v41 }
 0x13c   :  { %v609_v54 = vrot.slane %v608_v49, 4  ;;  %v674_v55 = vadd.f32 %v673_v50, %v672_v44  ;;  %v627_v57 = vadd.f32 %v626_v51, %v625_v45 }
 0x13d   :  { %v692_v59 = vsel %vm606_vm0, %v661_v52, 0.0 }
 0x13e   :  { %v610_v60 = vadd.f32 %v609_v54, %v608_v49  ;;  %v675_v62 = vrot.slane %v674_v55, 4  ;;  %v628_v63 = vrot.slane %v627_v57, 4  ;;  %v693_v0 = vadd.f32 %v692_v59, %v691_v53 }
 0x13f   :  { %v5052_v54 = vmov 1966171168  }
 0x140   :  { %v611_v2 = vrot.slane %v610_v60, 2  ;;  %v676_v3 = vadd.f32 %v675_v62, %v674_v55  ;;  %v629_v4 = vadd.f32 %v628_v63, %v627_v57  ;;  %v694_v7 = vrot.slane %v693_v0, 4 }
 0x141   :  { %v714_v55 = vunpack.c.l.s4 %v5052_v54  ;;  %v716_v57 = vlaneseq }
 0x142   :  { %v612_v8 = vadd.f32 %v611_v2, %v610_v60  ;;  %v677_v9 = vrot.slane %v676_v3, 2  ;;  %v630_v10 = vrot.slane %v629_v4, 2  ;;  %v695_v12 = vadd.f32 %v694_v7, %v693_v0 }
 0x143   :  { %v715_v59 = vunpack.c.0.s8 %v714_v55  ;;  %v5546_v60 = vshrl.u32 %v716_v57, 7 }
 0x144   :  { %v613_v13 = vrot.slane %v612_v8, 1  ;;  %v678_v16 = vadd.f32 %v677_v9, %v676_v3  ;;  %v631_v17 = vadd.f32 %v630_v10, %v629_v4  ;;  %v696_v18 = vrot.slane %v695_v12, 2  ;;  %v34_v4 = vld [vmem:[%s5905_s3] ss:$4 sm:$0x3] }
 0x145   :  { %v5549_v63 = vsub.s32 %v715_v59, %v5546_v60  ;;  %v736_v9 = vsub.s32 1, %v5546_v60 }
 0x146   :  { %v614_v19 = vadd.f32 %v613_v13, %v612_v8  ;;  %v679_v21 = vrot.slane %v678_v16, 1  ;;  %v632_v26 = vrot.slane %v631_v17, 1  ;;  %v697_v27 = vadd.f32 %v696_v18, %v695_v12 }
 0x147   :  { %v5557_v8 = vsub.s32 0, %v5546_v60 }
 0x148   :  { %v634_v33 = vmul.f32 0.010204081, %v614_v19  ;;  %v680_v34 = vadd.f32 %v679_v21, %v678_v16  ;;  %v633_v35 = vadd.f32 %v632_v26, %v631_v17  ;;  %v698_v36 = vrot.slane %v697_v27, 1  ;;  %v3365_v21 = vld [vmem:[%s5905_s3 + $0x1] ss:$4 sm:$0x3] }
 0x14a   :  { %v700_v39 = vmul.f32 0.010204081, %v680_v34  ;;  %v702_v40 = vmul.f32 %v634_v33, %v634_v33  ;;  %v635_v42 = vmul.f32 0.010204081, %v633_v35  ;;  %v699_v44 = vadd.f32 %v698_v36, %v697_v27 }
 0x14c   :  { %v704_v45 = vsub.f32 %v700_v39, %v702_v40  ;;  %v701_v49 = vmul.f32 0.010204081, %v699_v44  ;;  %v703_v50 = vmul.f32 %v635_v42, %v635_v42 }
 0x14e   :  { %v706_v51 = vadd.f32 1e-05, %v704_v45  ;;  %v705_v52 = vsub.f32 %v701_v49, %v703_v50 }
 0x150   :  { %v707_v53 = vadd.f32 1e-05, %v705_v52  ;;  %5002 = vrsqrt.f32 %v706_v51 }
 0x152   :  { %5004 = vrsqrt.f32 %v707_v53 }
 0x15d   :  { %v5003_v62 = vpop.eup %5002 }
 0x15f   :  { %v5005_v0 = vpop.eup %5004 }
 0x160   :  { %v712_v2 = vcombine.low %v5003_v62, %v5005_v0 }
 0x162   :  { %v719_v3 = vrot.slane %v712_v2, %v5549_v63 }
 0x164   :  { %v726_v7 = vrot.slane %v719_v3, %v5549_v63 }
 0x166   :  { %v728_v10 = vmul.f32 %v726_v7, %v34_v4 }
 0x168   :  { %v5561_v12 = vrot.slane %v728_v10, %v5557_v8  ;;  %v5563_v13 = vrot.slane %v728_v10, %v736_v9 }
 0x16a   :  { %v740_v16 = vmul.f32 %v5561_v12, %v634_v33  ;;  %v741_v17 = vmul.f32 %v5563_v13, %v635_v42  ;;  %v762_v34 = vmul.f32 %v5563_v13, %v5420_v28  ;;  %v761_v33 = vmul.f32 %v5561_v12, %v5416_v24 }
 0x16b   :  { %v764_v39 = vmul.f32 %v5563_v13, %v5414_v23  ;;  %v763_v28 = vmul.f32 %v5561_v12, %v5412_v20  ;;  %v766_v50 = vmul.f32 %v5563_v13, %v5422_v29  ;;  %v765_v52 = vmul.f32 %v5561_v12, %v5418_v25 }
 0x16c   :  { %v744_v18 = vcombine.low %v740_v16, %v741_v17  ;;  %v768_v53 = vmul.f32 %v5563_v13, %v5434_v37  ;;  %v767_v57 = vmul.f32 %v5561_v12, %v5426_v31  ;;  %v770_v59 = vmul.f32 %v5563_v13, %v5446_v46 }
 0x16d   :  { %v769_v2 = vmul.f32 %v5561_v12, %v5436_v38  ;;  %v772_v3 = vmul.f32 %v5563_v13, %v5457_v56  ;;  %v774_v10 = vmul.f32 %v5563_v13, %v5468_v5 }
 0x16e   :  { %v751_v19 = vrot.slane %v744_v18, %v5549_v63  ;;  %v773_v18 = vmul.f32 %v5561_v12, %v5460_v61 }
 0x170   :  { %v758_v26 = vrot.slane %v751_v19, %v5549_v63  ;;  %v776_v19 = vmul.f32 %v5563_v13, %v5477_v14 }
 0x172   :  { %v760_v27 = vsub.f32 %v3365_v21, %v758_v26 }
 0x174   :  { %v5575_v35 = vrot.slane %v760_v27, %v5557_v8  ;;  %v5577_v36 = vrot.slane %v760_v27, %v736_v9  ;;  %v771_v9 = vmul.f32 %v5561_v12, %v5448_v47  ;;  %v775_v27 = vmul.f32 %v5561_v12, %v5470_v6 }
 0x176   :  { %v799_v40 = vadd.f32 %v5577_v36, %v762_v34  ;;  %v798_v42 = vadd.f32 %v5575_v35, %v761_v33  ;;  %v801_v44 = vadd.f32 %v5577_v36, %v764_v39  ;;  %v800_v51 = vadd.f32 %v5575_v35, %v763_v28 }
 0x177   :  { %v803_v23 = vadd.f32 %v5577_v36, %v766_v50  ;;  %v802_v54 = vadd.f32 %v5575_v35, %v765_v52  ;;  %v805_v29 = vadd.f32 %v5577_v36, %v768_v53  ;;  %v804_v25 = vadd.f32 %v5575_v35, %v767_v57 }
 0x178   :  { %v825_v45 = vmax.f32 %v799_v40, 0.0  ;;  %v824_v49 = vmax.f32 %v798_v42, 0.0  ;;  %v827_v24 = vmax.f32 %v801_v44, 0.0  ;;  %v826_v20 = vmax.f32 %v800_v51, 0.0 }
 0x179   :  { %v829_v55 = vmax.f32 %v803_v23, 0.0  ;;  %v828_v62 = vmax.f32 %v802_v54, 0.0  ;;  %v831_v0 = vmax.f32 %v805_v29, 0.0  ;;  %v807_v37 = vadd.f32 %v5577_v36, %v770_v59 }
 0x17a   :  { %978 = vmatprep.mubr.f32.mxu0 %v825_v45  ;;  %v830_v4 = vmax.f32 %v804_v25, 0.0  ;;  %v806_v31 = vadd.f32 %v5575_v35, %v769_v2  ;;  %v809_v46 = vadd.f32 %v5577_v36, %v772_v3  ;;  %v808_v38 = vadd.f32 %v5575_v35, %v771_v9 }
 0x17b   :  { %979 = vmatmul.mubr.f32.vlgmr.msra.gmra.mxu0 %v824_v49  ;;  %v833_v7 = vmax.f32 %v807_v37, 0.0  ;;  %v811_v56 = vadd.f32 %v5577_v36, %v774_v10  ;;  %v810_v47 = vadd.f32 %v5575_v35, %v773_v18  ;;  %v813_v5 = vadd.f32 %v5577_v36, %v776_v19 }
 0x17c   :  { %983 = vmatprep.mubr.f32.mxu0 %v827_v24  ;;  %v832_v16 = vmax.f32 %v806_v31, 0.0  ;;  %v835_v17 = vmax.f32 %v809_v46, 0.0  ;;  %v834_v21 = vmax.f32 %v808_v38, 0.0  ;;  %v778_v34 = vmul.f32 %v5563_v13, %v5487_v30 }
 0x17d   :  { %v837_v26 = vmax.f32 %v811_v56, 0.0  ;;  %v836_v33 = vmax.f32 %v810_v47, 0.0  ;;  %v812_v61 = vadd.f32 %v5575_v35, %v775_v27  ;;  %v839_v39 = vmax.f32 %v813_v5, 0.0 }
 0x17e   :  { %v815_v14 = vadd.f32 %v5577_v36, %v778_v34  ;;  %v777_v40 = vmul.f32 %v5561_v12, %v5479_v15  ;;  %v780_v42 = vmul.f32 %v5563_v13, %v5497_v43  ;;  %v779_v45 = vmul.f32 %v5561_v12, %v5489_v32 }
 0x17f   :  { %984 = vmatmul.mubr.f32.gmra.mxu0 %v826_v20  ;;  %v838_v44 = vmax.f32 %v812_v61, 0.0  ;;  %v782_v49 = vmul.f32 %v5563_v13, %v5509_v58  ;;  %v781_v24 = vmul.f32 %v5561_v12, %v5501_v48  ;;  %v784_v23 = vmul.f32 %v5563_v13, %v5519_v11 }
 0x180   :  { %988 = vmatprep.mubr.f32.mxu0 %v829_v55  ;;  %v814_v6 = vadd.f32 %v5575_v35, %v777_v40  ;;  %v841_v28 = vmax.f32 %v815_v14, 0.0  ;;  %v817_v30 = vadd.f32 %v5577_v36, %v780_v42  ;;  %v816_v15 = vadd.f32 %v5575_v35, %v779_v45 }
 0x181   :  { %v819_v43 = vadd.f32 %v5577_v36, %v782_v49  ;;  %v818_v32 = vadd.f32 %v5575_v35, %v781_v24  ;;  %v821_v58 = vadd.f32 %v5577_v36, %v784_v23  ;;  %v783_v20 = vmul.f32 %v5561_v12, %v5513_v1 }
 0x182   :  { %v840_v50 = vmax.f32 %v814_v6, 0.0  ;;  %v843_v51 = vmax.f32 %v817_v30, 0.0  ;;  %v842_v52 = vmax.f32 %v816_v15, 0.0  ;;  %v786_v54 = vmul.f32 %v5563_v13, %v5537_v41 }
 0x183   :  { %989 = vmatmul.mubr.f32.gmra.mxu0 %v828_v62  ;;  %v845_v53 = vmax.f32 %v819_v43, 0.0  ;;  %v844_v55 = vmax.f32 %v818_v32, 0.0  ;;  %v820_v48 = vadd.f32 %v5575_v35, %v783_v20  ;;  %v847_v29 = vmax.f32 %v821_v58, 0.0 }
 0x184   :  { %993 = vmatprep.mubr.f32.mxu0 %v831_v0  ;;  %v823_v11 = vadd.f32 %v5577_v36, %v786_v54  ;;  %v785_v57 = vmul.f32 %v5561_v12, %v5527_v22 }
 0x185   :  { %v846_v59 = vmax.f32 %v820_v48, 0.0 }
 0x186   :  { %v822_v62 = vadd.f32 %v5575_v35, %v785_v57  ;;  %v849_v25 = vmax.f32 %v823_v11, 0.0 }
 0x187   :  { %994 = vmatmul.mubr.f32.gmra.mxu0 %v830_v4 }
 0x188   :  { %998 = vmatprep.mubr.f32.mxu0 %v833_v7  ;;  %v848_v1 = vmax.f32 %v822_v62, 0.0 }
 0x18b   :  { %999 = vmatmul.mubr.f32.gmra.mxu0 %v832_v16 }
 0x18c   :  { %1003 = vmatprep.mubr.f32.mxu0 %v835_v17 }
 0x18f   :  { %1004 = vmatmul.mubr.f32.gmra.mxu0 %v834_v21 }
 0x190   :  { %1008 = vmatprep.mubr.f32.mxu0 %v837_v26 }
 0x193   :  { %1009 = vmatmul.mubr.f32.gmra.mxu0 %v836_v33 }
 0x194   :  { %1013 = vmatprep.mubr.f32.mxu0 %v839_v39 }
 0x197   :  { %1014 = vmatmul.mubr.f32.gmra.mxu0 %v838_v44 }
 0x198   :  { %1018 = vmatprep.mubr.f32.mxu0 %v841_v28 }
 0x19b   :  { %1019 = vmatmul.mubr.f32.gmra.mxu0 %v840_v50 }
 0x19c   :  { %1023 = vmatprep.mubr.f32.mxu0 %v843_v51 }
 0x19f   :  { %1024 = vmatmul.mubr.f32.gmra.mxu0 %v842_v52 }
 0x1a0   :  { %1028 = vmatprep.mubr.f32.mxu0 %v845_v53 }
 0x1a3   :  { %1029 = vmatmul.mubr.f32.gmra.mxu0 %v844_v55 }
 0x1a4   :  { %1033 = vmatprep.mubr.f32.mxu0 %v847_v29 }
 0x1a7   :  { %1034 = vmatmul.mubr.f32.gmra.mxu0 %v846_v59 }
 0x1a8   :  { %1038 = vmatprep.mubr.f32.mxu0 %v849_v25 }
 0x1ab   :  { %1039 = vmatmul.mubr.f32.gmra.mxu0 %v848_v1 }
 0x23b   :  { %v4484_v41 = vpop.f32.mrf.mxu0 }
 0x23d   :  { %v4485_v13 = vpop.f32.mrf.mxu0 }
 0x23e   :  { %v5657_v35 = vadd.f32 %v4485_v13, %v4484_v41 }
 0x23f   :  { %v4487_v0 = vpop.f32.mrf.mxu0 }
 0x240   :  { %v1078_v56 = vmul.f32 %v5657_v35, %v5657_v35  ;;  %v1045_v26 = vsel %vm1044_vm1, %v5657_v35, 0.0 }
 0x241   :  { %v4488_v37 = vpop.f32.mrf.mxu0 }
 0x242   :  { %v5655_v46 = vadd.f32 %v4488_v37, %v4487_v0  ;;  %v1091_v39 = vsel %vm1044_vm1, %v1078_v56, 0.0 }
 0x243   :  { %v4490_v2 = vpop.f32.mrf.mxu0 }
 0x244   :  { %v1079_v38 = vmul.f32 %v5655_v46, %v5655_v46  ;;  %v1046_v19 = vsel %vm1044_vm1, %v5655_v46, 0.0 }
 0x245   :  { %v4491_v3 = vpop.f32.mrf.mxu0  ;;  %v1047_v14 = vadd.f32 %v1046_v19, %v1045_v26 }
 0x246   :  { %v5659_v10 = vadd.f32 %v4491_v3, %v4490_v2  ;;  %v1092_v27 = vsel %vm1044_vm1, %v1079_v38, 0.0 }
 0x247   :  { %v4493_v36 = vpop.f32.mrf.mxu0  ;;  %v1093_v30 = vadd.f32 %v1092_v27, %v1091_v39 }
 0x248   :  { %v1080_v21 = vmul.f32 %v5659_v10, %v5659_v10  ;;  %v1048_v34 = vsel %vm1044_vm1, %v5659_v10, 0.0 }
 0x249   :  { %v4494_v4 = vpop.f32.mrf.mxu0  ;;  %v1049_v45 = vadd.f32 %v1048_v34, %v1047_v14 }
 0x24a   :  { %v5663_v17 = vadd.f32 %v4494_v4, %v4493_v36  ;;  %v1094_v42 = vsel %vm1044_vm1, %v1080_v21, 0.0 }
 0x24b   :  { %v4496_v31 = vpop.f32.mrf.mxu0  ;;  %v1095_v24 = vadd.f32 %v1094_v42, %v1093_v30 }
 0x24c   :  { %v1081_v33 = vmul.f32 %v5663_v17, %v5663_v17  ;;  %v1050_v44 = vsel %vm1044_vm1, %v5663_v17, 0.0 }
 0x24d   :  { %v4497_v7 = vpop.f32.mrf.mxu0  ;;  %v1051_v23 = vadd.f32 %v1050_v44, %v1049_v45 }
 0x24e   :  { %v5671_v47 = vadd.f32 %v4497_v7, %v4496_v31  ;;  %v1096_v50 = vsel %vm1044_vm1, %v1081_v33, 0.0 }
 0x24f   :  { %v4499_v22 = vpop.f32.mrf.mxu0  ;;  %v1097_v54 = vadd.f32 %v1096_v50, %v1095_v24 }
 0x250   :  { %v1082_v6 = vmul.f32 %v5671_v47, %v5671_v47  ;;  %v1052_v15 = vsel %vm1044_vm1, %v5671_v47, 0.0 }
 0x251   :  { %v4500_v12 = vpop.f32.mrf.mxu0  ;;  %v1053_v55 = vadd.f32 %v1052_v15, %v1051_v23 }
 0x252   :  { %v5680_v61 = vadd.f32 %v4500_v12, %v4499_v22  ;;  %v1098_v32 = vsel %vm1044_vm1, %v1082_v6, 0.0 }
 0x253   :  { %v4502_v9 = vpop.f32.mrf.mxu0  ;;  %v1099_v62 = vadd.f32 %v1098_v32, %v1097_v54 }
 0x254   :  { %v1083_v51 = vmul.f32 %v5680_v61, %v5680_v61  ;;  %v1054_v53 = vsel %vm1044_vm1, %v5680_v61, 0.0 }
 0x255   :  { %v4503_v16 = vpop.f32.mrf.mxu0  ;;  %v1055_v25 = vadd.f32 %v1054_v53, %v1053_v55 }
 0x256   :  { %v5688_v28 = vadd.f32 %v4503_v16, %v4502_v9  ;;  %v1100_v29 = vsel %vm1044_vm1, %v1083_v51, 0.0 }
 0x257   :  { %v4505_v18 = vpop.f32.mrf.mxu0  ;;  %v1101_v37 = vadd.f32 %v1100_v29, %v1099_v62 }
 0x258   :  { %v1084_v58 = vmul.f32 %v5688_v28, %v5688_v28  ;;  %v1056_v11 = vsel %vm1044_vm1, %v5688_v28, 0.0 }
 0x259   :  { %v4506_v5 = vpop.f32.mrf.mxu0  ;;  %v1057_v2 = vadd.f32 %v1056_v11, %v1055_v25 }
 0x25a   :  { %v5695_v43 = vadd.f32 %v4506_v5, %v4505_v18  ;;  %v1102_v41 = vsel %vm1044_vm1, %v1084_v58, 0.0 }
 0x25b   :  { %v4508_v40 = vpop.f32.mrf.mxu0  ;;  %v1103_v22 = vadd.f32 %v1102_v41, %v1101_v37 }
 0x25c   :  { %v1085_v57 = vmul.f32 %v5695_v43, %v5695_v43  ;;  %v1058_v13 = vsel %vm1044_vm1, %v5695_v43, 0.0 }
 0x25d   :  { %v4509_v49 = vpop.f32.mrf.mxu0  ;;  %v1059_v12 = vadd.f32 %v1058_v13, %v1057_v2 }
 0x25e   :  { %v5702_v20 = vadd.f32 %v4509_v49, %v4508_v40  ;;  %v1104_v36 = vsel %vm1044_vm1, %v1085_v57, 0.0 }
 0x25f   :  { %v4511_v52 = vpop.f32.mrf.mxu0  ;;  %v1105_v18 = vadd.f32 %v1104_v36, %v1103_v22 }
 0x260   :  { %v1086_v0 = vmul.f32 %v5702_v20, %v5702_v20  ;;  %v1060_v4 = vsel %vm1044_vm1, %v5702_v20, 0.0 }
 0x261   :  { %v4512_v48 = vpop.f32.mrf.mxu0  ;;  %v1061_v19 = vadd.f32 %v1060_v4, %v1059_v12  ;;  %v37_v4 = vld [vmem:[%s5905_s3 + $0x2] sm:$0x1]  ;;  %v38_v12 = vld [vmem:[%s5905_s3 + $0x3] sm:$0x1]  ;;  %s5053_s3 = smov 64  }
 0x262   :  { %v5709_v59 = vadd.f32 %v4512_v48, %v4511_v52  ;;  %v1106_v16 = vsel %vm1044_vm1, %v1086_v0, 0.0 }
 0x263   :  { %v4514_v1 = vpop.f32.mrf.mxu0  ;;  %v1107_v34 = vadd.f32 %v1106_v16, %v1105_v18 }
 0x264   :  { %v1087_v31 = vmul.f32 %v5709_v59, %v5709_v59  ;;  %v1062_v38 = vsel %vm1044_vm1, %v5709_v59, 0.0 }
 0x265   :  { %v4515_v3 = vpop.f32.mrf.mxu0  ;;  %v1063_v33 = vadd.f32 %v1062_v38, %v1061_v19 }
 0x266   :  { %v5721_v7 = vadd.f32 %v4515_v3, %v4514_v1  ;;  %v1108_v26 = vsel %vm1044_vm1, %v1087_v31, 0.0 }
 0x267   :  { %v4517_v9 = vpop.f32.mrf.mxu0  ;;  %v1109_v44 = vadd.f32 %v1108_v26, %v1107_v34 }
 0x268   :  { %v1088_v56 = vmul.f32 %v5721_v7, %v5721_v7  ;;  %v1064_v5 = vsel %vm1044_vm1, %v5721_v7, 0.0 }
 0x269   :  { %v4518_v21 = vpop.f32.mrf.mxu0  ;;  %v1065_v6 = vadd.f32 %v1064_v5, %v1063_v33 }
 0x26a   :  { %v4519_v27 = vadd.f32 %v4518_v21, %v4517_v9  ;;  %v1110_v14 = vsel %vm1044_vm1, %v1088_v56, 0.0 }
 0x26b   :  { %v4520_v39 = vpop.f32.mrf.mxu0  ;;  %v1111_v50 = vadd.f32 %v1110_v14, %v1109_v44 }
 0x26c   :  { %v1066_v40 = vsel %vm1044_vm1, %v4519_v27, 0.0  ;;  %v1089_v42 = vmul.f32 %v4519_v27, %v4519_v27 }
 0x26d   :  { %v4521_v30 = vpop.f32.mrf.mxu0  ;;  %v1067_v15 = vadd.f32 %v1066_v40, %v1065_v6 }
 0x26e   :  { %v1112_v45 = vsel %vm1044_vm1, %v1089_v42, 0.0  ;;  %v4522_v49 = vadd.f32 %v4521_v30, %v4520_v39 }
 0x26f   :  { %v1113_v23 = vadd.f32 %v1112_v45, %v1111_v50 }
 0x270   :  { %v1069_v51 = vsel %vm1068_vm2, %v4522_v49, 0.0  ;;  %v1090_v24 = vmul.f32 %v4522_v49, %v4522_v49 }
 0x271   :  { %v1070_v52 = vadd.f32 %v1069_v51, %v1067_v15 }
 0x272   :  { %v1114_v32 = vsel %vm1068_vm2, %v1090_v24, 0.0 }
 0x273   :  { %v1071_v53 = vrot.slane %v1070_v52, 4  ;;  %v1115_v58 = vadd.f32 %v1114_v32, %v1113_v23 }
 0x275   :  { %v1072_v54 = vadd.f32 %v1071_v53, %v1070_v52  ;;  %v1116_v55 = vrot.slane %v1115_v58, 4 }
 0x277   :  { %v1073_v48 = vrot.slane %v1072_v54, 2  ;;  %v1117_v29 = vadd.f32 %v1116_v55, %v1115_v58 }
 0x279   :  { %v1074_v11 = vadd.f32 %v1073_v48, %v1072_v54  ;;  %v1118_v57 = vrot.slane %v1117_v29, 2 }
 0x27b   :  { %v1075_v62 = vrot.slane %v1074_v11, 1  ;;  %v1119_v25 = vadd.f32 %v1118_v57, %v1117_v29 }
 0x27d   :  { %v1076_v1 = vadd.f32 %v1075_v62, %v1074_v11  ;;  %v1120_v41 = vrot.slane %v1119_v25, 1 }
 0x27f   :  { %v1077_v13 = vmul.f32 0.010204081, %v1076_v1  ;;  %v1121_v0 = vadd.f32 %v1120_v41, %v1119_v25 }
 0x281   :  { %v1122_v37 = vmul.f32 0.010204081, %v1121_v0  ;;  %v1123_v2 = vmul.f32 %v1077_v13, %v1077_v13 }
 0x283   :  { %v1124_v3 = vsub.f32 %v1122_v37, %v1123_v2 }
 0x285   :  { %v1125_v36 = vadd.f32 1e-05, %v1124_v3 }
 0x287   :  { %5006 = vrsqrt.f32 %v1125_v36 }
 0x294   :  { %v5007_v31 = vpop.eup %5006 }
 0x295   :  { %v1127_v22 = vmul.f32 %v5007_v31, %v37_v4 }
 0x297   :  { %v1128_v9 = vmul.f32 %v1127_v22, %v1077_v13  ;;  %v1133_v16 = vrot.slane %v1127_v22, %v5557_v8 }
 0x299   :  { %v1129_v38 = vsub.f32 %v38_v12, %v1128_v9  ;;  %v1146_v56 = vmul.f32 %v4522_v49, %v1133_v16  ;;  %v1138_v18 = vmul.f32 %v5671_v47, %v1133_v16  ;;  %v1139_v19 = vmul.f32 %v5680_v61, %v1133_v16 }
 0x29a   :  { %v1134_v21 = vmul.f32 %v5657_v35, %v1133_v16  ;;  %v1135_v26 = vmul.f32 %v5655_v46, %v1133_v16  ;;  %v1140_v5 = vmul.f32 %v5688_v28, %v1133_v16  ;;  %v1141_v33 = vmul.f32 %v5695_v43, %v1133_v16 }
 0x29b   :  { %v1150_v34 = vrot.slane %v1129_v38, %v5557_v8  ;;  %v1136_v39 = vmul.f32 %v5659_v10, %v1133_v16  ;;  %v1137_v14 = vmul.f32 %v5663_v17, %v1133_v16  ;;  %v1144_v40 = vmul.f32 %v5721_v7, %v1133_v16 }
 0x29c   :  { %v1145_v42 = vmul.f32 %v4519_v27, %v1133_v16  ;;  %v1142_v47 = vmul.f32 %v5702_v20, %v1133_v16  ;;  %v1143_v61 = vmul.f32 %v5709_v59, %v1133_v16 }
 0x29d   :  { %v1163_v35 = vadd.f32 %v1150_v34, %v1146_v56  ;;  %v1155_v44 = vadd.f32 %v1150_v34, %v1138_v18  ;;  %v1156_v46 = vadd.f32 %v1150_v34, %v1139_v19  ;;  %v1151_v6 = vadd.f32 %v1150_v34, %v1134_v21 }
 0x29e   :  { %v1152_v28 = vadd.f32 %v1150_v34, %v1135_v26  ;;  %v1157_v30 = vadd.f32 %v1150_v34, %v1140_v5  ;;  %v1158_v8 = vadd.f32 %v1150_v34, %v1141_v33  ;;  %v1153_v45 = vadd.f32 %v1150_v34, %v1136_v39 }
 0x29f   :  { %v1176_v43 = vmax.f32 %v1163_v35, 0.0  ;;  %v1168_v49 = vmax.f32 %v1155_v44, 0.0  ;;  %v1169_v10 = vmax.f32 %v1156_v46, 0.0  ;;  %v1164_v50 = vmax.f32 %v1151_v6, 0.0 }
 0x2a0   :  { %v1165_v17 = vmax.f32 %v1152_v28, 0.0  ;;  %v1170_v15 = vmax.f32 %v1157_v30, 0.0  ;;  %v1171_v7 = vmax.f32 %v1158_v8, 0.0  ;;  %v1154_v27 = vadd.f32 %v1150_v34, %v1137_v14 }
 0x2a1   :  { %v1183_v51 = vpack.c.bf16 %v1176_v43, %v1176_v43  ;;  %v1179_v20 = vpack.c.bf16 %v1169_v10, %v1168_v49  ;;  %v1166_v24 = vmax.f32 %v1153_v45, 0.0  ;;  %v1161_v59 = vadd.f32 %v1150_v34, %v1144_v40 }
 0x2a2   :  { %v1177_v23 = vpack.c.bf16 %v1165_v17, %v1164_v50  ;;  %v1180_v52 = vpack.c.bf16 %v1171_v7, %v1170_v15  ;;  %v1167_v32 = vmax.f32 %v1154_v27, 0.0  ;;  %v1162_v53 = vadd.f32 %v1150_v34, %v1145_v42 }
 0x2a3   :  { %v1468_v58 = vsel %vm1044_vm1, %v1183_v51, 0  ;;  %v1279_v54 = vrot.slane %v1179_v20, 1  ;;  %v1174_v55 = vmax.f32 %v1161_v59, 0.0  ;;  %v1159_v48 = vadd.f32 %v1150_v34, %v1142_v47 }
 0x2a4   :  { %1470 = vst [vmem:[#allocation2 + $0x18] sm:$0x1] %v1468_v58  ;;  %v1185_v29 = vrot.slane %v1177_v23, 1  ;;  %v1178_v11 = vpack.c.bf16 %v1167_v32, %v1166_v24  ;;  %v1175_v57 = vmax.f32 %v1162_v53, 0.0  ;;  %v1160_v62 = vadd.f32 %v1150_v34, %v1143_v61 }
 0x2a5   :  { %1280 = vrot.lane.b32.xlu1 %v1279_v54, %s5053_s3  ;;  %v1172_v25 = vmax.f32 %v1159_v48, 0.0  ;;  %v1326_v1 = vrot.slane %v1180_v52, 1 }
 0x2a6   :  { %1186 = vrot.lane.b32.xlu0 %v1185_v29, %s5053_s3  ;;  %v1182_v41 = vpack.c.bf16 %v1175_v57, %v1174_v55  ;;  %v1173_v13 = vmax.f32 %v1160_v62, 0.0  ;;  %v1232_v0 = vrot.slane %v1178_v11, 1 }
 0x2a8   :  { %v5754_v37 = vpack.c.bf16 %v1173_v13, %v1172_v25  ;;  %v1420_v2 = vrot.slane %v1182_v41, 1 }
 0x2a9   :  { %1327 = vrot.lane.b32.xlu1 %v1326_v1, %s5053_s3 }
 0x2aa   :  { %1233 = vrot.lane.b32.xlu0 %v1232_v0, %s5053_s3  ;;  %v1373_v3 = vrot.slane %v5754_v37, 1 }
 0x2ad   :  { %1421 = vrot.lane.b32.xlu1 %v1420_v2, %s5053_s3 }
 0x2ae   :  { %1374 = vrot.lane.b32.xlu0 %v1373_v3, %s5053_s3 }
 0x2af   :  { %5027 = shalt.err (!%p5024_p4)  }
 0x2b0   :  { %33 = dma.hbm_to_vmem [thread:$0]  %s5907_s5, 25600, %s31_s19, [#allocation4] }
 0x317   :  { %v1281_v36 = vpop.permute.xlu1 %1280 }
 0x318   :  { %v1284_v4 = vsel %vm1044_vm1, %v1179_v20, %v1281_v36  ;;  %v1187_v31 = vpop.permute.xlu0 %1186 }
 0x319   :  { %1286 = vst [vmem:[#allocation2 + $0x8] sm:$0x1] %v1284_v4  ;;  %v1294_v22 = vrot.slane %v1284_v4, %v5549_v63  ;;  %v1305_v12 = vcombine.high %v1284_v4, %v1284_v4  ;;  %v1190_v9 = vsel %vm1044_vm1, %v1177_v23, %v1187_v31 }
 0x31a   :  { %1192 = vst [vmem:[#allocation2] sm:$0x1] %v1190_v9  ;;  %v1200_v16 = vrot.slane %v1190_v9, %v5549_v63  ;;  %v1211_v38 = vcombine.high %v1190_v9, %v1190_v9 }
 0x31b   :  { %v1301_v56 = vrot.slane %v1294_v22, %v5549_v63  ;;  %v1312_v18 = vrot.slane %v1305_v12, %v5549_v63  ;;  %v1328_v19 = vpop.permute.xlu1 %1327 }
 0x31c   :  { %v1207_v21 = vrot.slane %v1200_v16, %v5549_v63  ;;  %v1218_v26 = vrot.slane %v1211_v38, %v5549_v63  ;;  %v1331_v5 = vsel %vm1044_vm1, %v1180_v52, %v1328_v19  ;;  %v1234_v34 = vpop.permute.xlu0 %1233 }
 0x31d   :  { %v1302_v33 = vcombine.high %v1301_v56, %v1301_v56  ;;  %v1319_v39 = vrot.slane %v1312_v18, %v5549_v63  ;;  %3368 = vst.sshfl [vmem:[#allocation2 + $0xa] sm:$0x1 pattern:$0x73625140] %v1312_v18  ;;  %1333 = vst [vmem:[#allocation2 + $0xc] sm:$0x1] %v1331_v5  ;;  %v1341_v14 = vrot.slane %v1331_v5, %v5549_v63 }
 0x31e   :  { %v1352_v40 = vcombine.high %v1331_v5, %v1331_v5  ;;  %v1208_v42 = vcombine.high %v1207_v21, %v1207_v21  ;;  %v1225_v47 = vrot.slane %v1218_v26, %v5549_v63  ;;  %3366 = vst.sshfl [vmem:[#allocation2 + $0x2] sm:$0x1 pattern:$0x73625140] %v1218_v26  ;;  %v1237_v61 = vsel %vm1044_vm1, %v1178_v11, %v1234_v34 }
 0x31f   :  { %1304 = vst [vmem:[#allocation2 + $0x9] sm:$0x1] %v1302_v33  ;;  %v1322_v35 = vcombine.high %v1319_v39, %v1319_v39  ;;  %v1348_v44 = vrot.slane %v1341_v14, %v5549_v63  ;;  %1239 = vst [vmem:[#allocation2 + $0x4] sm:$0x1] %v1237_v61  ;;  %v1247_v6 = vrot.slane %v1237_v61, %v5549_v63  ;;  %v1422_v28 = vpop.permute.xlu1 %1421 }
 0x320   :  { %v1359_v46 = vrot.slane %v1352_v40, %v5549_v63  ;;  %1210 = vst [vmem:[#allocation2 + $0x1] sm:$0x1] %v1208_v42  ;;  %v1228_v30 = vcombine.high %v1225_v47, %v1225_v47  ;;  %v1258_v8 = vcombine.high %v1237_v61, %v1237_v61  ;;  %v1425_v45 = vsel %vm1044_vm1, %v1182_v41, %v1422_v28  ;;  %v1375_v43 = vpop.permute.xlu0 %1374 }
 0x321   :  { %1324 = vst [vmem:[#allocation2 + $0xb] sm:$0x1] %v1322_v35  ;;  %v1349_v49 = vcombine.high %v1348_v44, %v1348_v44  ;;  %v1254_v50 = vrot.slane %v1247_v6, %v5549_v63  ;;  %1427 = vst [vmem:[#allocation2 + $0x14] sm:$0x1] %v1425_v45  ;;  %v1435_v17 = vrot.slane %v1425_v45, %v5549_v63 }
 0x322   :  { %v1366_v10 = vrot.slane %v1359_v46, %v5549_v63  ;;  %3369 = vst.sshfl [vmem:[#allocation2 + $0xe] sm:$0x1 pattern:$0x73625140] %v1359_v46  ;;  %1230 = vst [vmem:[#allocation2 + $0x3] sm:$0x1] %v1228_v30  ;;  %v1265_v15 = vrot.slane %v1258_v8, %v5549_v63  ;;  %v1446_v7 = vcombine.high %v1425_v45, %v1425_v45 }
 0x323   :  { %v1378_v27 = vsel %vm1044_vm1, %v5754_v37, %v1375_v43  ;;  %1351 = vst [vmem:[#allocation2 + $0xd] sm:$0x1] %v1349_v49  ;;  %v1255_v20 = vcombine.high %v1254_v50, %v1254_v50  ;;  %v1442_v24 = vrot.slane %v1435_v17, %v5549_v63 }
 0x324   :  { %v1369_v51 = vcombine.high %v1366_v10, %v1366_v10  ;;  %1380 = vst [vmem:[#allocation2 + $0x10] sm:$0x1] %v1378_v27  ;;  %v1388_v59 = vrot.slane %v1378_v27, %v5549_v63  ;;  %v1272_v23 = vrot.slane %v1265_v15, %v5549_v63  ;;  %3367 = vst.sshfl [vmem:[#allocation2 + $0x6] sm:$0x1 pattern:$0x73625140] %v1265_v15 }
 0x325   :  { %v1453_v52 = vrot.slane %v1446_v7, %v5549_v63  ;;  %v1399_v32 = vcombine.high %v1378_v27, %v1378_v27  ;;  %1257 = vst [vmem:[#allocation2 + $0x5] sm:$0x1] %v1255_v20  ;;  %v1443_v53 = vcombine.high %v1442_v24, %v1442_v24 }
 0x326   :  { %1371 = vst [vmem:[#allocation2 + $0xf] sm:$0x1] %v1369_v51  ;;  %v1395_v58 = vrot.slane %v1388_v59, %v5549_v63  ;;  %v1275_v54 = vcombine.high %v1272_v23, %v1272_v23 }
 0x327   :  { %v1460_v55 = vrot.slane %v1453_v52, %v5549_v63  ;;  %3371 = vst.sshfl [vmem:[#allocation2 + $0x16] sm:$0x1 pattern:$0x73625140] %v1453_v52  ;;  %v1406_v48 = vrot.slane %v1399_v32, %v5549_v63  ;;  %1445 = vst [vmem:[#allocation2 + $0x15] sm:$0x1] %v1443_v53 }
 0x328   :  { %v1396_v29 = vcombine.high %v1395_v58, %v1395_v58  ;;  %1277 = vst [vmem:[#allocation2 + $0x7] sm:$0x1] %v1275_v54 }
 0x329   :  { %v1463_v11 = vcombine.high %v1460_v55, %v1460_v55  ;;  %v1413_v57 = vrot.slane %v1406_v48, %v5549_v63  ;;  %3370 = vst.sshfl [vmem:[#allocation2 + $0x12] sm:$0x1 pattern:$0x73625140] %v1406_v48 }
 0x32a   :  { %1398 = vst [vmem:[#allocation2 + $0x11] sm:$0x1] %v1396_v29 }
 0x32b   :  { %1465 = vst [vmem:[#allocation2 + $0x17] sm:$0x1] %v1463_v11  ;;  %v1416_v62 = vcombine.high %v1413_v57, %v1413_v57 }
 0x32d   :  { %1418 = vst [vmem:[#allocation2 + $0x13] sm:$0x1] %v1416_v62 }
 0x32e   :  { %5048 = dma.done.wait [#allocation4], 25600 }
 0x32f   :  { %5049 = vsyncadd [#allocation4], 4294941696  ;;  %v5055_v25 = vmov 1983009808   ;;  %v4267_v41 = vld [vmem:[#allocation3 + $0x78] sm:$0xff]   ;;  %v4266_v0 = vld [vmem:[#allocation3 + $0x70] sm:$0xff]  }
 0x330   :  { %v2302_v1 = vunpack.c.l.s4 %v5055_v25  ;;  %v4259_v13 = vld [vmem:[#allocation3 + $0x38] sm:$0xff]   ;;  %v3500_v37 = vunpack.c.l.bf16 %v4267_v41  ;;  %v3501_v2 = vunpack.c.h.bf16 %v4267_v41  ;;  %v4258_v36 = vld [vmem:[#allocation3 + $0x30] sm:$0xff]   ;;  %v3497_v31 = vunpack.c.h.bf16 %v4266_v0  ;;  %v4265_v12 = vld [vmem:[#allocation3 + $0x68] sm:$0xff]  }
 0x331   :  { %v3469_v3 = vunpack.c.h.bf16 %v4259_v13  ;;  %v3468_v4 = vunpack.c.l.bf16 %v4259_v13  ;;  %v3465_v22 = vunpack.c.h.bf16 %v4258_v36  ;;  %v3496_v9 = vunpack.c.l.bf16 %v4266_v0  ;;  %v4257_v16 = vld [vmem:[#allocation3 + $0x28] sm:$0xff]   ;;  %v4299_v21 = vld [vmem:[#allocation3 + $0x178] sm:$0xff]   ;;  %v4264_v5 = vld [vmem:[#allocation3 + $0x60] sm:$0xff]  }
 0x332   :  { %4523 = vmatprep.subr.mxu1 %v3501_v2  ;;  %v2303_v63 = vunpack.c.0.s8 %v2302_v1  ;;  %v3464_v38 = vunpack.c.l.bf16 %v4258_v36  ;;  %v5791_v56 = vld [vmem:[#allocation2] sm:$0xff]  ;;  %v3493_v18 = vunpack.c.h.bf16 %v4265_v12  ;;  %v3461_v26 = vunpack.c.h.bf16 %v4257_v16  ;;  %v4291_v34 = vld [vmem:[#allocation3 + $0x138] sm:$0xff]   ;;  %v4298_v61 = vld [vmem:[#allocation3 + $0x170] sm:$0xff]  }
 0x333   :  { %4524 = vmatpush3.msra.mxu1 %v3469_v3  ;;  %v3492_v33 = vunpack.c.l.bf16 %v4265_v12  ;;  %v4256_v39 = vld [vmem:[#allocation3 + $0x20] sm:$0xff]   ;;  %v5797_v14 = vunpack.c.l.bf16 %v5791_v56  ;;  %v3460_v40 = vunpack.c.l.bf16 %v4257_v16  ;;  %v3628_v42 = vunpack.c.l.bf16 %v4299_v21  ;;  %v4290_v46 = vld [vmem:[#allocation3 + $0x130] sm:$0xff]   ;;  %v4263_v28 = vld [vmem:[#allocation3 + $0x58] sm:$0xff]  }
 0x334   :  { %4525 = vmatprep.subr.mxu1 %v3500_v37  ;;  %v5794_v19 = vsub.s32 %v2303_v63, %v5546_v60  ;;  %v3629_v47 = vunpack.c.h.bf16 %v4299_v21  ;;  %v3489_v35 = vunpack.c.h.bf16 %v4264_v5  ;;  %v3597_v44 = vunpack.c.h.bf16 %v4291_v34  ;;  %v4255_v45 = vld [vmem:[#allocation3 + $0x18] sm:$0xff]   ;;  %v4297_v17 = vld [vmem:[#allocation3 + $0x168] sm:$0xff]   ;;  %v4262_v20 = vld [vmem:[#allocation3 + $0x50] sm:$0xff]  }
 0x335   :  { %4526 = vmatpush3.msra.mxu1 %v3468_v4  ;;  %v3457_v6 = vunpack.c.h.bf16 %v4256_v39  ;;  %v3596_v30 = vunpack.c.l.bf16 %v4291_v34  ;;  %v3488_v8 = vunpack.c.l.bf16 %v4264_v5  ;;  %v3625_v49 = vunpack.c.h.bf16 %v4298_v61  ;;  %v4289_v27 = vld [vmem:[#allocation3 + $0x128] sm:$0xff]   ;;  %v4254_v23 = vld [vmem:[#allocation3 + $0x10] sm:$0xff]   ;;  %v4296_v58 = vld [vmem:[#allocation3 + $0x160] sm:$0xff]  }
 0x336   :  { %4527 = vmatprep.subr.mxu1 %v3497_v31  ;;  %v5801_v60 = vrot.slane %v5797_v14, %v5794_v19  ;;  %4593 = vmatprep.subr.mxu0 %v3629_v47  ;;  %v3456_v10 = vunpack.c.l.bf16 %v4256_v39  ;;  %v3593_v50 = vunpack.c.h.bf16 %v4290_v46  ;;  %v3485_v15 = vunpack.c.h.bf16 %v4263_v28  ;;  %v4288_v48 = vld [vmem:[#allocation3 + $0x120] sm:$0xff]   ;;  %v4261_v11 = vld [vmem:[#allocation3 + $0x48] sm:$0xff]   ;;  %v4295_v0 = vld [vmem:[#allocation3 + $0x158] sm:$0xff]  }
 0x337   :  { %4528 = vmatpush3.msra.mxu1 %v3465_v22  ;;  %4594 = vmatpush3.msra.mxu0 %v3597_v44  ;;  %v3624_v7 = vunpack.c.l.bf16 %v4298_v61  ;;  %v3453_v51 = vunpack.c.h.bf16 %v4255_v45  ;;  %v3592_v24 = vunpack.c.l.bf16 %v4290_v46  ;;  %v3484_v59 = vunpack.c.l.bf16 %v4263_v28  ;;  %v4253_v25 = vld [vmem:[#allocation3 + $0x8] sm:$0xff]   ;;  %v4287_v3 = vld [vmem:[#allocation3 + $0x118] sm:$0xff]   ;;  %v4260_v4 = vld [vmem:[#allocation3 + $0x40] sm:$0xff]  }
 0x338   :  { %4529 = vmatprep.subr.mxu1 %v3496_v9  ;;  %v2315_v43 = vcombine.high %v5801_v60, %v5801_v60  ;;  %4595 = vmatprep.subr.mxu0 %v3628_v42  ;;  %v3621_v52 = vunpack.c.h.bf16 %v4297_v17  ;;  %v3452_v32 = vunpack.c.l.bf16 %v4255_v45  ;;  %v3589_v53 = vunpack.c.h.bf16 %v4289_v27  ;;  %v3439_v22 = vld [vmem:[#allocation3] sm:$0xff]   ;;  %v4283_v34 = vld [vmem:[#allocation3 + $0xf8] sm:$0xff]   ;;  %v4293_v46 = vld [vmem:[#allocation3 + $0x148] sm:$0xff]  }
 0x339   :  { %4530 = vmatpush3.msra.mxu1 %v3464_v38  ;;  %4596 = vmatpush3.msra.mxu0 %v3596_v30  ;;  %v3481_v54 = vunpack.c.h.bf16 %v4262_v20  ;;  %v3620_v55 = vunpack.c.l.bf16 %v4297_v17  ;;  %v3449_v29 = vunpack.c.h.bf16 %v4254_v23  ;;  %v3588_v57 = vunpack.c.l.bf16 %v4289_v27  ;;  %v4294_v38 = vld [vmem:[#allocation3 + $0x150] sm:$0xff]  }
 0x33a   :  { %4531 = vmatprep.subr.mxu1 %v3493_v18  ;;  %2498 = vmatprep.mubr.f32.mxu1 %v2315_v43  ;;  %v3480_v62 = vunpack.c.l.bf16 %v4262_v20  ;;  %v3617_v1 = vunpack.c.h.bf16 %v4296_v58  ;;  %v3448_v41 = vunpack.c.l.bf16 %v4254_v23  ;;  %v3585_v13 = vunpack.c.h.bf16 %v4288_v48  ;;  %v4282_v28 = vld [vmem:[#allocation3 + $0xf0] sm:$0xff]   ;;  %v4281_v20 = vld [vmem:[#allocation3 + $0xe8] sm:$0xff]  }
 0x33b   :  { %4532 = vmatpush3.msra.mxu1 %v3461_v26  ;;  %4597 = vmatprep.subr.mxu0 %v3625_v49  ;;  %v3477_v37 = vunpack.c.h.bf16 %v4261_v11  ;;  %v3616_v2 = vunpack.c.l.bf16 %v4296_v58  ;;  %v3445_v36 = vunpack.c.h.bf16 %v4253_v25  ;;  %v3584_v31 = vunpack.c.l.bf16 %v4288_v48  ;;  %v4286_v26 = vld [vmem:[#allocation3 + $0x110] sm:$0xff]   ;;  %v4273_v23 = vld [vmem:[#allocation3 + $0xa8] sm:$0xff]   ;;  %v4280_v48 = vld [vmem:[#allocation3 + $0xe0] sm:$0xff]  }
 0x33c   :  { %4533 = vmatprep.subr.mxu1 %v3492_v33  ;;  %4598 = vmatpush3.msra.mxu0 %v3593_v50  ;;  %v3476_v63 = vunpack.c.l.bf16 %v4261_v11  ;;  %v3613_v12 = vunpack.c.h.bf16 %v4295_v0  ;;  %v3444_v9 = vunpack.c.l.bf16 %v4253_v25  ;;  %v3581_v16 = vunpack.c.h.bf16 %v4287_v3  ;;  %v4274_v43 = vld [vmem:[#allocation3 + $0xb0] sm:$0xff]  }
 0x33d   :  { %4534 = vmatpush3.msra.mxu1 %v3460_v40  ;;  %4599 = vmatprep.subr.mxu0 %v3624_v7  ;;  %v3473_v18 = vunpack.c.h.bf16 %v4260_v4  ;;  %v3612_v21 = vunpack.c.l.bf16 %v4295_v0  ;;  %v3441_v5 = vunpack.c.h.bf16 %v3439_v22  ;;  %v3580_v33 = vunpack.c.l.bf16 %v4287_v3  ;;  %v4275_v40 = vld [vmem:[#allocation3 + $0xb8] sm:$0xff]  }
 0x33e   :  { %4535 = vmatprep.subr.mxu1 %v3489_v35  ;;  %4600 = vmatpush3.msra.mxu0 %v3592_v24  ;;  %v3472_v39 = vunpack.c.l.bf16 %v4260_v4  ;;  %v3609_v42 = vunpack.c.h.bf16 %v4294_v38  ;;  %v3440_v47 = vunpack.c.l.bf16 %v3439_v22  ;;  %v3577_v61 = vunpack.c.h.bf16 %v4286_v26  ;;  %v4279_v3 = vld [vmem:[#allocation3 + $0xd8] sm:$0xff]  }
 0x33f   :  { %4536 = vmatpush3.msra.mxu1 %v3457_v6  ;;  %4601 = vmatprep.subr.mxu0 %v3621_v52  ;;  %v2300_v35 = vcombine.high %v5797_v14, %v5797_v14  ;;  %v3565_v44 = vunpack.c.h.bf16 %v4283_v34  ;;  %v3533_v6 = vunpack.c.h.bf16 %v4275_v40  ;;  %v3608_v30 = vunpack.c.l.bf16 %v4294_v38  ;;  %v4284_v52 = vld [vmem:[#allocation3 + $0x100] sm:$0xff]   ;;  %v4271_v4 = vld [vmem:[#allocation3 + $0x98] sm:$0xff]   ;;  %v4322_v38 = vld [vmem:[#allocation3 + $0x230] sm:$0xff]  }
 0x340   :  { %4537 = vmatprep.subr.mxu1 %v3488_v8  ;;  %4602 = vmatpush3.msra.mxu0 %v3589_v53  ;;  %v4285_v8 = vld [vmem:[#allocation3 + $0x108] sm:$0xff]   ;;  %v3564_v45 = vunpack.c.l.bf16 %v4283_v34  ;;  %v3576_v49 = vunpack.c.l.bf16 %v4286_v26  ;;  %v3605_v50 = vunpack.c.h.bf16 %v4293_v46  ;;  %v3561_v14 = vunpack.c.h.bf16 %v4282_v28  ;;  %v4270_v34 = vld [vmem:[#allocation3 + $0x90] sm:$0xff]  }
 0x341   :  { %4538 = vmatpush3.msra.mxu1 %v3456_v10  ;;  %4603 = vmatprep.subr.mxu0 %v3620_v55  ;;  %v3532_v10 = vunpack.c.l.bf16 %v4275_v40  ;;  %v3573_v17 = vunpack.c.h.bf16 %v4285_v8  ;;  %v5809_v7 = vrot.slane %v2300_v35, %v5794_v19  ;;  %v5812_v27 = vunpack.c.h.bf16 %v5791_v56  ;;  %v4321_v35 = vld [vmem:[#allocation3 + $0x228] sm:$0xff]  }
 0x342   :  { %4539 = vmatprep.subr.mxu1 %v3485_v15  ;;  %4604 = vmatpush3.msra.mxu0 %v3588_v57  ;;  %v4292_v15 = vld [vmem:[#allocation3 + $0x140] sm:$0xff]   ;;  %v3604_v24 = vunpack.c.l.bf16 %v4293_v46  ;;  %v3557_v58 = vunpack.c.h.bf16 %v4281_v20  ;;  %v3525_v55 = vunpack.c.h.bf16 %v4273_v23  ;;  %v3556_v11 = vunpack.c.l.bf16 %v4281_v20  ;;  %v4277_v46 = vld [vmem:[#allocation3 + $0xc8] sm:$0xff]  }
 0x343   :  { %4540 = vmatpush3.msra.mxu1 %v3453_v51  ;;  %4605 = vmatprep.subr.mxu0 %v3617_v1  ;;  %v3529_v51 = vunpack.c.h.bf16 %v4274_v43  ;;  %v3601_v53 = vunpack.c.h.bf16 %v4292_v15  ;;  %v2316_v56 = vcombine.high %v5809_v7, %v5809_v7  ;;  %v4272_v57 = vld [vmem:[#allocation3 + $0xa0] sm:$0xff]   ;;  %v3524_v25 = vunpack.c.l.bf16 %v4273_v23 }
 0x344   :  { %4541 = vmatprep.subr.mxu1 %v3484_v59  ;;  %4606 = vmatpush3.msra.mxu0 %v3585_v13  ;;  %v3560_v59 = vunpack.c.l.bf16 %v4282_v28  ;;  %v3568_v1 = vunpack.c.l.bf16 %v4284_v52  ;;  %v3553_v13 = vunpack.c.h.bf16 %v4280_v48  ;;  %v3721_v40 = vunpack.c.h.bf16 %v4322_v38 }
 0x345   :  { %4542 = vmatpush3.msra.mxu1 %v3452_v32  ;;  %4607 = vmatprep.subr.mxu0 %v3616_v2  ;;  %v3528_v32 = vunpack.c.l.bf16 %v4274_v43  ;;  %v3521_v2 = vunpack.c.h.bf16 %v4272_v57  ;;  %v3717_v43 = vunpack.c.h.bf16 %v4321_v35  ;;  %v3540_v20 = vunpack.c.l.bf16 %v4277_v46 }
 0x346   :  { %4543 = vmatprep.subr.mxu1 %v3481_v54  ;;  %4608 = vmatpush3.msra.mxu0 %v3584_v31  ;;  %v2324_v54 = vrot.slane %v5812_v27, %v5794_v19  ;;  %vm5057_vm3 = vmmov 0  }
 0x347   :  { %4544 = vmatpush3.msra.mxu1 %v3449_v29  ;;  %4609 = vmatprep.subr.mxu0 %v3613_v12  ;;  %v3569_v29 = vunpack.c.h.bf16 %v4284_v52  ;;  %v4330_v12 = vld [vmem:[#allocation3 + $0x270] sm:$0xff]   ;;  %v4327_v52 = vld [vmem:[#allocation3 + $0x258] sm:$0xff]  }
 0x348   :  { %4545 = vmatprep.subr.mxu1 %v3480_v62  ;;  %4610 = vmatpush3.msra.mxu0 %v3581_v16  ;;  %v3600_v62 = vunpack.c.l.bf16 %v4292_v15  ;;  %v2332_v0 = vcombine.high %v2324_v54, %v2324_v54  ;;  %v4276_v15 = vld [vmem:[#allocation3 + $0xc0] sm:$0xff]  }
 0x349   :  { %4546 = vmatpush3.msra.mxu1 %v3448_v41  ;;  %4611 = vmatprep.subr.mxu0 %v3612_v21  ;;  %v4331_v41 = vld [vmem:[#allocation3 + $0x278] sm:$0xff]   ;;  %v4278_v21 = vld [vmem:[#allocation3 + $0xd0] sm:$0xff]  }
 0x34a   :  { %4547 = vmatprep.subr.mxu1 %v3477_v37  ;;  %4612 = vmatpush3.msra.mxu0 %v3580_v33  ;;  %v4323_v37 = vld [vmem:[#allocation3 + $0x238] sm:$0xff]   ;;  %v3757_v31 = vunpack.c.h.bf16 %v4331_v41  ;;  %v3756_v16 = vunpack.c.l.bf16 %v4331_v41  ;;  %v3753_v33 = vunpack.c.h.bf16 %v4330_v12  ;;  %v3544_v28 = vunpack.c.l.bf16 %v4278_v21 }
 0x34b   :  { %4548 = vmatpush3.msra.mxu1 %v3445_v36  ;;  %4613 = vmatprep.subr.mxu0 %v3609_v42  ;;  %v3552_v36 = vunpack.c.l.bf16 %v4280_v48  ;;  %v3725_v22 = vunpack.c.h.bf16 %v4323_v37  ;;  %v3724_v26 = vunpack.c.l.bf16 %v4323_v37  ;;  %v4329_v42 = vld [vmem:[#allocation3 + $0x268] sm:$0xff]   ;;  %v3536_v48 = vunpack.c.l.bf16 %v4276_v15  ;;  %v4318_v37 = vld [vmem:[#allocation3 + $0x210] sm:$0xff]  }
 0x34c   :  { %4549 = vmatprep.subr.mxu1 %v3476_v63  ;;  %4614 = vmatpush3.msra.mxu0 %v3577_v61  ;;  %v3520_v63 = vunpack.c.l.bf16 %v4272_v57  ;;  %v3752_v61 = vunpack.c.l.bf16 %v4330_v12  ;;  %v3705_v12 = vunpack.c.h.bf16 %v4318_v37 }
 0x34d   :  { %4550 = vmatpush3.msra.mxu1 %v3444_v9  ;;  %4615 = vmatprep.subr.mxu0 %v3608_v30  ;;  %v3549_v9 = vunpack.c.h.bf16 %v4279_v3  ;;  %v4269_v30 = vld [vmem:[#allocation3 + $0x88] sm:$0xff]  }
 0x34e   :  { %4551 = vmatprep.subr.mxu1 %v3473_v18  ;;  %4616 = vmatpush3.msra.mxu0 %v3576_v49  ;;  %v3517_v18 = vunpack.c.h.bf16 %v4271_v4  ;;  %v4328_v49 = vld [vmem:[#allocation3 + $0x260] sm:$0xff]   ;;  %v3508_v23 = vunpack.c.l.bf16 %v4269_v30 }
 0x34f   :  { %4552 = vmatpush3.msra.mxu1 %v3441_v5  ;;  %4617 = vmatprep.subr.mxu0 %v3605_v50  ;;  %v3548_v5 = vunpack.c.l.bf16 %v4279_v3  ;;  %v3748_v50 = vunpack.c.l.bf16 %v4329_v42  ;;  %v4306_v3 = vld [vmem:[#allocation3 + $0x1b0] sm:$0xff]  }
 0x350   :  { %4553 = vmatprep.subr.mxu1 %v3472_v39  ;;  %4618 = vmatpush3.msra.mxu0 %v3573_v17  ;;  %v3516_v39 = vunpack.c.l.bf16 %v4271_v4  ;;  %v3509_v17 = vunpack.c.h.bf16 %v4269_v30 }
 0x351   :  { %4554 = vmatpush3.msra.mxu1 %v3440_v47  ;;  %4619 = vmatprep.subr.mxu0 %v3604_v24  ;;  %v3545_v47 = vunpack.c.h.bf16 %v4278_v21  ;;  %v4268_v24 = vld [vmem:[#allocation3 + $0x80] sm:$0xff]   ;;  %v4317_v21 = vld [vmem:[#allocation3 + $0x208] sm:$0xff]  }
 0x352   :  { %2499 = vmatmul.mubr.f32.vlgmr.msra.gmra.mxu1 %v5801_v60  ;;  %4558 = vmatprep.subr.mxu1 %v3565_v44  ;;  %v3572_v60 = vunpack.c.l.bf16 %v4285_v8  ;;  %v3513_v44 = vunpack.c.h.bf16 %v4270_v34  ;;  %v3749_v8 = vunpack.c.h.bf16 %v4329_v42  ;;  %v3504_v57 = vunpack.c.l.bf16 %v4268_v24  ;;  %v4324_v42 = vld [vmem:[#allocation3 + $0x240] sm:$0xff]  }
 0x353   :  { %4559 = vmatpush3.msra.mxu1 %v3533_v6  ;;  %2568 = vmatprep.mubr.f32.mxu1 %v2316_v56  ;;  %v3720_v6 = vunpack.c.l.bf16 %v4322_v38  ;;  %v3505_v56 = vunpack.c.h.bf16 %v4268_v24  ;;  %v4313_v38 = vld [vmem:[#allocation3 + $0x1e8] sm:$0xff]   ;;  %v3700_v30 = vunpack.c.l.bf16 %v4317_v21  ;;  %v3728_v24 = vunpack.c.l.bf16 %v4324_v42 }
 0x354   :  { %4560 = vmatprep.subr.mxu1 %v3564_v45  ;;  %4620 = vmatpush3.msra.mxu0 %v3572_v60  ;;  %v3512_v45 = vunpack.c.l.bf16 %v4270_v34  ;;  %v4305_v34 = vld [vmem:[#allocation3 + $0x1a8] sm:$0xff]  }
 0x355   :  { %4561 = vmatpush3.msra.mxu1 %v3532_v10  ;;  %4621 = vmatprep.subr.mxu0 %v3601_v53  ;;  %v3541_v10 = vunpack.c.h.bf16 %v4277_v46  ;;  %v3744_v53 = vunpack.c.l.bf16 %v4328_v49 }
 0x356   :  { %4562 = vmatprep.subr.mxu1 %v3561_v14  ;;  %4622 = vmatpush3.msra.mxu0 %v3569_v29  ;;  %v4320_v14 = vld [vmem:[#allocation3 + $0x220] sm:$0xff]   ;;  %v4307_v29 = vld [vmem:[#allocation3 + $0x1b8] sm:$0xff]  }
 0x357   :  { %4563 = vmatpush3.msra.mxu1 %v3529_v51  ;;  %4623 = vmatprep.subr.mxu0 %v3600_v62  ;;  %v3716_v51 = vunpack.c.l.bf16 %v4321_v35  ;;  %v3713_v60 = vunpack.c.h.bf16 %v4320_v14  ;;  %v3661_v41 = vunpack.c.h.bf16 %v4307_v29  ;;  %v3660_v4 = vunpack.c.l.bf16 %v4307_v29 }
 0x358   :  { %4564 = vmatprep.subr.mxu1 %v3560_v59  ;;  %4624 = vmatpush3.msra.mxu0 %v3568_v1  ;;  %v3745_v59 = vunpack.c.h.bf16 %v4328_v49  ;;  %v4326_v1 = vld [vmem:[#allocation3 + $0x250] sm:$0xff]   ;;  %v3653_v35 = vunpack.c.h.bf16 %v4305_v34 }
 0x359   :  { %4565 = vmatpush3.msra.mxu1 %v3528_v32  ;;  %2638 = vmatprep.mubr.f32.mxu0 %v2332_v0  ;;  %v3537_v32 = vunpack.c.h.bf16 %v4276_v15  ;;  %v3740_v0 = vunpack.c.l.bf16 %v4327_v52 }
 0x35a   :  { %4566 = vmatprep.subr.mxu1 %v3557_v58  ;;  %2639 = vmatmul.mubr.f32.vlgmr.msra.gmra.mxu0 %v2324_v54  ;;  %v4319_v58 = vld [vmem:[#allocation3 + $0x218] sm:$0xff]  }
 0x35b   :  { %4567 = vmatpush3.msra.mxu1 %v3525_v55  ;;  %4663 = vmatprep.subr.mxu0 %v3757_v31  ;;  %v4315_v54 = vld [vmem:[#allocation3 + $0x1f8] sm:$0xff]   ;;  %v3712_v55 = vunpack.c.l.bf16 %v4320_v14  ;;  %v3709_v62 = vunpack.c.h.bf16 %v4319_v58  ;;  %v3737_v31 = vunpack.c.h.bf16 %v4326_v1 }
 0x35c   :  { %4568 = vmatprep.subr.mxu1 %v3556_v11  ;;  %4664 = vmatpush3.msra.mxu0 %v3725_v22  ;;  %v3741_v11 = vunpack.c.h.bf16 %v4327_v52 }
 0x35d   :  { %4569 = vmatpush3.msra.mxu1 %v3524_v25  ;;  %4665 = vmatprep.subr.mxu0 %v3756_v16  ;;  %v3693_v25 = vunpack.c.h.bf16 %v4315_v54  ;;  %v3657_v16 = vunpack.c.h.bf16 %v4306_v3 }
 0x35e   :  { %4570 = vmatprep.subr.mxu1 %v3553_v13  ;;  %4666 = vmatpush3.msra.mxu0 %v3724_v26  ;;  %v4314_v13 = vld [vmem:[#allocation3 + $0x1f0] sm:$0xff]  }
 0x35f   :  { %4571 = vmatpush3.msra.mxu1 %v3521_v2  ;;  %4667 = vmatprep.subr.mxu0 %v3753_v33  ;;  %v3692_v2 = vunpack.c.l.bf16 %v4315_v54  ;;  %v3689_v22 = vunpack.c.h.bf16 %v4314_v13  ;;  %v5821_v26 = vld [vmem:[#allocation2 + $0x8] sm:$0xff]  ;;  %v3656_v33 = vunpack.c.l.bf16 %v4306_v3 }
 0x360   :  { %4572 = vmatprep.subr.mxu1 %v3552_v36  ;;  %4668 = vmatpush3.msra.mxu0 %v3721_v40  ;;  %v3708_v36 = vunpack.c.l.bf16 %v4319_v58  ;;  %v3701_v40 = vunpack.c.h.bf16 %v4317_v21  ;;  %v4300_v21 = vld [vmem:[#allocation3 + $0x180] sm:$0xff]  }
 0x361   :  { %4573 = vmatpush3.msra.mxu1 %v3520_v63  ;;  %4669 = vmatprep.subr.mxu0 %v3752_v61  ;;  %v2317_v63 = vcombine.high %v5812_v27, %v5812_v27  ;;  %v5827_v61 = vunpack.c.l.bf16 %v5821_v26 }
 0x362   :  { %4574 = vmatprep.subr.mxu1 %v3549_v9  ;;  %4670 = vmatpush3.msra.mxu0 %v3720_v6  ;;  %v4325_v9 = vld [vmem:[#allocation3 + $0x248] sm:$0xff]   ;;  %v3684_v6 = vunpack.c.l.bf16 %v4313_v38 }
 0x363   :  { %4575 = vmatpush3.msra.mxu1 %v3517_v18  ;;  %4671 = vmatprep.subr.mxu0 %v3749_v8  ;;  %v3736_v18 = vunpack.c.l.bf16 %v4326_v1  ;;  %v3733_v27 = vunpack.c.h.bf16 %v4325_v9  ;;  %v3732_v46 = vunpack.c.l.bf16 %v4325_v9  ;;  %v4316_v8 = vld [vmem:[#allocation3 + $0x200] sm:$0xff]   ;;  %v4354_v1 = vld [vmem:[#allocation3 + $0x330] sm:$0xff]  }
 0x364   :  { %4576 = vmatprep.subr.mxu1 %v3548_v5  ;;  %4672 = vmatpush3.msra.mxu0 %v3717_v43  ;;  %v3688_v5 = vunpack.c.l.bf16 %v4314_v13  ;;  %v3729_v43 = vunpack.c.h.bf16 %v4324_v42  ;;  %v3697_v15 = vunpack.c.h.bf16 %v4316_v8  ;;  %v4309_v13 = vld [vmem:[#allocation3 + $0x1c8] sm:$0xff]   ;;  %v3633_v42 = vunpack.c.h.bf16 %v4300_v21 }
 0x365   :  { %4577 = vmatpush3.msra.mxu1 %v3516_v39  ;;  %4673 = vmatprep.subr.mxu0 %v3748_v50  ;;  %v3685_v39 = vunpack.c.h.bf16 %v4313_v38  ;;  %v2341_v50 = vrot.slane %v5827_v61, %v5794_v19  ;;  %v3848_v38 = vunpack.c.l.bf16 %v4354_v1 }
 0x366   :  { %4578 = vmatprep.subr.mxu1 %v3545_v47  ;;  %4674 = vmatpush3.msra.mxu0 %v3716_v51  ;;  %v5824_v47 = vrot.slane %v2317_v63, %v5794_v19  ;;  %v3669_v63 = vunpack.c.h.bf16 %v4309_v13 }
 0x367   :  { %4579 = vmatpush3.msra.mxu1 %v3513_v44  ;;  %4675 = vmatprep.subr.mxu0 %v3745_v59  ;;  %v4312_v44 = vld [vmem:[#allocation3 + $0x1e0] sm:$0xff]  }
 0x368   :  { %4580 = vmatprep.subr.mxu1 %v3544_v28  ;;  %4676 = vmatpush3.msra.mxu0 %v3713_v60  ;;  %v4304_v28 = vld [vmem:[#allocation3 + $0x1a0] sm:$0xff]   ;;  %v3681_v49 = vunpack.c.h.bf16 %v4312_v44  ;;  %v3680_v51 = vunpack.c.l.bf16 %v4312_v44  ;;  %v4363_v60 = vld [vmem:[#allocation3 + $0x378] sm:$0xff]  }
 0x369   :  { %4581 = vmatpush3.msra.mxu1 %v3512_v45  ;;  %4677 = vmatprep.subr.mxu0 %v3744_v53  ;;  %v3652_v45 = vunpack.c.l.bf16 %v4305_v34  ;;  %v3649_v14 = vunpack.c.h.bf16 %v4304_v28  ;;  %v3648_v59 = vunpack.c.l.bf16 %v4304_v28  ;;  %v4355_v53 = vld [vmem:[#allocation3 + $0x338] sm:$0xff]  }
 0x36a   :  { %4582 = vmatprep.subr.mxu1 %v3541_v10  ;;  %4678 = vmatpush3.msra.mxu0 %v3712_v55  ;;  %v2333_v10 = vcombine.high %v5824_v47, %v5824_v47  ;;  %v4302_v55 = vld [vmem:[#allocation3 + $0x190] sm:$0xff]  }
 0x36b   :  { %4583 = vmatpush3.msra.mxu1 %v3509_v17  ;;  %4679 = vmatprep.subr.mxu0 %v3741_v11  ;;  %v4311_v17 = vld [vmem:[#allocation3 + $0x1d8] sm:$0xff]   ;;  %v3853_v11 = vunpack.c.h.bf16 %v4355_v53 }
 0x36c   :  { %4584 = vmatprep.subr.mxu1 %v3540_v20  ;;  %4680 = vmatpush3.msra.mxu0 %v3709_v62  ;;  %v4303_v20 = vld [vmem:[#allocation3 + $0x198] sm:$0xff]   ;;  %v3677_v52 = vunpack.c.h.bf16 %v4311_v17  ;;  %v3676_v54 = vunpack.c.l.bf16 %v4311_v17 }
 0x36d   :  { %4585 = vmatpush3.msra.mxu1 %v3508_v23  ;;  %4681 = vmatprep.subr.mxu0 %v3740_v0  ;;  %v3696_v23 = vunpack.c.l.bf16 %v4316_v8  ;;  %v3645_v58 = vunpack.c.h.bf16 %v4303_v20  ;;  %v3644_v29 = vunpack.c.l.bf16 %v4303_v20  ;;  %v3852_v0 = vunpack.c.l.bf16 %v4355_v53 }
 0x36e   :  { %4586 = vmatprep.subr.mxu1 %v3537_v32  ;;  %4682 = vmatpush3.msra.mxu0 %v3708_v36  ;;  %v2349_v32 = vcombine.high %v2341_v50, %v2341_v50  ;;  %v3640_v36 = vunpack.c.l.bf16 %v4302_v55 }
 0x36f   :  { %4587 = vmatpush3.msra.mxu1 %v3505_v56  ;;  %4683 = vmatprep.subr.mxu0 %v3737_v31  ;;  %v4310_v56 = vld [vmem:[#allocation3 + $0x1d0] sm:$0xff]   ;;  %v4361_v31 = vld [vmem:[#allocation3 + $0x368] sm:$0xff]  }
 0x370   :  { %4588 = vmatprep.subr.mxu1 %v3536_v48  ;;  %4684 = vmatpush3.msra.mxu0 %v3705_v12  ;;  %v3885_v48 = vunpack.c.h.bf16 %v4363_v60  ;;  %v3673_v62 = vunpack.c.h.bf16 %v4310_v56  ;;  %v4353_v12 = vld [vmem:[#allocation3 + $0x328] sm:$0xff]  }
 0x371   :  { %4589 = vmatpush3.msra.mxu1 %v3504_v57  ;;  %4685 = vmatprep.subr.mxu0 %v3736_v18  ;;  %v4362_v57 = vld [vmem:[#allocation3 + $0x370] sm:$0xff]   ;;  %v3668_v18 = vunpack.c.l.bf16 %v4309_v13  ;;  %v3844_v44 = vunpack.c.l.bf16 %v4353_v12  ;;  %v4349_v13 = vld [vmem:[#allocation3 + $0x308] sm:$0xff]  }
 0x372   :  { %2569 = vmatmul.mubr.f32.vlgmr.msra.gmra.mxu1 %v5809_v7  ;;  %4628 = vmatprep.subr.mxu1 %v3693_v25  ;;  %v3704_v7 = vunpack.c.l.bf16 %v4318_v37  ;;  %v3884_v25 = vunpack.c.l.bf16 %v4363_v60  ;;  %v3672_v37 = vunpack.c.l.bf16 %v4310_v56  ;;  %v3881_v3 = vunpack.c.h.bf16 %v4362_v57  ;;  %v4358_v60 = vld [vmem:[#allocation3 + $0x350] sm:$0xff]  }
 0x373   :  { %4629 = vmatpush3.msra.mxu1 %v3661_v41  ;;  %2708 = vmatprep.mubr.f32.mxu1 %v2333_v10  ;;  %v3641_v41 = vunpack.c.h.bf16 %v4302_v55  ;;  %v4346_v10 = vld [vmem:[#allocation3 + $0x2f0] sm:$0xff]  }
 0x374   :  { %4630 = vmatprep.subr.mxu1 %v3692_v2  ;;  %4686 = vmatpush3.msra.mxu0 %v3704_v7  ;;  %v4301_v2 = vld [vmem:[#allocation3 + $0x188] sm:$0xff]   ;;  %v3845_v7 = vunpack.c.h.bf16 %v4353_v12  ;;  %v3816_v56 = vunpack.c.l.bf16 %v4346_v10 }
 0x375   :  { %4631 = vmatpush3.msra.mxu1 %v3660_v4  ;;  %4687 = vmatprep.subr.mxu0 %v3733_v27  ;;  %v3849_v4 = vunpack.c.h.bf16 %v4354_v1  ;;  %v3637_v9 = vunpack.c.h.bf16 %v4301_v2  ;;  %v3636_v34 = vunpack.c.l.bf16 %v4301_v2  ;;  %v4344_v1 = vld [vmem:[#allocation3 + $0x2e0] sm:$0xff]  }
 0x376   :  { %4632 = vmatprep.subr.mxu1 %v3689_v22  ;;  %4688 = vmatpush3.msra.mxu0 %v3701_v40  ;;  %v3880_v22 = vunpack.c.l.bf16 %v4362_v57  ;;  %v4352_v40 = vld [vmem:[#allocation3 + $0x320] sm:$0xff]   ;;  %v4357_v57 = vld [vmem:[#allocation3 + $0x348] sm:$0xff]  }
 0x377   :  { %4633 = vmatpush3.msra.mxu1 %v3657_v16  ;;  %4689 = vmatprep.subr.mxu0 %v3732_v46  ;;  %v4308_v16 = vld [vmem:[#allocation3 + $0x1c0] sm:$0xff]   ;;  %v3841_v8 = vunpack.c.h.bf16 %v4352_v40 }
 0x378   :  { %4634 = vmatprep.subr.mxu1 %v3688_v5  ;;  %4690 = vmatpush3.msra.mxu0 %v3700_v30  ;;  %v3877_v5 = vunpack.c.h.bf16 %v4361_v31  ;;  %v3665_v27 = vunpack.c.h.bf16 %v4308_v16  ;;  %v3664_v46 = vunpack.c.l.bf16 %v4308_v16  ;;  %v3632_v30 = vunpack.c.l.bf16 %v4300_v21 }
 0x379   :  { %4635 = vmatpush3.msra.mxu1 %v3656_v33  ;;  %4691 = vmatprep.subr.mxu0 %v3729_v43  ;;  %v4360_v33 = vld [vmem:[#allocation3 + $0x360] sm:$0xff]   ;;  %v4359_v43 = vld [vmem:[#allocation3 + $0x358] sm:$0xff]   ;;  %v3860_v16 = vunpack.c.l.bf16 %v4357_v57  ;;  %v3828_v21 = vunpack.c.l.bf16 %v4349_v13 }
 0x37a   :  { %4636 = vmatprep.subr.mxu1 %v3685_v39  ;;  %4692 = vmatpush3.msra.mxu0 %v3697_v15  ;;  %v3876_v39 = vunpack.c.l.bf16 %v4361_v31  ;;  %v3873_v28 = vunpack.c.h.bf16 %v4360_v33  ;;  %v4338_v15 = vld [vmem:[#allocation3 + $0x2b0] sm:$0xff]   ;;  %v3868_v53 = vunpack.c.l.bf16 %v4359_v43  ;;  %v3829_v31 = vunpack.c.h.bf16 %v4349_v13 }
 0x37b   :  { %4637 = vmatpush3.msra.mxu1 %v3653_v35  ;;  %4693 = vmatprep.subr.mxu0 %v3728_v24  ;;  %v4347_v35 = vld [vmem:[#allocation3 + $0x2f8] sm:$0xff]   ;;  %v3869_v24 = vunpack.c.h.bf16 %v4359_v43 }
 0x37c   :  { %4638 = vmatprep.subr.mxu1 %v3684_v6  ;;  %4694 = vmatpush3.msra.mxu0 %v3696_v23  ;;  %v4339_v6 = vld [vmem:[#allocation3 + $0x2b8] sm:$0xff]   ;;  %v3820_v17 = vunpack.c.l.bf16 %v4347_v35 }
 0x37d   :  { %4639 = vmatpush3.msra.mxu1 %v3652_v45  ;;  %2778 = vmatprep.mubr.f32.mxu0 %v2349_v32  ;;  %v3821_v45 = vunpack.c.h.bf16 %v4347_v35  ;;  %v3788_v20 = vunpack.c.l.bf16 %v4339_v6  ;;  %v4345_v32 = vld [vmem:[#allocation3 + $0x2e8] sm:$0xff]   ;;  %v4387_v43 = vld [vmem:[#allocation3 + $0x438] sm:$0xff]  }
 0x37e   :  { %4640 = vmatprep.subr.mxu1 %v3681_v49  ;;  %2779 = vmatmul.mubr.f32.vlgmr.msra.gmra.mxu0 %v2341_v50  ;;  %v3789_v49 = vunpack.c.h.bf16 %v4339_v6  ;;  %v3872_v50 = vunpack.c.l.bf16 %v4360_v33 }
 0x37f   :  { %4641 = vmatpush3.msra.mxu1 %v3649_v14  ;;  %4733 = vmatprep.subr.mxu0 %v3885_v48  ;;  %v4351_v14 = vld [vmem:[#allocation3 + $0x318] sm:$0xff]   ;;  %v3784_v48 = vunpack.c.l.bf16 %v4338_v15 }
 0x380   :  { %4642 = vmatprep.subr.mxu1 %v3680_v51  ;;  %4734 = vmatpush3.msra.mxu0 %v3853_v11  ;;  %v3840_v51 = vunpack.c.l.bf16 %v4352_v40  ;;  %v3837_v23 = vunpack.c.h.bf16 %v4351_v14  ;;  %v3836_v55 = vunpack.c.l.bf16 %v4351_v14  ;;  %v4342_v40 = vld [vmem:[#allocation3 + $0x2d0] sm:$0xff]   ;;  %v4333_v14 = vld [vmem:[#allocation3 + $0x288] sm:$0xff]  }
 0x381   :  { %4643 = vmatpush3.msra.mxu1 %v3648_v59  ;;  %4735 = vmatprep.subr.mxu0 %v3884_v25  ;;  %v3817_v59 = vunpack.c.h.bf16 %v4346_v10  ;;  %v4341_v10 = vld [vmem:[#allocation3 + $0x2c8] sm:$0xff]  }
 0x382   :  { %4644 = vmatprep.subr.mxu1 %v3677_v52  ;;  %4736 = vmatpush3.msra.mxu0 %v3852_v0  ;;  %v3785_v52 = vunpack.c.h.bf16 %v4338_v15  ;;  %v3812_v0 = vunpack.c.l.bf16 %v4345_v32 }
 0x383   :  { %4645 = vmatpush3.msra.mxu1 %v3645_v58  ;;  %4737 = vmatprep.subr.mxu0 %v3881_v3  ;;  %v4350_v58 = vld [vmem:[#allocation3 + $0x310] sm:$0xff]  }
 0x384   :  { %4646 = vmatprep.subr.mxu1 %v3676_v54  ;;  %4738 = vmatpush3.msra.mxu0 %v3849_v4  ;;  %v4337_v54 = vld [vmem:[#allocation3 + $0x2a8] sm:$0xff]   ;;  %v3833_v11 = vunpack.c.h.bf16 %v4350_v58  ;;  %v3832_v2 = vunpack.c.l.bf16 %v4350_v58  ;;  %v3809_v4 = vunpack.c.h.bf16 %v4344_v1  ;;  %v4332_v58 = vld [vmem:[#allocation3 + $0x280] sm:$0xff]  }
 0x385   :  { %4647 = vmatpush3.msra.mxu1 %v3644_v29  ;;  %4739 = vmatprep.subr.mxu0 %v3880_v22  ;;  %v3865_v29 = vunpack.c.h.bf16 %v4358_v60  ;;  %v3781_v25 = vunpack.c.h.bf16 %v4337_v54  ;;  %v3780_v3 = vunpack.c.l.bf16 %v4337_v54  ;;  %v5840_v22 = vunpack.c.h.bf16 %v5821_v26 }
 0x386   :  { %4648 = vmatprep.subr.mxu1 %v3673_v62  ;;  %4740 = vmatpush3.msra.mxu0 %v3848_v38  ;;  %v2334_v62 = vcombine.high %v5827_v61, %v5827_v61  ;;  %v4356_v61 = vld [vmem:[#allocation3 + $0x340] sm:$0xff]   ;;  %v3808_v38 = vunpack.c.l.bf16 %v4344_v1  ;;  %v3764_v54 = vunpack.c.l.bf16 %v4333_v14 }
 0x387   :  { %4649 = vmatpush3.msra.mxu1 %v3641_v41  ;;  %4741 = vmatprep.subr.mxu0 %v3877_v5  ;;  %v3864_v41 = vunpack.c.l.bf16 %v4358_v60  ;;  %v4348_v5 = vld [vmem:[#allocation3 + $0x300] sm:$0xff]   ;;  %v3765_v60 = vunpack.c.h.bf16 %v4333_v14 }
 0x388   :  { %4650 = vmatprep.subr.mxu1 %v3672_v37  ;;  %4742 = vmatpush3.msra.mxu0 %v3845_v7  ;;  %v4336_v37 = vld [vmem:[#allocation3 + $0x2a0] sm:$0xff]   ;;  %v3857_v7 = vunpack.c.h.bf16 %v4356_v61 }
 0x389   :  { %4651 = vmatpush3.msra.mxu1 %v3640_v36  ;;  %4743 = vmatprep.subr.mxu0 %v3876_v39  ;;  %v3861_v36 = vunpack.c.h.bf16 %v4357_v57  ;;  %v3777_v12 = vunpack.c.h.bf16 %v4336_v37  ;;  %v3761_v57 = vunpack.c.h.bf16 %v4332_v58 }
 0x38a   :  { %4652 = vmatprep.subr.mxu1 %v3669_v63  ;;  %4744 = vmatpush3.msra.mxu0 %v3844_v44  ;;  %v5837_v63 = vrot.slane %v2334_v62, %v5794_v19  ;;  %v4334_v44 = vld [vmem:[#allocation3 + $0x290] sm:$0xff]   ;;  %v4379_v62 = vld [vmem:[#allocation3 + $0x3f8] sm:$0xff]  }
 0x38b   :  { %4653 = vmatpush3.msra.mxu1 %v3637_v9  ;;  %4745 = vmatprep.subr.mxu0 %v3873_v28  ;;  %v4343_v9 = vld [vmem:[#allocation3 + $0x2d8] sm:$0xff]   ;;  %v3824_v28 = vunpack.c.l.bf16 %v4348_v5  ;;  %v3768_v15 = vunpack.c.l.bf16 %v4334_v44 }
 0x38c   :  { %4654 = vmatprep.subr.mxu1 %v3668_v18  ;;  %4746 = vmatpush3.msra.mxu0 %v3841_v8  ;;  %v4335_v18 = vld [vmem:[#allocation3 + $0x298] sm:$0xff]   ;;  %v3805_v33 = vunpack.c.h.bf16 %v4343_v9  ;;  %v2350_v26 = vcombine.high %v5837_v63, %v5837_v63  ;;  %v3804_v35 = vunpack.c.l.bf16 %v4343_v9  ;;  %v3801_v8 = vunpack.c.h.bf16 %v4342_v40  ;;  %v4370_v9 = vld [vmem:[#allocation3 + $0x3b0] sm:$0xff]  }
 0x38d   :  { %4655 = vmatpush3.msra.mxu1 %v3636_v34  ;;  %4747 = vmatprep.subr.mxu0 %v3872_v50  ;;  %v3776_v34 = vunpack.c.l.bf16 %v4336_v37  ;;  %v3773_v39 = vunpack.c.h.bf16 %v4335_v18  ;;  %v3772_v6 = vunpack.c.l.bf16 %v4335_v18  ;;  %v3800_v50 = vunpack.c.l.bf16 %v4342_v40  ;;  %v4369_v40 = vld [vmem:[#allocation3 + $0x3a8] sm:$0xff]  }
 0x38e   :  { %4656 = vmatprep.subr.mxu1 %v3665_v27  ;;  %4748 = vmatpush3.msra.mxu0 %v3840_v51  ;;  %v2358_v27 = vrot.slane %v5840_v22, %v5794_v19  ;;  %v3981_v51 = vunpack.c.h.bf16 %v4387_v43 }
 0x38f   :  { %4657 = vmatpush3.msra.mxu1 %v3633_v42  ;;  %4749 = vmatprep.subr.mxu0 %v3869_v24  ;;  %v3825_v42 = vunpack.c.h.bf16 %v4348_v5  ;;  %v3797_v24 = vunpack.c.h.bf16 %v4341_v10 }
 0x390   :  { %4658 = vmatprep.subr.mxu1 %v3664_v46  ;;  %4750 = vmatpush3.msra.mxu0 %v3837_v23  ;;  %v3856_v46 = vunpack.c.l.bf16 %v4356_v61  ;;  %v4386_v23 = vld [vmem:[#allocation3 + $0x430] sm:$0xff]   ;;  %v4384_v61 = vld [vmem:[#allocation3 + $0x420] sm:$0xff]  }
 0x391   :  { %4659 = vmatpush3.msra.mxu1 %v3632_v30  ;;  %4751 = vmatprep.subr.mxu0 %v3868_v53  ;;  %v4395_v30 = vld [vmem:[#allocation3 + $0x478] sm:$0xff]   ;;  %v3796_v53 = vunpack.c.l.bf16 %v4341_v10  ;;  %v3969_v5 = vunpack.c.h.bf16 %v4384_v61 }
 0x392   :  { %2709 = vmatmul.mubr.f32.vlgmr.msra.gmra.mxu1 %v5824_v47  ;;  %4698 = vmatprep.subr.mxu1 %v3821_v45  ;;  %v3813_v47 = vunpack.c.h.bf16 %v4345_v32  ;;  %v2366_v45 = vcombine.high %v2358_v27, %v2358_v27  ;;  %v3980_v32 = vunpack.c.l.bf16 %v4387_v43 }
 0x393   :  { %4699 = vmatpush3.msra.mxu1 %v3789_v49  ;;  %4752 = vmatpush3.msra.mxu0 %v3836_v55  ;;  %v3769_v49 = vunpack.c.h.bf16 %v4334_v44  ;;  %v3977_v55 = vunpack.c.h.bf16 %v4386_v23 }
 0x394   :  { %4700 = vmatprep.subr.mxu1 %v3820_v17  ;;  %4753 = vmatprep.subr.mxu0 %v3865_v29  ;;  %v4013_v17 = vunpack.c.h.bf16 %v4395_v30 }
 0x395   :  { %4701 = vmatpush3.msra.mxu1 %v3788_v20  ;;  %4754 = vmatpush3.msra.mxu0 %v3833_v11  ;;  %v4394_v20 = vld [vmem:[#allocation3 + $0x470] sm:$0xff]   ;;  %v4385_v11 = vld [vmem:[#allocation3 + $0x428] sm:$0xff]  }
 0x396   :  { %4702 = vmatprep.subr.mxu1 %v3817_v59  ;;  %4755 = vmatprep.subr.mxu0 %v3864_v41  ;;  %v4012_v59 = vunpack.c.l.bf16 %v4395_v30  ;;  %v4371_v41 = vld [vmem:[#allocation3 + $0x3b8] sm:$0xff]   ;;  %v3973_v37 = vunpack.c.h.bf16 %v4385_v11  ;;  %v4376_v30 = vld [vmem:[#allocation3 + $0x3e0] sm:$0xff]  }
 0x397   :  { %4703 = vmatpush3.msra.mxu1 %v3785_v52  ;;  %4756 = vmatpush3.msra.mxu0 %v3832_v2  ;;  %v4340_v52 = vld [vmem:[#allocation3 + $0x2c0] sm:$0xff]   ;;  %v3949_v2 = vunpack.c.h.bf16 %v4379_v62 }
 0x398   :  { %4704 = vmatprep.subr.mxu1 %v3816_v56  ;;  %4757 = vmatprep.subr.mxu0 %v3861_v36  ;;  %v4009_v56 = vunpack.c.h.bf16 %v4394_v20  ;;  %v3793_v29 = vunpack.c.h.bf16 %v4340_v52  ;;  %v3792_v1 = vunpack.c.l.bf16 %v4340_v52  ;;  %v3917_v36 = vunpack.c.h.bf16 %v4371_v41  ;;  %v5849_v52 = vld [vmem:[#allocation2 + $0x10] sm:$0xff] }
 0x399   :  { %4705 = vmatpush3.msra.mxu1 %v3784_v48  ;;  %4758 = vmatpush3.msra.mxu0 %v3829_v31  ;;  %v4393_v48 = vld [vmem:[#allocation3 + $0x468] sm:$0xff]  }
 0x39a   :  { %4706 = vmatprep.subr.mxu1 %v3813_v47  ;;  %4759 = vmatprep.subr.mxu0 %v3860_v16  ;;  %v4008_v47 = vunpack.c.l.bf16 %v4394_v20  ;;  %v4005_v13 = vunpack.c.h.bf16 %v4393_v48  ;;  %v4004_v31 = vunpack.c.l.bf16 %v4393_v48  ;;  %v3972_v16 = vunpack.c.l.bf16 %v4385_v11  ;;  %v4388_v48 = vld [vmem:[#allocation3 + $0x440] sm:$0xff]  }
 0x39b   :  { %4707 = vmatpush3.msra.mxu1 %v3781_v25  ;;  %4760 = vmatpush3.msra.mxu0 %v3828_v21  ;;  %v3976_v25 = vunpack.c.l.bf16 %v4386_v23  ;;  %v2351_v20 = vcombine.high %v5840_v22, %v5840_v22 }
 0x39c   :  { %4708 = vmatprep.subr.mxu1 %v3812_v0  ;;  %4761 = vmatprep.subr.mxu0 %v3857_v7  ;;  %v3760_v0 = vunpack.c.l.bf16 %v4332_v58  ;;  %v3913_v7 = vunpack.c.h.bf16 %v4370_v9 }
 0x39d   :  { %4709 = vmatpush3.msra.mxu1 %v3780_v3  ;;  %2848 = vmatprep.mubr.f32.mxu1 %v2350_v26  ;;  %v4392_v3 = vld [vmem:[#allocation3 + $0x460] sm:$0xff]  }
 0x39e   :  { %4710 = vmatprep.subr.mxu1 %v3809_v4  ;;  %4762 = vmatpush3.msra.mxu0 %v3825_v42  ;;  %v4378_v4 = vld [vmem:[#allocation3 + $0x3f0] sm:$0xff]   ;;  %v4001_v18 = vunpack.c.h.bf16 %v4392_v3  ;;  %v4000_v26 = vunpack.c.l.bf16 %v4392_v3  ;;  %v3968_v42 = vunpack.c.l.bf16 %v4384_v61 }
 0x39f   :  { %4711 = vmatpush3.msra.mxu1 %v3777_v12  ;;  %4763 = vmatprep.subr.mxu0 %v3856_v46  ;;  %v3948_v12 = vunpack.c.l.bf16 %v4379_v62  ;;  %v3945_v21 = vunpack.c.h.bf16 %v4378_v4 }
 0x3a0   :  { %4712 = vmatprep.subr.mxu1 %v3808_v38  ;;  %4764 = vmatpush3.msra.mxu0 %v3824_v28  ;;  %v3916_v38 = vunpack.c.l.bf16 %v4371_v41  ;;  %v3909_v28 = vunpack.c.h.bf16 %v4369_v40 }
 0x3a1   :  { %4713 = vmatpush3.msra.mxu1 %v3776_v34  ;;  %2918 = vmatprep.mubr.f32.mxu0 %v2366_v45  ;;  %v4391_v34 = vld [vmem:[#allocation3 + $0x458] sm:$0xff]   ;;  %v4382_v45 = vld [vmem:[#allocation3 + $0x410] sm:$0xff]  }
 0x3a2   :  { %4714 = vmatprep.subr.mxu1 %v3805_v33  ;;  %2919 = vmatmul.mubr.f32.vlgmr.msra.gmra.mxu0 %v2358_v27  ;;  %v4377_v33 = vld [vmem:[#allocation3 + $0x3e8] sm:$0xff]   ;;  %v4383_v27 = vld [vmem:[#allocation3 + $0x418] sm:$0xff]   ;;  %v3997_v44 = vunpack.c.h.bf16 %v4391_v34  ;;  %v3960_v58 = vunpack.c.l.bf16 %v4382_v45 }
 0x3a3   :  { %4715 = vmatpush3.msra.mxu1 %v3773_v39  ;;  %4803 = vmatprep.subr.mxu0 %v4013_v17  ;;  %v3944_v39 = vunpack.c.l.bf16 %v4378_v4  ;;  %v3965_v46 = vunpack.c.h.bf16 %v4383_v27  ;;  %v3940_v43 = vunpack.c.l.bf16 %v4377_v33  ;;  %v3964_v10 = vunpack.c.l.bf16 %v4383_v27 }
 0x3a4   :  { %4716 = vmatprep.subr.mxu1 %v3804_v35  ;;  %4804 = vmatpush3.msra.mxu0 %v3981_v51  ;;  %v3912_v35 = vunpack.c.l.bf16 %v4370_v9  ;;  %v3937_v17 = vunpack.c.h.bf16 %v4376_v30  ;;  %v4389_v51 = vld [vmem:[#allocation3 + $0x448] sm:$0xff]  }
 0x3a5   :  { %4717 = vmatpush3.msra.mxu1 %v3772_v6  ;;  %4805 = vmatprep.subr.mxu0 %v4012_v59  ;;  %v4390_v6 = vld [vmem:[#allocation3 + $0x450] sm:$0xff]   ;;  %v4375_v59 = vld [vmem:[#allocation3 + $0x3d8] sm:$0xff]   ;;  %v3988_v62 = vunpack.c.l.bf16 %v4389_v51  ;;  %v4365_v9 = vld [vmem:[#allocation3 + $0x388] sm:$0xff]  }
 0x3a6   :  { %4718 = vmatprep.subr.mxu1 %v3801_v8  ;;  %4806 = vmatpush3.msra.mxu0 %v3980_v32  ;;  %v3996_v8 = vunpack.c.l.bf16 %v4391_v34  ;;  %v3993_v14 = vunpack.c.h.bf16 %v4390_v6  ;;  %v3992_v23 = vunpack.c.l.bf16 %v4390_v6  ;;  %v3936_v32 = vunpack.c.l.bf16 %v4376_v30  ;;  %v4418_v6 = vld [vmem:[#allocation3 + $0x530] sm:$0xff]   ;;  %v4411_v30 = vld [vmem:[#allocation3 + $0x4f8] sm:$0xff]  }
 0x3a7   :  { %4719 = vmatpush3.msra.mxu1 %v3769_v49  ;;  %4807 = vmatprep.subr.mxu0 %v4009_v56  ;;  %v4368_v49 = vld [vmem:[#allocation3 + $0x3a0] sm:$0xff]  }
 0x3a8   :  { %4720 = vmatprep.subr.mxu1 %v3800_v50  ;;  %4808 = vmatpush3.msra.mxu0 %v3977_v55  ;;  %v3908_v50 = vunpack.c.l.bf16 %v4369_v40  ;;  %v3904_v56 = vunpack.c.l.bf16 %v4368_v49  ;;  %v3933_v55 = vunpack.c.h.bf16 %v4375_v59 }
 0x3a9   :  { %4721 = vmatpush3.msra.mxu1 %v3768_v15  ;;  %4809 = vmatprep.subr.mxu0 %v4008_v47  ;;  %v3961_v15 = vunpack.c.h.bf16 %v4382_v45  ;;  %v5855_v47 = vunpack.c.l.bf16 %v5849_v52 }
 0x3aa   :  { %4722 = vmatprep.subr.mxu1 %v3797_v24  ;;  %4810 = vmatpush3.msra.mxu0 %v3976_v25  ;;  %v3905_v24 = vunpack.c.h.bf16 %v4368_v49  ;;  %v3932_v25 = vunpack.c.l.bf16 %v4375_v59  ;;  %v4076_v59 = vunpack.c.l.bf16 %v4411_v30 }
 0x3ab   :  { %4723 = vmatpush3.msra.mxu1 %v3765_v60  ;;  %4811 = vmatprep.subr.mxu0 %v4005_v13  ;;  %v4381_v60 = vld [vmem:[#allocation3 + $0x408] sm:$0xff]   ;;  %v4380_v13 = vld [vmem:[#allocation3 + $0x400] sm:$0xff]  }
 0x3ac   :  { %4724 = vmatprep.subr.mxu1 %v3796_v53  ;;  %4812 = vmatpush3.msra.mxu0 %v3973_v37  ;;  %v4367_v53 = vld [vmem:[#allocation3 + $0x398] sm:$0xff]   ;;  %v3957_v22 = vunpack.c.h.bf16 %v4381_v60  ;;  %v3956_v41 = vunpack.c.l.bf16 %v4381_v60  ;;  %v3985_v37 = vunpack.c.h.bf16 %v4388_v48  ;;  %v3953_v61 = vunpack.c.h.bf16 %v4380_v13 }
 0x3ad   :  { %4725 = vmatpush3.msra.mxu1 %v3764_v54  ;;  %4813 = vmatprep.subr.mxu0 %v4004_v31  ;;  %v3989_v54 = vunpack.c.h.bf16 %v4389_v51  ;;  %v3901_v11 = vunpack.c.h.bf16 %v4367_v53  ;;  %v4373_v31 = vld [vmem:[#allocation3 + $0x3c8] sm:$0xff]   ;;  %v4410_v51 = vld [vmem:[#allocation3 + $0x4f0] sm:$0xff]   ;;  %v4104_v60 = vunpack.c.l.bf16 %v4418_v6 }
 0x3ae   :  { %4726 = vmatprep.subr.mxu1 %v3793_v29  ;;  %4814 = vmatpush3.msra.mxu0 %v3972_v16  ;;  %v5852_v29 = vrot.slane %v2351_v20, %v5794_v19  ;;  %v3984_v16 = vunpack.c.l.bf16 %v4388_v48  ;;  %v3924_v27 = vunpack.c.l.bf16 %v4373_v31 }
 0x3af   :  { %4727 = vmatpush3.msra.mxu1 %v3761_v57  ;;  %4815 = vmatprep.subr.mxu0 %v4001_v18  ;;  %v4374_v57 = vld [vmem:[#allocation3 + $0x3d0] sm:$0xff]   ;;  %v3952_v18 = vunpack.c.l.bf16 %v4380_v13 }
 0x3b0   :  { %4728 = vmatprep.subr.mxu1 %v3792_v1  ;;  %4816 = vmatpush3.msra.mxu0 %v3969_v5  ;;  %v4366_v1 = vld [vmem:[#allocation3 + $0x390] sm:$0xff]   ;;  %v2367_v3 = vcombine.high %v5852_v29, %v5852_v29  ;;  %v3925_v5 = vunpack.c.h.bf16 %v4373_v31  ;;  %v4400_v31 = vld [vmem:[#allocation3 + $0x4a0] sm:$0xff]  }
 0x3b1   :  { %4729 = vmatpush3.msra.mxu1 %v3760_v0  ;;  %4817 = vmatprep.subr.mxu0 %v4000_v26  ;;  %v3900_v0 = vunpack.c.l.bf16 %v4367_v53  ;;  %v3897_v4 = vunpack.c.h.bf16 %v4366_v1  ;;  %v4372_v26 = vld [vmem:[#allocation3 + $0x3c0] sm:$0xff]  }
 0x3b2   :  { %2849 = vmatmul.mubr.f32.vlgmr.msra.gmra.mxu1 %v5837_v63  ;;  %4768 = vmatprep.subr.mxu1 %v3949_v2  ;;  %v3941_v63 = vunpack.c.h.bf16 %v4377_v33  ;;  %v3929_v2 = vunpack.c.h.bf16 %v4374_v57  ;;  %v3893_v33 = vunpack.c.h.bf16 %v4365_v9  ;;  %v3920_v45 = vunpack.c.l.bf16 %v4372_v26 }
 0x3b3   :  { %4769 = vmatpush3.msra.mxu1 %v3917_v36  ;;  %4818 = vmatpush3.msra.mxu0 %v3968_v42  ;;  %v2375_v36 = vrot.slane %v5855_v47, %v5794_v19  ;;  %v3892_v42 = vunpack.c.l.bf16 %v4365_v9 }
 0x3b4   :  { %4770 = vmatprep.subr.mxu1 %v3948_v12  ;;  %4819 = vmatprep.subr.mxu0 %v3997_v44  ;;  %v3928_v12 = vunpack.c.l.bf16 %v4374_v57  ;;  %v4426_v44 = vld [vmem:[#allocation3 + $0x570] sm:$0xff]   ;;  %v4072_v57 = vunpack.c.l.bf16 %v4410_v51 }
 0x3b5   :  { %4771 = vmatpush3.msra.mxu1 %v3916_v38  ;;  %4820 = vmatpush3.msra.mxu0 %v3965_v46  ;;  %v3896_v38 = vunpack.c.l.bf16 %v4366_v1  ;;  %v2383_v34 = vcombine.high %v2375_v36, %v2375_v36  ;;  %v4137_v49 = vunpack.c.h.bf16 %v4426_v44  ;;  %v4136_v20 = vunpack.c.l.bf16 %v4426_v44  ;;  %v4421_v44 = vld [vmem:[#allocation3 + $0x548] sm:$0xff]  }
 0x3b6   :  { %4772 = vmatprep.subr.mxu1 %v3945_v21  ;;  %4821 = vmatprep.subr.mxu0 %v3996_v8  ;;  %v4427_v21 = vld [vmem:[#allocation3 + $0x578] sm:$0xff]  }
 0x3b7   :  { %4773 = vmatpush3.msra.mxu1 %v3913_v7  ;;  %4822 = vmatpush3.msra.mxu0 %v3964_v10  ;;  %v4419_v7 = vld [vmem:[#allocation3 + $0x538] sm:$0xff]   ;;  %v4141_v40 = vunpack.c.h.bf16 %v4427_v21  ;;  %v4140_v46 = vunpack.c.l.bf16 %v4427_v21  ;;  %v4033_v21 = vunpack.c.h.bf16 %v4400_v31 }
 0x3b8   :  { %4774 = vmatprep.subr.mxu1 %v3944_v39  ;;  %4823 = vmatprep.subr.mxu0 %v3993_v14  ;;  %v4364_v39 = vld [vmem:[#allocation3 + $0x380] sm:$0xff]   ;;  %v4108_v8 = vunpack.c.l.bf16 %v4419_v7  ;;  %v4077_v14 = vunpack.c.h.bf16 %v4411_v30  ;;  %v4413_v30 = vld [vmem:[#allocation3 + $0x508] sm:$0xff]  }
 0x3b9   :  { %4775 = vmatpush3.msra.mxu1 %v3912_v35  ;;  %4824 = vmatpush3.msra.mxu0 %v3961_v15  ;;  %v4109_v35 = vunpack.c.h.bf16 %v4419_v7  ;;  %v3888_v10 = vunpack.c.l.bf16 %v4364_v39  ;;  %v4414_v7 = vld [vmem:[#allocation3 + $0x510] sm:$0xff]  }
 0x3ba   :  { %4776 = vmatprep.subr.mxu1 %v3941_v63  ;;  %4825 = vmatprep.subr.mxu0 %v3992_v23  ;;  %v3921_v63 = vunpack.c.h.bf16 %v4372_v26  ;;  %v4402_v23 = vld [vmem:[#allocation3 + $0x4b0] sm:$0xff]   ;;  %v4399_v26 = vld [vmem:[#allocation3 + $0x498] sm:$0xff]  }
 0x3bb   :  { %4777 = vmatpush3.msra.mxu1 %v3909_v28  ;;  %4826 = vmatpush3.msra.mxu0 %v3960_v58  ;;  %v3889_v28 = vunpack.c.h.bf16 %v4364_v39  ;;  %v4073_v58 = vunpack.c.h.bf16 %v4410_v51  ;;  %v4040_v1 = vunpack.c.l.bf16 %v4402_v23  ;;  %v4032_v39 = vunpack.c.l.bf16 %v4400_v31 }
 0x3bc   :  { %4778 = vmatprep.subr.mxu1 %v3940_v43  ;;  %4827 = vmatprep.subr.mxu0 %v3989_v54  ;;  %v4403_v43 = vld [vmem:[#allocation3 + $0x4b8] sm:$0xff]   ;;  %v4424_v54 = vld [vmem:[#allocation3 + $0x560] sm:$0xff]  }
 0x3bd   :  { %4779 = vmatpush3.msra.mxu1 %v3908_v50  ;;  %4828 = vmatpush3.msra.mxu0 %v3957_v22  ;;  %v4105_v50 = vunpack.c.h.bf16 %v4418_v6  ;;  %v4045_v15 = vunpack.c.h.bf16 %v4403_v43  ;;  %v4409_v22 = vld [vmem:[#allocation3 + $0x4e8] sm:$0xff]   ;;  %v4406_v6 = vld [vmem:[#allocation3 + $0x4d0] sm:$0xff]  }
 0x3be   :  { %4780 = vmatprep.subr.mxu1 %v3937_v17  ;;  %4829 = vmatprep.subr.mxu0 %v3988_v62  ;;  %v4425_v17 = vld [vmem:[#allocation3 + $0x568] sm:$0xff]  }
 0x3bf   :  { %4781 = vmatpush3.msra.mxu1 %v3905_v24  ;;  %4830 = vmatpush3.msra.mxu0 %v3956_v41  ;;  %v4417_v24 = vld [vmem:[#allocation3 + $0x528] sm:$0xff]   ;;  %v4133_v53 = vunpack.c.h.bf16 %v4425_v17  ;;  %v4132_v48 = vunpack.c.l.bf16 %v4425_v17  ;;  %v4129_v41 = vunpack.c.h.bf16 %v4424_v54 }
 0x3c0   :  { %4782 = vmatprep.subr.mxu1 %v3936_v32  ;;  %4831 = vmatprep.subr.mxu0 %v3985_v37  ;;  %v4044_v32 = vunpack.c.l.bf16 %v4403_v43  ;;  %v4401_v62 = vld [vmem:[#allocation3 + $0x4a8] sm:$0xff]   ;;  %v4088_v43 = vunpack.c.l.bf16 %v4414_v7 }
 0x3c1   :  { %4783 = vmatpush3.msra.mxu1 %v3904_v56  ;;  %2988 = vmatprep.mubr.f32.mxu1 %v2367_v3  ;;  %v4101_v56 = vunpack.c.h.bf16 %v4417_v24  ;;  %v4037_v37 = vunpack.c.h.bf16 %v4401_v62  ;;  %v4128_v3 = vunpack.c.l.bf16 %v4424_v54 }
 0x3c2   :  { %4784 = vmatprep.subr.mxu1 %v3933_v55  ;;  %4832 = vmatpush3.msra.mxu0 %v3953_v61  ;;  %v4041_v55 = vunpack.c.h.bf16 %v4402_v23  ;;  %v4397_v23 = vld [vmem:[#allocation3 + $0x488] sm:$0xff]  }
 0x3c3   :  { %4785 = vmatpush3.msra.mxu1 %v3901_v11  ;;  %4833 = vmatprep.subr.mxu0 %v3984_v16  ;;  %v4416_v11 = vld [vmem:[#allocation3 + $0x520] sm:$0xff]  }
 0x3c4   :  { %4786 = vmatprep.subr.mxu1 %v3932_v25  ;;  %4834 = vmatpush3.msra.mxu0 %v3952_v18  ;;  %v4100_v25 = vunpack.c.l.bf16 %v4417_v24  ;;  %v4097_v13 = vunpack.c.h.bf16 %v4416_v11  ;;  %v4096_v61 = vunpack.c.l.bf16 %v4416_v11  ;;  %v4422_v18 = vld [vmem:[#allocation3 + $0x550] sm:$0xff]   ;;  %v4116_v24 = vunpack.c.l.bf16 %v4421_v44 }
 0x3c5   :  { %4787 = vmatpush3.msra.mxu1 %v3900_v0  ;;  %3058 = vmatprep.mubr.f32.mxu0 %v2383_v34  ;;  %v4423_v0 = vld [vmem:[#allocation3 + $0x558] sm:$0xff]  }
 0x3c6   :  { %4788 = vmatprep.subr.mxu1 %v3929_v2  ;;  %3059 = vmatmul.mubr.f32.vlgmr.msra.gmra.mxu0 %v2375_v36  ;;  %v4408_v2 = vld [vmem:[#allocation3 + $0x4e0] sm:$0xff]   ;;  %v4415_v36 = vld [vmem:[#allocation3 + $0x518] sm:$0xff]   ;;  %v4125_v9 = vunpack.c.h.bf16 %v4423_v0  ;;  %v4124_v34 = vunpack.c.l.bf16 %v4423_v0 }
 0x3c7   :  { %4789 = vmatpush3.msra.mxu1 %v3897_v4  ;;  %4873 = vmatprep.subr.mxu0 %v4141_v40  ;;  %v4068_v4 = vunpack.c.l.bf16 %v4409_v22  ;;  %v4065_v16 = vunpack.c.h.bf16 %v4408_v2  ;;  %v4121_v40 = vunpack.c.h.bf16 %v4422_v18 }
 0x3c8   :  { %4790 = vmatprep.subr.mxu1 %v3928_v12  ;;  %4874 = vmatpush3.msra.mxu0 %v4109_v35  ;;  %v4036_v12 = vunpack.c.l.bf16 %v4401_v62  ;;  %v4089_v35 = vunpack.c.h.bf16 %v4414_v7 }
 0x3c9   :  { %4791 = vmatpush3.msra.mxu1 %v3896_v38  ;;  %4875 = vmatprep.subr.mxu0 %v4140_v46  ;;  %v4093_v38 = vunpack.c.h.bf16 %v4415_v36  ;;  %v4029_v46 = vunpack.c.h.bf16 %v4399_v26 }
 0x3ca   :  { %4792 = vmatprep.subr.mxu1 %v3925_v5  ;;  %4876 = vmatpush3.msra.mxu0 %v4108_v8  ;;  %v4407_v5 = vld [vmem:[#allocation3 + $0x4d8] sm:$0xff]  }
 0x3cb   :  { %4793 = vmatpush3.msra.mxu1 %v3893_v33  ;;  %4877 = vmatprep.subr.mxu0 %v4137_v49  ;;  %v4064_v33 = vunpack.c.l.bf16 %v4408_v2  ;;  %v4060_v8 = vunpack.c.l.bf16 %v4407_v5  ;;  %v4028_v49 = vunpack.c.l.bf16 %v4399_v26  ;;  %v4441_v26 = vld [vmem:[#allocation3 + $0x5e8] sm:$0xff]  }
 0x3cc   :  { %4794 = vmatprep.subr.mxu1 %v3924_v27  ;;  %4878 = vmatpush3.msra.mxu0 %v4105_v50  ;;  %v4092_v27 = vunpack.c.l.bf16 %v4415_v36  ;;  %v4057_v50 = vunpack.c.h.bf16 %v4406_v6 }
 0x3cd   :  { %4795 = vmatpush3.msra.mxu1 %v3892_v42  ;;  %4879 = vmatprep.subr.mxu0 %v4136_v20  ;;  %v4061_v42 = vunpack.c.h.bf16 %v4407_v5  ;;  %v4405_v20 = vld [vmem:[#allocation3 + $0x4c8] sm:$0xff]  }
 0x3ce   :  { %4796 = vmatprep.subr.mxu1 %v3921_v63  ;;  %4880 = vmatpush3.msra.mxu0 %v4104_v60  ;;  %v2368_v63 = vcombine.high %v5855_v47, %v5855_v47  ;;  %v4420_v47 = vld [vmem:[#allocation3 + $0x540] sm:$0xff]   ;;  %v4084_v60 = vunpack.c.l.bf16 %v4413_v30  ;;  %v4052_v11 = vunpack.c.l.bf16 %v4405_v20 }
 0x3cf   :  { %4797 = vmatpush3.msra.mxu1 %v3889_v28  ;;  %4881 = vmatprep.subr.mxu0 %v4133_v53  ;;  %v4120_v28 = vunpack.c.l.bf16 %v4422_v18  ;;  %v4112_v62 = vunpack.c.l.bf16 %v4420_v47  ;;  %v4434_v18 = vld [vmem:[#allocation3 + $0x5b0] sm:$0xff]  }
 0x3d0   :  { %4798 = vmatprep.subr.mxu1 %v3920_v45  ;;  %4882 = vmatpush3.msra.mxu0 %v4101_v56  ;;  %v4398_v45 = vld [vmem:[#allocation3 + $0x490] sm:$0xff]   ;;  %v5865_v17 = vrot.slane %v2368_v63, %v5794_v19  ;;  %v4053_v56 = vunpack.c.h.bf16 %v4405_v20 }
 0x3d1   :  { %4799 = vmatpush3.msra.mxu1 %v3888_v10  ;;  %4883 = vmatprep.subr.mxu0 %v4132_v48  ;;  %v4117_v10 = vunpack.c.h.bf16 %v4421_v44  ;;  %v4025_v51 = vunpack.c.h.bf16 %v4398_v45  ;;  %v4024_v53 = vunpack.c.l.bf16 %v4398_v45  ;;  %v4197_v44 = vunpack.c.h.bf16 %v4441_v26 }
 0x3d2   :  { %2989 = vmatmul.mubr.f32.vlgmr.msra.gmra.mxu1 %v5852_v29  ;;  %4838 = vmatprep.subr.mxu1 %v4077_v14  ;;  %v4069_v29 = vunpack.c.h.bf16 %v4409_v22  ;;  %v4085_v14 = vunpack.c.h.bf16 %v4413_v30  ;;  %v4404_v22 = vld [vmem:[#allocation3 + $0x4c0] sm:$0xff]   ;;  %v4196_v30 = vunpack.c.l.bf16 %v4441_v26 }
 0x3d3   :  { %4839 = vmatpush3.msra.mxu1 %v4045_v15  ;;  %4884 = vmatpush3.msra.mxu0 %v4100_v25  ;;  %v5868_v15 = vunpack.c.h.bf16 %v5849_v52  ;;  %v2384_v52 = vcombine.high %v5865_v17, %v5865_v17  ;;  %v4020_v25 = vunpack.c.l.bf16 %v4397_v23  ;;  %v4048_v2 = vunpack.c.l.bf16 %v4404_v22 }
 0x3d4   :  { %4840 = vmatprep.subr.mxu1 %v4076_v59  ;;  %4885 = vmatprep.subr.mxu0 %v4129_v41  ;;  %v4056_v59 = vunpack.c.l.bf16 %v4406_v6  ;;  %v4049_v41 = vunpack.c.h.bf16 %v4404_v22  ;;  %v4440_v6 = vld [vmem:[#allocation3 + $0x5e0] sm:$0xff]  }
 0x3d5   :  { %4841 = vmatpush3.msra.mxu1 %v4044_v32  ;;  %4886 = vmatpush3.msra.mxu0 %v4097_v13  ;;  %v4412_v32 = vld [vmem:[#allocation3 + $0x500] sm:$0xff]   ;;  %v2392_v54 = vrot.slane %v5868_v15, %v5794_v19  ;;  %v4451_v13 = vld [vmem:[#allocation3 + $0x638] sm:$0xff]  }
 0x3d6   :  { %4842 = vmatprep.subr.mxu1 %v4073_v58  ;;  %4887 = vmatprep.subr.mxu0 %v4128_v3  ;;  %v4113_v58 = vunpack.c.h.bf16 %v4420_v47  ;;  %v4081_v48 = vunpack.c.h.bf16 %v4412_v32  ;;  %v4435_v3 = vld [vmem:[#allocation3 + $0x5b8] sm:$0xff]  }
 0x3d7   :  { %4843 = vmatpush3.msra.mxu1 %v4041_v55  ;;  %4888 = vmatpush3.msra.mxu0 %v4096_v61  ;;  %v4021_v55 = vunpack.c.h.bf16 %v4397_v23  ;;  %v4173_v61 = vunpack.c.h.bf16 %v4435_v3  ;;  %v4172_v5 = vunpack.c.l.bf16 %v4435_v3  ;;  %v4447_v47 = vld [vmem:[#allocation3 + $0x618] sm:$0xff]  }
 0x3d8   :  { %4844 = vmatprep.subr.mxu1 %v4072_v57  ;;  %4889 = vmatprep.subr.mxu0 %v4125_v9  ;;  %v4396_v57 = vld [vmem:[#allocation3 + $0x480] sm:$0xff]   ;;  %v4450_v9 = vld [vmem:[#allocation3 + $0x630] sm:$0xff]   ;;  %v4221_v23 = vunpack.c.h.bf16 %v4447_v47 }
 0x3d9   :  { %4845 = vmatpush3.msra.mxu1 %v4040_v1  ;;  %4890 = vmatpush3.msra.mxu0 %v4093_v38  ;;  %v4080_v1 = vunpack.c.l.bf16 %v4412_v32  ;;  %v4017_v0 = vunpack.c.h.bf16 %v4396_v57  ;;  %v4016_v36 = vunpack.c.l.bf16 %v4396_v57  ;;  %v5056_v38 = vmov 0.0   ;;  %v4438_v32 = vld [vmem:[#allocation3 + $0x5d0] sm:$0xff]   ;;  %v4437_v57 = vld [vmem:[#allocation3 + $0x5c8] sm:$0xff]  }
 0x3da   :  { %4846 = vmatprep.subr.mxu1 %v4069_v29  ;;  %4891 = vmatprep.subr.mxu0 %v4124_v34  ;;  %v2400_v29 = vcombine.high %v2392_v54, %v2392_v54  ;;  %v4233_v7 = vunpack.c.h.bf16 %v4450_v9  ;;  %v4185_v22 = vunpack.c.h.bf16 %v4438_v32  ;;  %v4180_v3 = vunpack.c.l.bf16 %v4437_v57 }
 0x3db   :  { %4847 = vmatpush3.msra.mxu1 %v4037_v37  ;;  %4892 = vmatpush3.msra.mxu0 %v4092_v27  ;;  %v4443_v37 = vld [vmem:[#allocation3 + $0x5f8] sm:$0xff]   ;;  %v4449_v27 = vld [vmem:[#allocation3 + $0x628] sm:$0xff]  }
 0x3dc   :  { %4848 = vmatprep.subr.mxu1 %v4068_v4  ;;  %4893 = vmatprep.subr.mxu0 %v4121_v40  ;;  %v4237_v4 = vunpack.c.h.bf16 %v4451_v13  ;;  %v4205_v31 = vunpack.c.h.bf16 %v4443_v37  ;;  %v4433_v40 = vld [vmem:[#allocation3 + $0x5a8] sm:$0xff]   ;;  %v4229_v63 = vunpack.c.h.bf16 %v4449_v27  ;;  %v4228_v45 = vunpack.c.l.bf16 %v4449_v27 }
 0x3dd   :  { %4849 = vmatpush3.msra.mxu1 %v4036_v12  ;;  %4894 = vmatpush3.msra.mxu0 %v4089_v35  ;;  %v4442_v12 = vld [vmem:[#allocation3 + $0x5f0] sm:$0xff]   ;;  %v4168_v35 = vunpack.c.l.bf16 %v4434_v18 }
 0x3de   :  { %4850 = vmatprep.subr.mxu1 %v4065_v16  ;;  %4895 = vmatprep.subr.mxu0 %v4120_v28  ;;  %v4204_v16 = vunpack.c.l.bf16 %v4443_v37  ;;  %v4201_v34 = vunpack.c.h.bf16 %v4442_v12  ;;  %v4448_v28 = vld [vmem:[#allocation3 + $0x620] sm:$0xff]  }
 0x3df   :  { %4851 = vmatpush3.msra.mxu1 %v4033_v21  ;;  %4896 = vmatpush3.msra.mxu0 %v4088_v43  ;;  %v4236_v21 = vunpack.c.l.bf16 %v4451_v13  ;;  %v4164_v43 = vunpack.c.l.bf16 %v4433_v40  ;;  %v4224_v20 = vunpack.c.l.bf16 %v4448_v28  ;;  %v4181_v13 = vunpack.c.h.bf16 %v4437_v57 }
 0x3e0   :  { %4852 = vmatprep.subr.mxu1 %v4064_v33  ;;  %4897 = vmatprep.subr.mxu0 %v4117_v10  ;;  %v4169_v33 = vunpack.c.h.bf16 %v4434_v18  ;;  %v4225_v10 = vunpack.c.h.bf16 %v4448_v28 }
 0x3e1   :  { %4853 = vmatpush3.msra.mxu1 %v4032_v39  ;;  %4898 = vmatpush3.msra.mxu0 %v4085_v14  ;;  %v4200_v39 = vunpack.c.l.bf16 %v4442_v12  ;;  %v4439_v14 = vld [vmem:[#allocation3 + $0x5d8] sm:$0xff]  }
 0x3e2   :  { %4854 = vmatprep.subr.mxu1 %v4061_v42  ;;  %4899 = vmatprep.subr.mxu0 %v4116_v24  ;;  %v4232_v42 = vunpack.c.l.bf16 %v4450_v9 }
 0x3e3   :  { %4855 = vmatpush3.msra.mxu1 %v4029_v46  ;;  %4900 = vmatpush3.msra.mxu0 %v4084_v60  ;;  %v4165_v46 = vunpack.c.h.bf16 %v4433_v40 }
 0x3e4   :  { %4856 = vmatprep.subr.mxu1 %v4060_v8  ;;  %4901 = vmatprep.subr.mxu0 %v4113_v58  ;;  %v4432_v8 = vld [vmem:[#allocation3 + $0x5a0] sm:$0xff]   ;;  %v4188_v58 = vunpack.c.l.bf16 %v4439_v14 }
 0x3e5   :  { %4857 = vmatpush3.msra.mxu1 %v4028_v49  ;;  %3128 = vmatprep.mubr.f32.mxu1 %v2384_v52  ;;  %v4193_v49 = vunpack.c.h.bf16 %v4440_v6  ;;  %v4160_v24 = vunpack.c.l.bf16 %v4432_v8  ;;  %v4220_v52 = vunpack.c.l.bf16 %v4447_v47 }
 0x3e6   :  { %4858 = vmatprep.subr.mxu1 %v4057_v50  ;;  %4902 = vmatpush3.msra.mxu0 %v4081_v48  ;;  %v4161_v50 = vunpack.c.h.bf16 %v4432_v8 }
 0x3e7   :  { %4859 = vmatpush3.msra.mxu1 %v4025_v51  ;;  %4903 = vmatprep.subr.mxu0 %v4112_v62  ;;  %v4431_v51 = vld [vmem:[#allocation3 + $0x598] sm:$0xff]   ;;  %v4445_v62 = vld [vmem:[#allocation3 + $0x608] sm:$0xff]  }
 0x3e8   :  { %4860 = vmatprep.subr.mxu1 %v4056_v59  ;;  %4904 = vmatpush3.msra.mxu0 %v4080_v1  ;;  %v4189_v59 = vunpack.c.h.bf16 %v4439_v14  ;;  %v4157_v60 = vunpack.c.h.bf16 %v4431_v51  ;;  %v4429_v1 = vld [vmem:[#allocation3 + $0x588] sm:$0xff]   ;;  %v4212_v9 = vunpack.c.l.bf16 %v4445_v62 }
 0x3e9   :  { %4861 = vmatpush3.msra.mxu1 %v4024_v53  ;;  %3198 = vmatprep.mubr.f32.mxu0 %v2400_v29  ;;  %v4446_v53 = vld [vmem:[#allocation3 + $0x610] sm:$0xff]   ;;  %v4149_v37 = vunpack.c.h.bf16 %v4429_v1  ;;  %v4148_v12 = vunpack.c.l.bf16 %v4429_v1 }
 0x3ea   :  { %4862 = vmatprep.subr.mxu1 %v4053_v56  ;;  %3199 = vmatmul.mubr.f32.vlgmr.msra.gmra.mxu0 %v2392_v54  ;;  %v4430_v56 = vld [vmem:[#allocation3 + $0x590] sm:$0xff]   ;;  %v2385_v54 = vcombine.high %v5868_v15, %v5868_v15  ;;  %v4217_v48 = vunpack.c.h.bf16 %v4446_v53 }
 0x3eb   :  { %4863 = vmatpush3.msra.mxu1 %v4021_v55  ;;  %4960 = vmatprep.subr.mxu0 %v5056_v38  ;;  %v4156_v55 = vunpack.c.l.bf16 %v4431_v51  ;;  %v4152_v29 = vunpack.c.l.bf16 %v4430_v56 }
 0x3ec   :  { %4864 = vmatprep.subr.mxu1 %v4052_v11  ;;  %4961 = vmatpush3.msra.mxu0 %v4237_v4  ;;  %v4153_v11 = vunpack.c.h.bf16 %v4430_v56  ;;  %v2399_v15 = vrot.slane %v2385_v54, %v5794_v19 }
 0x3ed   :  { %4865 = vmatpush3.msra.mxu1 %v4020_v25  ;;  %4962 = vmatprep.subr.mxu0 %v5056_v38  ;;  %v4184_v25 = vunpack.c.l.bf16 %v4438_v32 }
 0x3ee   :  { %4866 = vmatprep.subr.mxu1 %v4049_v41  ;;  %4963 = vmatpush3.msra.mxu0 %v4236_v21  ;;  %v4216_v41 = vunpack.c.l.bf16 %v4446_v53  ;;  %v2401_v4 = vcombine.high %v2399_v15, %v2399_v15 }
 0x3ef   :  { %4867 = vmatpush3.msra.mxu1 %v4017_v0  ;;  %4964 = vmatprep.subr.mxu0 %v5056_v38  ;;  %v4213_v0 = vunpack.c.h.bf16 %v4445_v62 }
 0x3f0   :  { %4868 = vmatprep.subr.mxu1 %v4048_v2  ;;  %4965 = vmatpush3.msra.mxu0 %v4233_v7  ;;  %v4436_v2 = vld [vmem:[#allocation3 + $0x5c0] sm:$0xff]  }
 0x3f1   :  { %4869 = vmatpush3.msra.mxu1 %v4016_v36  ;;  %4966 = vmatprep.subr.mxu0 %v5056_v38  ;;  %v4428_v36 = vld [vmem:[#allocation3 + $0x580] sm:$0xff]  }
 0x3f2   :  { %3129 = vmatmul.mubr.f32.vlgmr.msra.gmra.mxu1 %v5865_v17  ;;  %4908 = vmatprep.subr.mxu1 %v4205_v31  ;;  %v4192_v17 = vunpack.c.l.bf16 %v4440_v6  ;;  %v4444_v31 = vld [vmem:[#allocation3 + $0x600] sm:$0xff]   ;;  %v4145_v18 = vunpack.c.h.bf16 %v4428_v36  ;;  %v4144_v7 = vunpack.c.l.bf16 %v4428_v36 }
 0x3f3   :  { %4909 = vmatpush3.msra.mxu1 %v4173_v61  ;;  %4967 = vmatpush3.msra.mxu0 %v4232_v42  ;;  %v1478_v61 = vld [vmem:[#allocation2 + $0x18] sm:$0x1]  ;;  %v4209_v21 = vunpack.c.h.bf16 %v4444_v31 }
 0x3f4   :  { %4910 = vmatprep.subr.mxu1 %v4204_v16  ;;  %4968 = vmatprep.subr.mxu0 %v5056_v38  ;;  %v4177_v16 = vunpack.c.h.bf16 %v4436_v2 }
 0x3f5   :  { %4911 = vmatpush3.msra.mxu1 %v4172_v5  ;;  %4969 = vmatpush3.msra.mxu0 %v4229_v63  ;;  %v1485_v5 = vunpack.c.l.bf16 %v1478_v61 }
 0x3f6   :  { %4912 = vmatprep.subr.mxu1 %v4201_v34  ;;  %4970 = vmatprep.subr.mxu0 %v5056_v38  ;;  %v4176_v34 = vunpack.c.l.bf16 %v4436_v2 }
 0x3f7   :  { %4913 = vmatpush3.msra.mxu1 %v4169_v33  ;;  %4971 = vmatpush3.msra.mxu0 %v4228_v45  ;;  %v4208_v33 = vunpack.c.l.bf16 %v4444_v31  ;;  %v2408_v26 = vrot.slane %v1485_v5, %v5794_v19  ;;  %v3372_v19 = vld [vmem:[%s5906_s4] ss:$0 sm:$0xff]  ;;  %s5058_s4 = smov [#allocation5]  }
 0x3f8   :  { %4914 = vmatprep.subr.mxu1 %v4200_v39  ;;  %4972 = vmatprep.subr.mxu0 %v5056_v38  ;;  %s3351_s24 = sshll.u32 %s5058_s4, 4  ;;  %s3352_s24 = int_to_ptr.vmem [resolvable:$true] %s3351_s24 }
 0x3f9   :  { %4915 = vmatpush3.msra.mxu1 %v4168_v35  ;;  %4973 = vmatpush3.msra.mxu0 %v4225_v10  ;;  %s5028_s25 = scalar_lea.vmem %s3352_s24, 32  ;;  %p5033_p6 = scmp.lt.s32.totalorder %s3352_s24, %s3352_s24 }
 0x3fa   :  { %4916 = vmatprep.subr.mxu1 %v4197_v44  ;;  %4974 = vmatprep.subr.mxu0 %v5056_v38  ;;  %p5029_p5 = scmp.ne.s32.totalorder %s3352_s24, %s5028_s25  ;;  %p5034_p7 = scmp.lt.s32.totalorder %s5028_s25, %s5028_s25 }
 0x3fb   :  { %4917 = vmatpush3.msra.mxu1 %v4165_v46  ;;  %4975 = vmatpush3.msra.mxu0 %v4224_v20 }
 0x3fc   :  { %4918 = vmatprep.subr.mxu1 %v4196_v30  ;;  %4976 = vmatprep.subr.mxu0 %v5056_v38  ;;  %p5035_p8 = por %p5034_p7, %p5033_p6 }
 0x3fd   :  { %4919 = vmatpush3.msra.mxu1 %v4164_v43  ;;  %4977 = vmatpush3.msra.mxu0 %v4221_v23 }
 0x3fe   :  { %4920 = vmatprep.subr.mxu1 %v4193_v49  ;;  %4978 = vmatprep.subr.mxu0 %v5056_v38  ;;  %p5036_p9 = pnand %p5035_p8, %p5029_p5 }
 0x3ff   :  { %4921 = vmatpush3.msra.mxu1 %v4161_v50  ;;  %4979 = vmatpush3.msra.mxu0 %v4220_v52 }
 0x400   :  { %4922 = vmatprep.subr.mxu1 %v4192_v17  ;;  %4980 = vmatprep.subr.mxu0 %v5056_v38 }
 0x401   :  { %4923 = vmatpush3.msra.mxu1 %v4160_v24  ;;  %4981 = vmatpush3.msra.mxu0 %v4217_v48 }
 0x402   :  { %4924 = vmatprep.subr.mxu1 %v4189_v59  ;;  %4982 = vmatprep.subr.mxu0 %v5056_v38 }
 0x403   :  { %4925 = vmatpush3.msra.mxu1 %v4157_v60  ;;  %4983 = vmatpush3.msra.mxu0 %v4216_v41 }
 0x404   :  { %4926 = vmatprep.subr.mxu1 %v4188_v58  ;;  %4984 = vmatprep.subr.mxu0 %v5056_v38 }
 0x405   :  { %4927 = vmatpush3.msra.mxu1 %v4156_v55  ;;  %4985 = vmatpush3.msra.mxu0 %v4213_v0 }
 0x406   :  { %4928 = vmatprep.subr.mxu1 %v4185_v22  ;;  %4986 = vmatprep.subr.mxu0 %v5056_v38 }
 0x407   :  { %4929 = vmatpush3.msra.mxu1 %v4153_v11  ;;  %3268 = vmatprep.mubr.f32.mxu1 %v2401_v4 }
 0x408   :  { %4930 = vmatprep.subr.mxu1 %v4184_v25  ;;  %4987 = vmatpush3.msra.mxu0 %v4212_v9 }
 0x409   :  { %4931 = vmatpush3.msra.mxu1 %v4152_v29  ;;  %4988 = vmatprep.subr.mxu0 %v5056_v38 }
 0x40a   :  { %4932 = vmatprep.subr.mxu1 %v4181_v13  ;;  %4989 = vmatpush3.msra.mxu0 %v4209_v21 }
 0x40b   :  { %4933 = vmatpush3.msra.mxu1 %v4149_v37  ;;  %4990 = vmatprep.subr.mxu0 %v5056_v38 }
 0x40c   :  { %4934 = vmatprep.subr.mxu1 %v4180_v3  ;;  %4991 = vmatpush3.msra.mxu0 %v4208_v33 }
 0x40d   :  { %4935 = vmatpush3.msra.mxu1 %v4148_v12  ;;  %4992 = vmatprep.mubr.msk.f32.mxu0 %vm5057_vm3, %v5056_v38 }
 0x40e   :  { %4936 = vmatprep.subr.mxu1 %v4177_v16  ;;  %4993 = vmatmul.mubr.f32.vlgmr.msra.gmra.mxu0 %v2408_v26 }
 0x40f   :  { %4937 = vmatpush3.msra.mxu1 %v4145_v18 }
 0x410   :  { %4938 = vmatprep.subr.mxu1 %v4176_v34 }
 0x411   :  { %4939 = vmatpush3.msra.mxu1 %v4144_v7 }
 0x412   :  { %3269 = vmatmul.mubr.f32.vlgmr.msra.gmra.mxu1 %v2399_v15  ;;  %v4555_v27 = vpop.f32.mrf.mxu1 }
 0x414   :  { %v4556_v39 = vpop.f32.mrf.mxu1 }
 0x415   :  { %v4557_v44 = vadd.f32 %v4556_v39, %v4555_v27 }
 0x417   :  { %v2501_v28 = vadd.f32 %v4557_v44, %v3372_v19 }
 0x41a   :  { %v4625_v35 = vpop.f32.mrf.mxu0 }
 0x41c   :  { %v4626_v6 = vpop.f32.mrf.mxu0 }
 0x41d   :  { %v4627_v43 = vadd.f32 %v4626_v6, %v4625_v35 }
 0x432   :  { %v4590_v40 = vpop.f32.mrf.mxu1 }
 0x434   :  { %v4591_v42 = vpop.f32.mrf.mxu1 }
 0x435   :  { %v4592_v46 = vadd.f32 %v4591_v42, %v4590_v40 }
 0x437   :  { %v2571_v45 = vadd.f32 %v4592_v46, %v2501_v28 }
 0x439   :  { %v2641_v50 = vadd.f32 %v4627_v43, %v2571_v45 }
 0x43e   :  { %v4695_v8 = vpop.f32.mrf.mxu0 }
 0x440   :  { %v4696_v10 = vpop.f32.mrf.mxu0 }
 0x441   :  { %v4697_v51 = vadd.f32 %v4696_v10, %v4695_v8 }
 0x452   :  { %v4660_v63 = vpop.f32.mrf.mxu1 }
 0x454   :  { %v4661_v30 = vpop.f32.mrf.mxu1 }
 0x455   :  { %v4662_v49 = vadd.f32 %v4661_v30, %v4660_v63 }
 0x457   :  { %v2711_v17 = vadd.f32 %v4662_v49, %v2641_v50 }
 0x459   :  { %v2781_v23 = vadd.f32 %v4697_v51, %v2711_v17 }
 0x462   :  { %v4765_v47 = vpop.f32.mrf.mxu0 }
 0x464   :  { %v4766_v59 = vpop.f32.mrf.mxu0 }
 0x465   :  { %v4767_v58 = vadd.f32 %v4766_v59, %v4765_v47 }
 0x472   :  { %v4730_v38 = vpop.f32.mrf.mxu1 }
 0x474   :  { %v4731_v14 = vpop.f32.mrf.mxu1 }
 0x475   :  { %v4732_v24 = vadd.f32 %v4731_v14, %v4730_v38 }
 0x477   :  { %v2851_v53 = vadd.f32 %v4732_v24, %v2781_v23 }
 0x479   :  { %v2921_v55 = vadd.f32 %v4767_v58, %v2851_v53 }
 0x486   :  { %v4835_v32 = vpop.f32.mrf.mxu0 }
 0x488   :  { %v4836_v54 = vpop.f32.mrf.mxu0 }
 0x489   :  { %v4837_v57 = vadd.f32 %v4836_v54, %v4835_v32 }
 0x492   :  { %v4800_v20 = vpop.f32.mrf.mxu1 }
 0x494   :  { %v4801_v60 = vpop.f32.mrf.mxu1 }
 0x495   :  { %v4802_v52 = vadd.f32 %v4801_v60, %v4800_v20 }
 0x497   :  { %v2991_v11 = vadd.f32 %v4802_v52, %v2921_v55 }
 0x499   :  { %v3061_v1 = vadd.f32 %v4837_v57, %v2991_v11 }
 0x4aa   :  { %v4905_v48 = vpop.f32.mrf.mxu0 }
 0x4ac   :  { %v4906_v25 = vpop.f32.mrf.mxu0 }
 0x4ad   :  { %v4907_v15 = vadd.f32 %v4906_v25, %v4905_v48 }
 0x4b2   :  { %v4870_v56 = vpop.f32.mrf.mxu1 }
 0x4b4   :  { %v4871_v22 = vpop.f32.mrf.mxu1 }
 0x4b5   :  { %v4872_v62 = vadd.f32 %v4871_v22, %v4870_v56 }
 0x4b7   :  { %v3131_v41 = vadd.f32 %v4872_v62, %v3061_v1 }
 0x4b9   :  { %v3201_v37 = vadd.f32 %v4907_v15, %v3131_v41 }
 0x4ce   :  { %v3340_v13 = vpop.f32.mrf.mxu0 }
 0x4d0   :  { %v4994_v3 = vpop.f32.mrf.mxu0 }
 0x4d2   :  { %v4940_v29 = vpop.f32.mrf.mxu1 }
 0x4d4   :  { %v4941_v0 = vpop.f32.mrf.mxu1 }
 0x4d5   :  { %v4942_v2 = vadd.f32 %v4941_v0, %v4940_v29 }
 0x4d7   :  { %v3271_v36 = vadd.f32 %v4942_v2, %v3201_v37 }
 0x4d9   :  { %v3341_v4 = vadd.f32 %v3340_v13, %v3271_v36 }
 0x4db   :  { %3344 = vst [vmem:[#allocation5] sm:$0x3] %v3341_v4 }
 0x4dc   :  { %5039 = shalt.err (!%p5036_p9)
}
 0x4dd   :  { %3354 = dma.vmem_to_hbm [thread:$0]  %s3352_s24, 32, %s5908_s6, [#allocation6]  }
 0x4de   :  { %5050 = dma.done.wait [#allocation6], 32  }
 0x4df   :  { %5051 = vsyncadd [#allocation6], 4294967264 }
 0x4e0   :  { %3358 = vsyncpa [#allocation6], 1 }
 0x4e1   :  { %3359 = vsyncmov [#allocation4] }
 0x4e4   :  { %s3360_s28 = vpop.sfrf %3359 }
 0x4e5   :  { %p3373_p10 = scmp.ne.s32.totalorder %s3360_s28, 0 }
 0x4e7   :  { %3364 = shalt.err (%p3373_p10)  }

</bundles_post_ra>
